<compile_context>
chip_gen: v7x
topology: tpu7x:2x2x1
jax: 0.10.0
libtpu: 0.0.40
codegen_flags: <defaults>
</compile_context>

<pallas_src>
import jax
import jax.numpy as jnp
from jax.experimental import pallas as pl
from jax.experimental.pallas import tpu as pltpu


def _lstm_encoder_kernel(x_ref, wih0_ref, whh0_ref, b0_ref,
                         wih1_ref, whh1_ref, b1_ref,
                         gamma_ref, beta_ref, out_ref,
                         h0_sc, c0_sc, h1_sc, c1_sc, gx_sc, hseq_sc):
    # x_ref:   (T_CHUNK, B, D)       f32
    # wih0:    (D, 4H)  bf16   whh0: (H, 4H) bf16     gate order [i, f, o, g]
    # wih1:    (H, 4H)  bf16   whh1: (H, 4H) bf16
    # b0/b1:   (1, 4H)  f32  (b_ih + b_hh, reordered)
    # gamma/beta: (1, H) f32
    # h*/c*_sc:(B, H)   f32   persistent hidden / cell states (across grid steps)
    # gx_sc:   (T_CHUNK, B, 4H) f32  cached input projection of the current layer
    # hseq_sc: (T_CHUNK, B, H)  f32  per-chunk hidden-state sequence
    T_CHUNK, B, D = x_ref.shape
    H = h0_sc.shape[-1]
    G = 4 * H

    @pl.when(pl.program_id(0) == 0)
    def _init():
        h0_sc[...] = jnp.zeros_like(h0_sc)
        c0_sc[...] = jnp.zeros_like(c0_sc)
        h1_sc[...] = jnp.zeros_like(h1_sc)
        c1_sc[...] = jnp.zeros_like(c1_sc)

    # Grid-invariant loads / broadcasts hoisted out of the time loops.
    whh0 = whh0_ref[...]
    whh1 = whh1_ref[...]
    b0_big = jnp.broadcast_to(b0_ref[...], (T_CHUNK * B, G))
    b1_big = jnp.broadcast_to(b1_ref[...], (T_CHUNK * B, G))

    def gates_to_hc(gates, c_prev):
        # Gate order [i, f, o, g]: one sigmoid over the first 3H lanes,
        # one tanh over the last H lanes.
        sig = jax.nn.sigmoid(gates[:, :3 * H])
        g_g = jnp.tanh(gates[:, 3 * H:])
        i_g = sig[:, :H]
        f_g = sig[:, H:2 * H]
        o_g = sig[:, 2 * H:]
        c_new = f_g * c_prev + i_g * g_g
        h_new = o_g * jnp.tanh(c_new)
        return h_new, c_new

    # ---- Layer 0: input projection for the whole chunk in one MXU op (bias folded).
    x_flat = x_ref[...].reshape(T_CHUNK * B, D).astype(jnp.bfloat16)
    gx_sc[...] = (jnp.dot(x_flat, wih0_ref[...],
                          preferred_element_type=jnp.float32)
                  + b0_big).reshape(T_CHUNK, B, G)

    def step0(t, carry):
        gates = gx_sc[t] + jnp.dot(h0_sc[...].astype(jnp.bfloat16), whh0,
                                   preferred_element_type=jnp.float32)
        h_new, c_new = gates_to_hc(gates, c0_sc[...])
        h0_sc[...] = h_new
        c0_sc[...] = c_new
        hseq_sc[t] = h_new
        return carry

    jax.lax.fori_loop(0, T_CHUNK, step0, 0, unroll=True)

    # ---- Layer 1: input projection of the layer-0 output sequence in one MXU op.
    # TODO(synk): nn.LSTM inter-layer dropout (p=0.1) is training-only; inference skips it.
    h0_flat = hseq_sc[...].reshape(T_CHUNK * B, H).astype(jnp.bfloat16)
    gx_sc[...] = (jnp.dot(h0_flat, wih1_ref[...],
                          preferred_element_type=jnp.float32)
                  + b1_big).reshape(T_CHUNK, B, G)

    def step1(t, carry):
        gates = gx_sc[t] + jnp.dot(h1_sc[...].astype(jnp.bfloat16), whh1,
                                   preferred_element_type=jnp.float32)
        h_new, c_new = gates_to_hc(gates, c1_sc[...])
        h1_sc[...] = h_new
        c1_sc[...] = c_new
        hseq_sc[t] = h_new          # reuse: now holds the layer-1 output sequence
        return carry

    jax.lax.fori_loop(0, T_CHUNK, step1, 0, unroll=True)

    # ---- LayerNorm (eps = 1e-5, PyTorch default) + Swish over the whole chunk.
    h = hseq_sc[...]                                        # (T_CHUNK, B, H) f32
    mu = jnp.mean(h, axis=-1, keepdims=True)
    var = jnp.mean((h - mu) ** 2, axis=-1, keepdims=True)
    gamma = gamma_ref[...].reshape(1, 1, H)
    beta = beta_ref[...].reshape(1, 1, H)
    y = (h - mu) * jax.lax.rsqrt(var + 1e-5) * gamma + beta
    out_ref[...] = y * jax.nn.sigmoid(y)


def lstm_encoder(x, params, *, time_chunk=32):
    """x: (B, T, D_in) float32, batch_first like the PyTorch module. Returns (B, T, H)."""
    B, T, D = x.shape
    H = params["gamma"].shape[-1]

    B_pad = ((B + 7) // 8) * 8                 # sublane-align the batch
    T_CHUNK = min(time_chunk, T)
    T_pad = pl.cdiv(T, T_CHUNK) * T_CHUNK

    x_tm = jnp.transpose(x, (1, 0, 2))          # time-major (T, B, D)
    x_tm = jnp.pad(x_tm, ((0, T_pad - T), (0, B_pad - B), (0, 0)))

    out_tm = pl.pallas_call(
        _lstm_encoder_kernel,
        out_shape=jax.ShapeDtypeStruct((T_pad, B_pad, H), jnp.float32),
        grid_spec=pltpu.PrefetchScalarGridSpec(
            num_scalar_prefetch=0,
            grid=(T_pad // T_CHUNK,),
            in_specs=[
                pl.BlockSpec((T_CHUNK, B_pad, D), lambda c: (c, 0, 0)),   # x chunk
                pl.BlockSpec((D, 4 * H), lambda c: (0, 0)),               # Wih0.T (bf16)
                pl.BlockSpec((H, 4 * H), lambda c: (0, 0)),               # Whh0.T (bf16)
                pl.BlockSpec((1, 4 * H), lambda c: (0, 0)),               # bias layer 0 (f32)
                pl.BlockSpec((H, 4 * H), lambda c: (0, 0)),               # Wih1.T (bf16)
                pl.BlockSpec((H, 4 * H), lambda c: (0, 0)),               # Whh1.T (bf16)
                pl.BlockSpec((1, 4 * H), lambda c: (0, 0)),               # bias layer 1 (f32)
                pl.BlockSpec((1, H), lambda c: (0, 0)),                   # LayerNorm gamma
                pl.BlockSpec((1, H), lambda c: (0, 0)),                   # LayerNorm beta
            ],
            out_specs=pl.BlockSpec((T_CHUNK, B_pad, H), lambda c: (c, 0, 0)),
            scratch_shapes=[
                pltpu.VMEM((B_pad, H), jnp.float32),               # h0
                pltpu.VMEM((B_pad, H), jnp.float32),               # c0
                pltpu.VMEM((B_pad, H), jnp.float32),               # h1
                pltpu.VMEM((B_pad, H), jnp.float32),               # c1
                pltpu.VMEM((T_CHUNK, B_pad, 4 * H), jnp.float32),  # cached input projection
                pltpu.VMEM((T_CHUNK, B_pad, H), jnp.float32),      # hidden-state sequence
            ],
        ),
        compiler_params=pltpu.CompilerParams(
            dimension_semantics=("arbitrary",),            # recurrence: time is serial
            vmem_limit_bytes=32 * 1024 * 1024,
        ),
    )(x_tm, params["wih0"], params["whh0"], params["b0"],
      params["wih1"], params["whh1"], params["b1"],
      params["gamma"], params["beta"])

    return jnp.transpose(out_tm[:T, :B], (1, 0, 2))        # back to (B, T, H)


def make_params(key, input_size, hidden_size):
    """Builds (raw PyTorch-layout params, reordered/transposed kernel params).

    Raw weights are rounded through bf16 so the bf16 kernel weights equal the
    f32 reference weights bit-for-bit; only activation rounding differs.
    """
    H, D = hidden_size, input_size
    k = 1.0 / jnp.sqrt(jnp.float32(H))
    keys = jax.random.split(key, 8)

    def u(subkey, shape):
        w = jax.random.uniform(subkey, shape, jnp.float32, minval=-k, maxval=k)
        return w.astype(jnp.bfloat16).astype(jnp.float32)

    raw = {
        "wih0": u(keys[0], (4 * H, D)), "whh0": u(keys[1], (4 * H, H)),
        "bih0": u(keys[2], (4 * H,)),   "bhh0": u(keys[3], (4 * H,)),
        "wih1": u(keys[4], (4 * H, H)), "whh1": u(keys[5], (4 * H, H)),
        "bih1": u(keys[6], (4 * H,)),   "bhh1": u(keys[7], (4 * H,)),
        "gamma": jnp.ones((H,), jnp.float32),    # nn.LayerNorm default init
        "beta": jnp.zeros((H,), jnp.float32),
    }

    def reorder(w):  # PyTorch gate order [i, f, g, o] -> kernel order [i, f, o, g]
        return jnp.concatenate([w[:2 * H], w[3 * H:], w[2 * H:3 * H]], axis=0)

    kp = {
        "wih0": reorder(raw["wih0"]).T.astype(jnp.bfloat16),   # (D, 4H)
        "whh0": reorder(raw["whh0"]).T.astype(jnp.bfloat16),   # (H, 4H)
        "wih1": reorder(raw["wih1"]).T.astype(jnp.bfloat16),   # (H, 4H)
        "whh1": reorder(raw["whh1"]).T.astype(jnp.bfloat16),   # (H, 4H)
        "b0": reorder(raw["bih0"] + raw["bhh0"]).reshape(1, 4 * H),
        "b1": reorder(raw["bih1"] + raw["bhh1"]).reshape(1, 4 * H),
        "gamma": raw["gamma"].reshape(1, H),
        "beta": raw["beta"].reshape(1, H),
    }
    return raw, kp


def lstm_encoder_ref(x, raw):
    """Pure-JAX f32 reference matching the PyTorch module semantics."""
    B, T, D = x.shape
    H = raw["gamma"].shape[-1]

    def cell(x_in, h, c, wih, whh, bih, bhh):
        gates = x_in @ wih.T + h @ whh.T + bih + bhh
        i = jax.nn.sigmoid(gates[:, 0 * H:1 * H])
        f = jax.nn.sigmoid(gates[:, 1 * H:2 * H])
        g = jnp.tanh(gates[:, 2 * H:3 * H])
        o = jax.nn.sigmoid(gates[:, 3 * H:4 * H])
        c_new = f * c + i * g
        return o * jnp.tanh(c_new), c_new

    def step(carry, x_t):
        h0, c0, h1, c1 = carry
        h0, c0 = cell(x_t, h0, c0, raw["wih0"], raw["whh0"], raw["bih0"], raw["bhh0"])
        h1, c1 = cell(h0, h1, c1, raw["wih1"], raw["whh1"], raw["bih1"], raw["bhh1"])
        return (h0, c0, h1, c1), h1

    zeros = jnp.zeros((B, H), jnp.float32)
    _, hs = jax.lax.scan(step, (zeros, zeros, zeros, zeros), jnp.transpose(x, (1, 0, 2)))
    hs = jnp.transpose(hs, (1, 0, 2))                       # (B, T, H)
    mu = jnp.mean(hs, axis=-1, keepdims=True)
    var = jnp.mean((hs - mu) ** 2, axis=-1, keepdims=True)
    y = (hs - mu) * jax.lax.rsqrt(var + 1e-5)
    y = y * raw["gamma"] + raw["beta"]
    return y * jax.nn.sigmoid(y)


if __name__ == "__main__":
    B, T, D, H = 2, 8, 4, 32  # batch, seq, input_size, hidden_size

    key = jax.random.PRNGKey(0)
    k_x, k_p = jax.random.split(key)
    x = jax.random.normal(k_x, (B, T, D), jnp.float32)
    raw_params, kernel_params = make_params(k_p, D, H)

    out = jax.block_until_ready(lstm_encoder(x, kernel_params))
    ref = jax.block_until_ready(lstm_encoder_ref(x, raw_params))

    assert out.shape == (B, T, H)
    max_err = float(jnp.max(jnp.abs(out - ref)))
    assert jnp.allclose(out, ref, atol=5e-2, rtol=5e-2), (
        f"Pallas kernel mismatch vs JAX reference (max abs err {max_err})")
    print("KERNEL_OK")
</pallas_src>

<mosaic_0001>
module attributes {stable_mosaic.version = 11 : i64} {
  func.func @_lstm_encoder_kernel(%arg0: i32, %arg1: memref<8x8x4xf32, #tpu.memory_space<vmem>>, %arg2: memref<4x128xbf16, #tpu.memory_space<vmem>>, %arg3: memref<32x128xbf16, #tpu.memory_space<vmem>>, %arg4: memref<1x128xf32, #tpu.memory_space<vmem>>, %arg5: memref<32x128xbf16, #tpu.memory_space<vmem>>, %arg6: memref<32x128xbf16, #tpu.memory_space<vmem>>, %arg7: memref<1x128xf32, #tpu.memory_space<vmem>>, %arg8: memref<1x32xf32, #tpu.memory_space<vmem>>, %arg9: memref<1x32xf32, #tpu.memory_space<vmem>>, %arg10: memref<8x8x32xf32, #tpu.memory_space<vmem>>, %arg11: memref<8x32xf32, #tpu.memory_space<vmem>>, %arg12: memref<8x32xf32, #tpu.memory_space<vmem>>, %arg13: memref<8x32xf32, #tpu.memory_space<vmem>>, %arg14: memref<8x32xf32, #tpu.memory_space<vmem>>, %arg15: memref<8x8x128xf32, #tpu.memory_space<vmem>>, %arg16: memref<8x8x32xf32, #tpu.memory_space<vmem>>) attributes {dimension_semantics = [#tpu.dimension_semantics<arbitrary>], iteration_bounds = array<i64: 1>, scalar_prefetch = 0 : i64, scratch_operands = 6 : i64, tpu.core_type = #tpu.core_type<tc>, window_params = [{transform_indices = @transform_0, window_bounds = array<i64: 8, 8, 4>}, {pipeline_mode = #tpu.pipeline_mode<synchronous>, transform_indices = @transform_1, window_bounds = array<i64: 4, 128>}, {pipeline_mode = #tpu.pipeline_mode<synchronous>, transform_indices = @transform_2, window_bounds = array<i64: 32, 128>}, {pipeline_mode = #tpu.pipeline_mode<synchronous>, transform_indices = @transform_3, window_bounds = array<i64: 1, 128>}, {pipeline_mode = #tpu.pipeline_mode<synchronous>, transform_indices = @transform_4, window_bounds = array<i64: 32, 128>}, {pipeline_mode = #tpu.pipeline_mode<synchronous>, transform_indices = @transform_5, window_bounds = array<i64: 32, 128>}, {pipeline_mode = #tpu.pipeline_mode<synchronous>, transform_indices = @transform_6, window_bounds = array<i64: 1, 128>}, {pipeline_mode = #tpu.pipeline_mode<synchronous>, transform_indices = @transform_7, window_bounds = array<i64: 1, 32>}, {pipeline_mode = #tpu.pipeline_mode<synchronous>, transform_indices = @transform_8, window_bounds = array<i64: 1, 32>}, {transform_indices = @transform_9, window_bounds = array<i64: 8, 8, 32>}]} {
    %c0_i32 = arith.constant 0 : i32
    %0 = arith.cmpi eq, %arg0, %c0_i32 : i32
    %1 = arith.extui %0 : i1 to i32
    %c0_i32_0 = arith.constant 0 : i32
    %2 = arith.cmpi ne, %1, %c0_i32_0 : i32
    scf.if %2 {
      %cst_275 = arith.constant 0.000000e+00 : f32
      %541 = vector.broadcast %cst_275 : f32 to vector<8x32xf32>
      %c0_276 = arith.constant 0 : index
      %c0_277 = arith.constant 0 : index
      %542 = vector.load %arg11[%c0_276, %c0_277] : memref<8x32xf32, #tpu.memory_space<vmem>>, vector<8x32xf32>
      tpu.vector_store %arg11[%c0_276, %c0_277], %541 {strides = array<i32>} : memref<8x32xf32, #tpu.memory_space<vmem>>, vector<8x32xf32>,
      %cst_278 = arith.constant 0.000000e+00 : f32
      %543 = vector.broadcast %cst_278 : f32 to vector<8x32xf32>
      %c0_279 = arith.constant 0 : index
      %c0_280 = arith.constant 0 : index
      %544 = vector.load %arg12[%c0_279, %c0_280] : memref<8x32xf32, #tpu.memory_space<vmem>>, vector<8x32xf32>
      tpu.vector_store %arg12[%c0_279, %c0_280], %543 {strides = array<i32>} : memref<8x32xf32, #tpu.memory_space<vmem>>, vector<8x32xf32>,
      %cst_281 = arith.constant 0.000000e+00 : f32
      %545 = vector.broadcast %cst_281 : f32 to vector<8x32xf32>
      %c0_282 = arith.constant 0 : index
      %c0_283 = arith.constant 0 : index
      %546 = vector.load %arg13[%c0_282, %c0_283] : memref<8x32xf32, #tpu.memory_space<vmem>>, vector<8x32xf32>
      tpu.vector_store %arg13[%c0_282, %c0_283], %545 {strides = array<i32>} : memref<8x32xf32, #tpu.memory_space<vmem>>, vector<8x32xf32>,
      %cst_284 = arith.constant 0.000000e+00 : f32
      %547 = vector.broadcast %cst_284 : f32 to vector<8x32xf32>
      %c0_285 = arith.constant 0 : index
      %c0_286 = arith.constant 0 : index
      %548 = vector.load %arg14[%c0_285, %c0_286] : memref<8x32xf32, #tpu.memory_space<vmem>>, vector<8x32xf32>
      tpu.vector_store %arg14[%c0_285, %c0_286], %547 {strides = array<i32>} : memref<8x32xf32, #tpu.memory_space<vmem>>, vector<8x32xf32>,
    } else {
    }
    %c0 = arith.constant 0 : index
    %c0_1 = arith.constant 0 : index
    %3 = vector.load %arg3[%c0, %c0_1] : memref<32x128xbf16, #tpu.memory_space<vmem>>, vector<32x128xbf16>
    %c0_2 = arith.constant 0 : index
    %c0_3 = arith.constant 0 : index
    %4 = vector.load %arg6[%c0_2, %c0_3] : memref<32x128xbf16, #tpu.memory_space<vmem>>, vector<32x128xbf16>
    %c0_4 = arith.constant 0 : index
    %c0_5 = arith.constant 0 : index
    %5 = vector.load %arg4[%c0_4, %c0_5] : memref<1x128xf32, #tpu.memory_space<vmem>>, vector<1x128xf32>
    %6 = vector.shape_cast %5 : vector<1x128xf32> to vector<1x128xf32>
    %7 = vector.broadcast %6 : vector<1x128xf32> to vector<64x128xf32>
    %c0_6 = arith.constant 0 : index
    %c0_7 = arith.constant 0 : index
    %8 = vector.load %arg7[%c0_6, %c0_7] : memref<1x128xf32, #tpu.memory_space<vmem>>, vector<1x128xf32>
    %9 = vector.shape_cast %8 : vector<1x128xf32> to vector<1x128xf32>
    %10 = vector.broadcast %9 : vector<1x128xf32> to vector<64x128xf32>
    %c0_8 = arith.constant 0 : index
    %c0_9 = arith.constant 0 : index
    %c0_10 = arith.constant 0 : index
    %11 = vector.load %arg1[%c0_8, %c0_9, %c0_10] : memref<8x8x4xf32, #tpu.memory_space<vmem>>, vector<8x8x4xf32>
    %12 = vector.shape_cast %11 : vector<8x8x4xf32> to vector<64x4xf32>
    %13 = arith.truncf %12 : vector<64x4xf32> to vector<64x4xbf16>
    %c0_11 = arith.constant 0 : index
    %c0_12 = arith.constant 0 : index
    %14 = vector.load %arg2[%c0_11, %c0_12] : memref<4x128xbf16, #tpu.memory_space<vmem>>, vector<4x128xbf16>
    %cst = arith.constant dense<0.000000e+00> : vector<64x128xf32>
    %15 = tpu.matmul %13, %14, %cst {dimension_numbers = #tpu.dot_dimension_numbers<[1], [0], [0], [1], [0, 0, 1, 1], [], []>} : vector<64x4xbf16>, vector<4x128xbf16>, vector<64x128xf32> -> vector<64x128xf32>
    %16 = arith.addf %15, %7 : vector<64x128xf32>
    %17 = vector.shape_cast %16 : vector<64x128xf32> to vector<8x8x128xf32>
    %c0_13 = arith.constant 0 : index
    %c0_14 = arith.constant 0 : index
    %c0_15 = arith.constant 0 : index
    %18 = vector.load %arg15[%c0_13, %c0_14, %c0_15] : memref<8x8x128xf32, #tpu.memory_space<vmem>>, vector<8x8x128xf32>
    tpu.vector_store %arg15[%c0_13, %c0_14, %c0_15], %17 {strides = array<i32>} : memref<8x8x128xf32, #tpu.memory_space<vmem>>, vector<8x8x128xf32>,
    %c0_i32_16 = arith.constant 0 : i32
    %19 = arith.index_cast %c0_i32_16 : i32 to index
    %c0_17 = arith.constant 0 : index
    %c0_18 = arith.constant 0 : index
    %20 = vector.load %arg15[%19, %c0_17, %c0_18] : memref<8x8x128xf32, #tpu.memory_space<vmem>>, vector<1x8x128xf32>
    %21 = vector.shape_cast %20 : vector<1x8x128xf32> to vector<8x128xf32>
    %c0_19 = arith.constant 0 : index
    %c0_20 = arith.constant 0 : index
    %22 = vector.load %arg11[%c0_19, %c0_20] : memref<8x32xf32, #tpu.memory_space<vmem>>, vector<8x32xf32>
    %23 = arith.truncf %22 : vector<8x32xf32> to vector<8x32xbf16>
    %cst_21 = arith.constant dense<0.000000e+00> : vector<8x128xf32>
    %24 = tpu.matmul %23, %3, %cst_21 {dimension_numbers = #tpu.dot_dimension_numbers<[1], [0], [0], [1], [0, 0, 1, 1], [], []>} : vector<8x32xbf16>, vector<32x128xbf16>, vector<8x128xf32> -> vector<8x128xf32>
    %25 = arith.addf %21, %24 : vector<8x128xf32>
    %c0_22 = arith.constant 0 : index
    %c0_23 = arith.constant 0 : index
    %26 = vector.load %arg12[%c0_22, %c0_23] : memref<8x32xf32, #tpu.memory_space<vmem>>, vector<8x32xf32>
    %27 = vector.extract_strided_slice %25 {offsets = [0, 0], sizes = [8, 96], strides = [1, 1]} : vector<8x128xf32> to vector<8x96xf32>
    %28 = arith.negf %27 : vector<8x96xf32>
    %29 = math.exp %28 : vector<8x96xf32>
    %cst_24 = arith.constant 1.000000e+00 : f32
    %30 = vector.broadcast %cst_24 : f32 to vector<8x96xf32>
    %31 = arith.addf %30, %29 : vector<8x96xf32>
    %32 = arith.divf %30, %31 : vector<8x96xf32>
    %33 = vector.extract_strided_slice %25 {offsets = [0, 96], sizes = [8, 32], strides = [1, 1]} : vector<8x128xf32> to vector<8x32xf32>
    %34 = math.tanh %33 : vector<8x32xf32>
    %35 = vector.extract_strided_slice %32 {offsets = [0, 0], sizes = [8, 32], strides = [1, 1]} : vector<8x96xf32> to vector<8x32xf32>
    %36 = vector.extract_strided_slice %32 {offsets = [0, 32], sizes = [8, 32], strides = [1, 1]} : vector<8x96xf32> to vector<8x32xf32>
    %37 = vector.extract_strided_slice %32 {offsets = [0, 64], sizes = [8, 32], strides = [1, 1]} : vector<8x96xf32> to vector<8x32xf32>
    %38 = arith.mulf %36, %26 : vector<8x32xf32>
    %39 = arith.mulf %35, %34 : vector<8x32xf32>
    %40 = arith.addf %38, %39 : vector<8x32xf32>
    %41 = math.tanh %40 : vector<8x32xf32>
    %42 = arith.mulf %37, %41 : vector<8x32xf32>
    %c0_25 = arith.constant 0 : index
    %c0_26 = arith.constant 0 : index
    %43 = vector.load %arg11[%c0_25, %c0_26] : memref<8x32xf32, #tpu.memory_space<vmem>>, vector<8x32xf32>
    tpu.vector_store %arg11[%c0_25, %c0_26], %42 {strides = array<i32>} : memref<8x32xf32, #tpu.memory_space<vmem>>, vector<8x32xf32>,
    %c0_27 = arith.constant 0 : index
    %c0_28 = arith.constant 0 : index
    %44 = vector.load %arg12[%c0_27, %c0_28] : memref<8x32xf32, #tpu.memory_space<vmem>>, vector<8x32xf32>
    tpu.vector_store %arg12[%c0_27, %c0_28], %40 {strides = array<i32>} : memref<8x32xf32, #tpu.memory_space<vmem>>, vector<8x32xf32>,
    %45 = arith.index_cast %c0_i32_16 : i32 to index
    %c0_29 = arith.constant 0 : index
    %c0_30 = arith.constant 0 : index
    %46 = vector.load %arg16[%45, %c0_29, %c0_30] : memref<8x8x32xf32, #tpu.memory_space<vmem>>, vector<1x8x32xf32>
    %47 = vector.shape_cast %46 : vector<1x8x32xf32> to vector<8x32xf32>
    %48 = vector.shape_cast %42 : vector<8x32xf32> to vector<1x8x32xf32>
    tpu.vector_store %arg16[%45, %c0_29, %c0_30], %48 {strides = array<i32>} : memref<8x8x32xf32, #tpu.memory_space<vmem>>, vector<1x8x32xf32>,
    %c1_i32 = arith.constant 1 : i32
    %49 = arith.index_cast %c1_i32 : i32 to index
    %c0_31 = arith.constant 0 : index
    %c0_32 = arith.constant 0 : index
    %50 = vector.load %arg15[%49, %c0_31, %c0_32] : memref<8x8x128xf32, #tpu.memory_space<vmem>>, vector<1x8x128xf32>
    %51 = vector.shape_cast %50 : vector<1x8x128xf32> to vector<8x128xf32>
    %c0_33 = arith.constant 0 : index
    %c0_34 = arith.constant 0 : index
    %52 = vector.load %arg11[%c0_33, %c0_34] : memref<8x32xf32, #tpu.memory_space<vmem>>, vector<8x32xf32>
    %53 = arith.truncf %52 : vector<8x32xf32> to vector<8x32xbf16>
    %cst_35 = arith.constant dense<0.000000e+00> : vector<8x128xf32>
    %54 = tpu.matmul %53, %3, %cst_35 {dimension_numbers = #tpu.dot_dimension_numbers<[1], [0], [0], [1], [0, 0, 1, 1], [], []>} : vector<8x32xbf16>, vector<32x128xbf16>, vector<8x128xf32> -> vector<8x128xf32>
    %55 = arith.addf %51, %54 : vector<8x128xf32>
    %c0_36 = arith.constant 0 : index
    %c0_37 = arith.constant 0 : index
    %56 = vector.load %arg12[%c0_36, %c0_37] : memref<8x32xf32, #tpu.memory_space<vmem>>, vector<8x32xf32>
    %57 = vector.extract_strided_slice %55 {offsets = [0, 0], sizes = [8, 96], strides = [1, 1]} : vector<8x128xf32> to vector<8x96xf32>
    %58 = arith.negf %57 : vector<8x96xf32>
    %59 = math.exp %58 : vector<8x96xf32>
    %cst_38 = arith.constant 1.000000e+00 : f32
    %60 = vector.broadcast %cst_38 : f32 to vector<8x96xf32>
    %61 = arith.addf %60, %59 : vector<8x96xf32>
    %62 = arith.divf %60, %61 : vector<8x96xf32>
    %63 = vector.extract_strided_slice %55 {offsets = [0, 96], sizes = [8, 32], strides = [1, 1]} : vector<8x128xf32> to vector<8x32xf32>
    %64 = math.tanh %63 : vector<8x32xf32>
    %65 = vector.extract_strided_slice %62 {offsets = [0, 0], sizes = [8, 32], strides = [1, 1]} : vector<8x96xf32> to vector<8x32xf32>
    %66 = vector.extract_strided_slice %62 {offsets = [0, 32], sizes = [8, 32], strides = [1, 1]} : vector<8x96xf32> to vector<8x32xf32>
    %67 = vector.extract_strided_slice %62 {offsets = [0, 64], sizes = [8, 32], strides = [1, 1]} : vector<8x96xf32> to vector<8x32xf32>
    %68 = arith.mulf %66, %56 : vector<8x32xf32>
    %69 = arith.mulf %65, %64 : vector<8x32xf32>
    %70 = arith.addf %68, %69 : vector<8x32xf32>
    %71 = math.tanh %70 : vector<8x32xf32>
    %72 = arith.mulf %67, %71 : vector<8x32xf32>
    %c0_39 = arith.constant 0 : index
    %c0_40 = arith.constant 0 : index
    %73 = vector.load %arg11[%c0_39, %c0_40] : memref<8x32xf32, #tpu.memory_space<vmem>>, vector<8x32xf32>
    tpu.vector_store %arg11[%c0_39, %c0_40], %72 {strides = array<i32>} : memref<8x32xf32, #tpu.memory_space<vmem>>, vector<8x32xf32>,
    %c0_41 = arith.constant 0 : index
    %c0_42 = arith.constant 0 : index
    %74 = vector.load %arg12[%c0_41, %c0_42] : memref<8x32xf32, #tpu.memory_space<vmem>>, vector<8x32xf32>
    tpu.vector_store %arg12[%c0_41, %c0_42], %70 {strides = array<i32>} : memref<8x32xf32, #tpu.memory_space<vmem>>, vector<8x32xf32>,
    %75 = arith.index_cast %c1_i32 : i32 to index
    %c0_43 = arith.constant 0 : index
    %c0_44 = arith.constant 0 : index
    %76 = vector.load %arg16[%75, %c0_43, %c0_44] : memref<8x8x32xf32, #tpu.memory_space<vmem>>, vector<1x8x32xf32>
    %77 = vector.shape_cast %76 : vector<1x8x32xf32> to vector<8x32xf32>
    %78 = vector.shape_cast %72 : vector<8x32xf32> to vector<1x8x32xf32>
    tpu.vector_store %arg16[%75, %c0_43, %c0_44], %78 {strides = array<i32>} : memref<8x8x32xf32, #tpu.memory_space<vmem>>, vector<1x8x32xf32>,
    %c2_i32 = arith.constant 2 : i32
    %79 = arith.index_cast %c2_i32 : i32 to index
    %c0_45 = arith.constant 0 : index
    %c0_46 = arith.constant 0 : index
    %80 = vector.load %arg15[%79, %c0_45, %c0_46] : memref<8x8x128xf32, #tpu.memory_space<vmem>>, vector<1x8x128xf32>
    %81 = vector.shape_cast %80 : vector<1x8x128xf32> to vector<8x128xf32>
    %c0_47 = arith.constant 0 : index
    %c0_48 = arith.constant 0 : index
    %82 = vector.load %arg11[%c0_47, %c0_48] : memref<8x32xf32, #tpu.memory_space<vmem>>, vector<8x32xf32>
    %83 = arith.truncf %82 : vector<8x32xf32> to vector<8x32xbf16>
    %cst_49 = arith.constant dense<0.000000e+00> : vector<8x128xf32>
    %84 = tpu.matmul %83, %3, %cst_49 {dimension_numbers = #tpu.dot_dimension_numbers<[1], [0], [0], [1], [0, 0, 1, 1], [], []>} : vector<8x32xbf16>, vector<32x128xbf16>, vector<8x128xf32> -> vector<8x128xf32>
    %85 = arith.addf %81, %84 : vector<8x128xf32>
    %c0_50 = arith.constant 0 : index
    %c0_51 = arith.constant 0 : index
    %86 = vector.load %arg12[%c0_50, %c0_51] : memref<8x32xf32, #tpu.memory_space<vmem>>, vector<8x32xf32>
    %87 = vector.extract_strided_slice %85 {offsets = [0, 0], sizes = [8, 96], strides = [1, 1]} : vector<8x128xf32> to vector<8x96xf32>
    %88 = arith.negf %87 : vector<8x96xf32>
    %89 = math.exp %88 : vector<8x96xf32>
    %cst_52 = arith.constant 1.000000e+00 : f32
    %90 = vector.broadcast %cst_52 : f32 to vector<8x96xf32>
    %91 = arith.addf %90, %89 : vector<8x96xf32>
    %92 = arith.divf %90, %91 : vector<8x96xf32>
    %93 = vector.extract_strided_slice %85 {offsets = [0, 96], sizes = [8, 32], strides = [1, 1]} : vector<8x128xf32> to vector<8x32xf32>
    %94 = math.tanh %93 : vector<8x32xf32>
    %95 = vector.extract_strided_slice %92 {offsets = [0, 0], sizes = [8, 32], strides = [1, 1]} : vector<8x96xf32> to vector<8x32xf32>
    %96 = vector.extract_strided_slice %92 {offsets = [0, 32], sizes = [8, 32], strides = [1, 1]} : vector<8x96xf32> to vector<8x32xf32>
    %97 = vector.extract_strided_slice %92 {offsets = [0, 64], sizes = [8, 32], strides = [1, 1]} : vector<8x96xf32> to vector<8x32xf32>
    %98 = arith.mulf %96, %86 : vector<8x32xf32>
    %99 = arith.mulf %95, %94 : vector<8x32xf32>
    %100 = arith.addf %98, %99 : vector<8x32xf32>
    %101 = math.tanh %100 : vector<8x32xf32>
    %102 = arith.mulf %97, %101 : vector<8x32xf32>
    %c0_53 = arith.constant 0 : index
    %c0_54 = arith.constant 0 : index
    %103 = vector.load %arg11[%c0_53, %c0_54] : memref<8x32xf32, #tpu.memory_space<vmem>>, vector<8x32xf32>
    tpu.vector_store %arg11[%c0_53, %c0_54], %102 {strides = array<i32>} : memref<8x32xf32, #tpu.memory_space<vmem>>, vector<8x32xf32>,
    %c0_55 = arith.constant 0 : index
    %c0_56 = arith.constant 0 : index
    %104 = vector.load %arg12[%c0_55, %c0_56] : memref<8x32xf32, #tpu.memory_space<vmem>>, vector<8x32xf32>
    tpu.vector_store %arg12[%c0_55, %c0_56], %100 {strides = array<i32>} : memref<8x32xf32, #tpu.memory_space<vmem>>, vector<8x32xf32>,
    %105 = arith.index_cast %c2_i32 : i32 to index
    %c0_57 = arith.constant 0 : index
    %c0_58 = arith.constant 0 : index
    %106 = vector.load %arg16[%105, %c0_57, %c0_58] : memref<8x8x32xf32, #tpu.memory_space<vmem>>, vector<1x8x32xf32>
    %107 = vector.shape_cast %106 : vector<1x8x32xf32> to vector<8x32xf32>
    %108 = vector.shape_cast %102 : vector<8x32xf32> to vector<1x8x32xf32>
    tpu.vector_store %arg16[%105, %c0_57, %c0_58], %108 {strides = array<i32>} : memref<8x8x32xf32, #tpu.memory_space<vmem>>, vector<1x8x32xf32>,
    %c3_i32 = arith.constant 3 : i32
    %109 = arith.index_cast %c3_i32 : i32 to index
    %c0_59 = arith.constant 0 : index
    %c0_60 = arith.constant 0 : index
    %110 = vector.load %arg15[%109, %c0_59, %c0_60] : memref<8x8x128xf32, #tpu.memory_space<vmem>>, vector<1x8x128xf32>
    %111 = vector.shape_cast %110 : vector<1x8x128xf32> to vector<8x128xf32>
    %c0_61 = arith.constant 0 : index
    %c0_62 = arith.constant 0 : index
    %112 = vector.load %arg11[%c0_61, %c0_62] : memref<8x32xf32, #tpu.memory_space<vmem>>, vector<8x32xf32>
    %113 = arith.truncf %112 : vector<8x32xf32> to vector<8x32xbf16>
    %cst_63 = arith.constant dense<0.000000e+00> : vector<8x128xf32>
    %114 = tpu.matmul %113, %3, %cst_63 {dimension_numbers = #tpu.dot_dimension_numbers<[1], [0], [0], [1], [0, 0, 1, 1], [], []>} : vector<8x32xbf16>, vector<32x128xbf16>, vector<8x128xf32> -> vector<8x128xf32>
    %115 = arith.addf %111, %114 : vector<8x128xf32>
    %c0_64 = arith.constant 0 : index
    %c0_65 = arith.constant 0 : index
    %116 = vector.load %arg12[%c0_64, %c0_65] : memref<8x32xf32, #tpu.memory_space<vmem>>, vector<8x32xf32>
    %117 = vector.extract_strided_slice %115 {offsets = [0, 0], sizes = [8, 96], strides = [1, 1]} : vector<8x128xf32> to vector<8x96xf32>
    %118 = arith.negf %117 : vector<8x96xf32>
    %119 = math.exp %118 : vector<8x96xf32>
    %cst_66 = arith.constant 1.000000e+00 : f32
    %120 = vector.broadcast %cst_66 : f32 to vector<8x96xf32>
    %121 = arith.addf %120, %119 : vector<8x96xf32>
    %122 = arith.divf %120, %121 : vector<8x96xf32>
    %123 = vector.extract_strided_slice %115 {offsets = [0, 96], sizes = [8, 32], strides = [1, 1]} : vector<8x128xf32> to vector<8x32xf32>
    %124 = math.tanh %123 : vector<8x32xf32>
    %125 = vector.extract_strided_slice %122 {offsets = [0, 0], sizes = [8, 32], strides = [1, 1]} : vector<8x96xf32> to vector<8x32xf32>
    %126 = vector.extract_strided_slice %122 {offsets = [0, 32], sizes = [8, 32], strides = [1, 1]} : vector<8x96xf32> to vector<8x32xf32>
    %127 = vector.extract_strided_slice %122 {offsets = [0, 64], sizes = [8, 32], strides = [1, 1]} : vector<8x96xf32> to vector<8x32xf32>
    %128 = arith.mulf %126, %116 : vector<8x32xf32>
    %129 = arith.mulf %125, %124 : vector<8x32xf32>
    %130 = arith.addf %128, %129 : vector<8x32xf32>
    %131 = math.tanh %130 : vector<8x32xf32>
    %132 = arith.mulf %127, %131 : vector<8x32xf32>
    %c0_67 = arith.constant 0 : index
    %c0_68 = arith.constant 0 : index
    %133 = vector.load %arg11[%c0_67, %c0_68] : memref<8x32xf32, #tpu.memory_space<vmem>>, vector<8x32xf32>
    tpu.vector_store %arg11[%c0_67, %c0_68], %132 {strides = array<i32>} : memref<8x32xf32, #tpu.memory_space<vmem>>, vector<8x32xf32>,
    %c0_69 = arith.constant 0 : index
    %c0_70 = arith.constant 0 : index
    %134 = vector.load %arg12[%c0_69, %c0_70] : memref<8x32xf32, #tpu.memory_space<vmem>>, vector<8x32xf32>
    tpu.vector_store %arg12[%c0_69, %c0_70], %130 {strides = array<i32>} : memref<8x32xf32, #tpu.memory_space<vmem>>, vector<8x32xf32>,
    %135 = arith.index_cast %c3_i32 : i32 to index
    %c0_71 = arith.constant 0 : index
    %c0_72 = arith.constant 0 : index
    %136 = vector.load %arg16[%135, %c0_71, %c0_72] : memref<8x8x32xf32, #tpu.memory_space<vmem>>, vector<1x8x32xf32>
    %137 = vector.shape_cast %136 : vector<1x8x32xf32> to vector<8x32xf32>
    %138 = vector.shape_cast %132 : vector<8x32xf32> to vector<1x8x32xf32>
    tpu.vector_store %arg16[%135, %c0_71, %c0_72], %138 {strides = array<i32>} : memref<8x8x32xf32, #tpu.memory_space<vmem>>, vector<1x8x32xf32>,
    %c4_i32 = arith.constant 4 : i32
    %139 = arith.index_cast %c4_i32 : i32 to index
    %c0_73 = arith.constant 0 : index
    %c0_74 = arith.constant 0 : index
    %140 = vector.load %arg15[%139, %c0_73, %c0_74] : memref<8x8x128xf32, #tpu.memory_space<vmem>>, vector<1x8x128xf32>
    %141 = vector.shape_cast %140 : vector<1x8x128xf32> to vector<8x128xf32>
    %c0_75 = arith.constant 0 : index
    %c0_76 = arith.constant 0 : index
    %142 = vector.load %arg11[%c0_75, %c0_76] : memref<8x32xf32, #tpu.memory_space<vmem>>, vector<8x32xf32>
    %143 = arith.truncf %142 : vector<8x32xf32> to vector<8x32xbf16>
    %cst_77 = arith.constant dense<0.000000e+00> : vector<8x128xf32>
    %144 = tpu.matmul %143, %3, %cst_77 {dimension_numbers = #tpu.dot_dimension_numbers<[1], [0], [0], [1], [0, 0, 1, 1], [], []>} : vector<8x32xbf16>, vector<32x128xbf16>, vector<8x128xf32> -> vector<8x128xf32>
    %145 = arith.addf %141, %144 : vector<8x128xf32>
    %c0_78 = arith.constant 0 : index
    %c0_79 = arith.constant 0 : index
    %146 = vector.load %arg12[%c0_78, %c0_79] : memref<8x32xf32, #tpu.memory_space<vmem>>, vector<8x32xf32>
    %147 = vector.extract_strided_slice %145 {offsets = [0, 0], sizes = [8, 96], strides = [1, 1]} : vector<8x128xf32> to vector<8x96xf32>
    %148 = arith.negf %147 : vector<8x96xf32>
    %149 = math.exp %148 : vector<8x96xf32>
    %cst_80 = arith.constant 1.000000e+00 : f32
    %150 = vector.broadcast %cst_80 : f32 to vector<8x96xf32>
    %151 = arith.addf %150, %149 : vector<8x96xf32>
    %152 = arith.divf %150, %151 : vector<8x96xf32>
    %153 = vector.extract_strided_slice %145 {offsets = [0, 96], sizes = [8, 32], strides = [1, 1]} : vector<8x128xf32> to vector<8x32xf32>
    %154 = math.tanh %153 : vector<8x32xf32>
    %155 = vector.extract_strided_slice %152 {offsets = [0, 0], sizes = [8, 32], strides = [1, 1]} : vector<8x96xf32> to vector<8x32xf32>
    %156 = vector.extract_strided_slice %152 {offsets = [0, 32], sizes = [8, 32], strides = [1, 1]} : vector<8x96xf32> to vector<8x32xf32>
    %157 = vector.extract_strided_slice %152 {offsets = [0, 64], sizes = [8, 32], strides = [1, 1]} : vector<8x96xf32> to vector<8x32xf32>
    %158 = arith.mulf %156, %146 : vector<8x32xf32>
    %159 = arith.mulf %155, %154 : vector<8x32xf32>
    %160 = arith.addf %158, %159 : vector<8x32xf32>
    %161 = math.tanh %160 : vector<8x32xf32>
    %162 = arith.mulf %157, %161 : vector<8x32xf32>
    %c0_81 = arith.constant 0 : index
    %c0_82 = arith.constant 0 : index
    %163 = vector.load %arg11[%c0_81, %c0_82] : memref<8x32xf32, #tpu.memory_space<vmem>>, vector<8x32xf32>
    tpu.vector_store %arg11[%c0_81, %c0_82], %162 {strides = array<i32>} : memref<8x32xf32, #tpu.memory_space<vmem>>, vector<8x32xf32>,
    %c0_83 = arith.constant 0 : index
    %c0_84 = arith.constant 0 : index
    %164 = vector.load %arg12[%c0_83, %c0_84] : memref<8x32xf32, #tpu.memory_space<vmem>>, vector<8x32xf32>
    tpu.vector_store %arg12[%c0_83, %c0_84], %160 {strides = array<i32>} : memref<8x32xf32, #tpu.memory_space<vmem>>, vector<8x32xf32>,
    %165 = arith.index_cast %c4_i32 : i32 to index
    %c0_85 = arith.constant 0 : index
    %c0_86 = arith.constant 0 : index
    %166 = vector.load %arg16[%165, %c0_85, %c0_86] : memref<8x8x32xf32, #tpu.memory_space<vmem>>, vector<1x8x32xf32>
    %167 = vector.shape_cast %166 : vector<1x8x32xf32> to vector<8x32xf32>
    %168 = vector.shape_cast %162 : vector<8x32xf32> to vector<1x8x32xf32>
    tpu.vector_store %arg16[%165, %c0_85, %c0_86], %168 {strides = array<i32>} : memref<8x8x32xf32, #tpu.memory_space<vmem>>, vector<1x8x32xf32>,
    %c5_i32 = arith.constant 5 : i32
    %169 = arith.index_cast %c5_i32 : i32 to index
    %c0_87 = arith.constant 0 : index
    %c0_88 = arith.constant 0 : index
    %170 = vector.load %arg15[%169, %c0_87, %c0_88] : memref<8x8x128xf32, #tpu.memory_space<vmem>>, vector<1x8x128xf32>
    %171 = vector.shape_cast %170 : vector<1x8x128xf32> to vector<8x128xf32>
    %c0_89 = arith.constant 0 : index
    %c0_90 = arith.constant 0 : index
    %172 = vector.load %arg11[%c0_89, %c0_90] : memref<8x32xf32, #tpu.memory_space<vmem>>, vector<8x32xf32>
    %173 = arith.truncf %172 : vector<8x32xf32> to vector<8x32xbf16>
    %cst_91 = arith.constant dense<0.000000e+00> : vector<8x128xf32>
    %174 = tpu.matmul %173, %3, %cst_91 {dimension_numbers = #tpu.dot_dimension_numbers<[1], [0], [0], [1], [0, 0, 1, 1], [], []>} : vector<8x32xbf16>, vector<32x128xbf16>, vector<8x128xf32> -> vector<8x128xf32>
    %175 = arith.addf %171, %174 : vector<8x128xf32>
    %c0_92 = arith.constant 0 : index
    %c0_93 = arith.constant 0 : index
    %176 = vector.load %arg12[%c0_92, %c0_93] : memref<8x32xf32, #tpu.memory_space<vmem>>, vector<8x32xf32>
    %177 = vector.extract_strided_slice %175 {offsets = [0, 0], sizes = [8, 96], strides = [1, 1]} : vector<8x128xf32> to vector<8x96xf32>
    %178 = arith.negf %177 : vector<8x96xf32>
    %179 = math.exp %178 : vector<8x96xf32>
    %cst_94 = arith.constant 1.000000e+00 : f32
    %180 = vector.broadcast %cst_94 : f32 to vector<8x96xf32>
    %181 = arith.addf %180, %179 : vector<8x96xf32>
    %182 = arith.divf %180, %181 : vector<8x96xf32>
    %183 = vector.extract_strided_slice %175 {offsets = [0, 96], sizes = [8, 32], strides = [1, 1]} : vector<8x128xf32> to vector<8x32xf32>
    %184 = math.tanh %183 : vector<8x32xf32>
    %185 = vector.extract_strided_slice %182 {offsets = [0, 0], sizes = [8, 32], strides = [1, 1]} : vector<8x96xf32> to vector<8x32xf32>
    %186 = vector.extract_strided_slice %182 {offsets = [0, 32], sizes = [8, 32], strides = [1, 1]} : vector<8x96xf32> to vector<8x32xf32>
    %187 = vector.extract_strided_slice %182 {offsets = [0, 64], sizes = [8, 32], strides = [1, 1]} : vector<8x96xf32> to vector<8x32xf32>
    %188 = arith.mulf %186, %176 : vector<8x32xf32>
    %189 = arith.mulf %185, %184 : vector<8x32xf32>
    %190 = arith.addf %188, %189 : vector<8x32xf32>
    %191 = math.tanh %190 : vector<8x32xf32>
    %192 = arith.mulf %187, %191 : vector<8x32xf32>
    %c0_95 = arith.constant 0 : index
    %c0_96 = arith.constant 0 : index
    %193 = vector.load %arg11[%c0_95, %c0_96] : memref<8x32xf32, #tpu.memory_space<vmem>>, vector<8x32xf32>
    tpu.vector_store %arg11[%c0_95, %c0_96], %192 {strides = array<i32>} : memref<8x32xf32, #tpu.memory_space<vmem>>, vector<8x32xf32>,
    %c0_97 = arith.constant 0 : index
    %c0_98 = arith.constant 0 : index
    %194 = vector.load %arg12[%c0_97, %c0_98] : memref<8x32xf32, #tpu.memory_space<vmem>>, vector<8x32xf32>
    tpu.vector_store %arg12[%c0_97, %c0_98], %190 {strides = array<i32>} : memref<8x32xf32, #tpu.memory_space<vmem>>, vector<8x32xf32>,
    %195 = arith.index_cast %c5_i32 : i32 to index
    %c0_99 = arith.constant 0 : index
    %c0_100 = arith.constant 0 : index
    %196 = vector.load %arg16[%195, %c0_99, %c0_100] : memref<8x8x32xf32, #tpu.memory_space<vmem>>, vector<1x8x32xf32>
    %197 = vector.shape_cast %196 : vector<1x8x32xf32> to vector<8x32xf32>
    %198 = vector.shape_cast %192 : vector<8x32xf32> to vector<1x8x32xf32>
    tpu.vector_store %arg16[%195, %c0_99, %c0_100], %198 {strides = array<i32>} : memref<8x8x32xf32, #tpu.memory_space<vmem>>, vector<1x8x32xf32>,
    %c6_i32 = arith.constant 6 : i32
    %199 = arith.index_cast %c6_i32 : i32 to index
    %c0_101 = arith.constant 0 : index
    %c0_102 = arith.constant 0 : index
    %200 = vector.load %arg15[%199, %c0_101, %c0_102] : memref<8x8x128xf32, #tpu.memory_space<vmem>>, vector<1x8x128xf32>
    %201 = vector.shape_cast %200 : vector<1x8x128xf32> to vector<8x128xf32>
    %c0_103 = arith.constant 0 : index
    %c0_104 = arith.constant 0 : index
    %202 = vector.load %arg11[%c0_103, %c0_104] : memref<8x32xf32, #tpu.memory_space<vmem>>, vector<8x32xf32>
    %203 = arith.truncf %202 : vector<8x32xf32> to vector<8x32xbf16>
    %cst_105 = arith.constant dense<0.000000e+00> : vector<8x128xf32>
    %204 = tpu.matmul %203, %3, %cst_105 {dimension_numbers = #tpu.dot_dimension_numbers<[1], [0], [0], [1], [0, 0, 1, 1], [], []>} : vector<8x32xbf16>, vector<32x128xbf16>, vector<8x128xf32> -> vector<8x128xf32>
    %205 = arith.addf %201, %204 : vector<8x128xf32>
    %c0_106 = arith.constant 0 : index
    %c0_107 = arith.constant 0 : index
    %206 = vector.load %arg12[%c0_106, %c0_107] : memref<8x32xf32, #tpu.memory_space<vmem>>, vector<8x32xf32>
    %207 = vector.extract_strided_slice %205 {offsets = [0, 0], sizes = [8, 96], strides = [1, 1]} : vector<8x128xf32> to vector<8x96xf32>
    %208 = arith.negf %207 : vector<8x96xf32>
    %209 = math.exp %208 : vector<8x96xf32>
    %cst_108 = arith.constant 1.000000e+00 : f32
    %210 = vector.broadcast %cst_108 : f32 to vector<8x96xf32>
    %211 = arith.addf %210, %209 : vector<8x96xf32>
    %212 = arith.divf %210, %211 : vector<8x96xf32>
    %213 = vector.extract_strided_slice %205 {offsets = [0, 96], sizes = [8, 32], strides = [1, 1]} : vector<8x128xf32> to vector<8x32xf32>
    %214 = math.tanh %213 : vector<8x32xf32>
    %215 = vector.extract_strided_slice %212 {offsets = [0, 0], sizes = [8, 32], strides = [1, 1]} : vector<8x96xf32> to vector<8x32xf32>
    %216 = vector.extract_strided_slice %212 {offsets = [0, 32], sizes = [8, 32], strides = [1, 1]} : vector<8x96xf32> to vector<8x32xf32>
    %217 = vector.extract_strided_slice %212 {offsets = [0, 64], sizes = [8, 32], strides = [1, 1]} : vector<8x96xf32> to vector<8x32xf32>
    %218 = arith.mulf %216, %206 : vector<8x32xf32>
    %219 = arith.mulf %215, %214 : vector<8x32xf32>
    %220 = arith.addf %218, %219 : vector<8x32xf32>
    %221 = math.tanh %220 : vector<8x32xf32>
    %222 = arith.mulf %217, %221 : vector<8x32xf32>
    %c0_109 = arith.constant 0 : index
    %c0_110 = arith.constant 0 : index
    %223 = vector.load %arg11[%c0_109, %c0_110] : memref<8x32xf32, #tpu.memory_space<vmem>>, vector<8x32xf32>
    tpu.vector_store %arg11[%c0_109, %c0_110], %222 {strides = array<i32>} : memref<8x32xf32, #tpu.memory_space<vmem>>, vector<8x32xf32>,
    %c0_111 = arith.constant 0 : index
    %c0_112 = arith.constant 0 : index
    %224 = vector.load %arg12[%c0_111, %c0_112] : memref<8x32xf32, #tpu.memory_space<vmem>>, vector<8x32xf32>
    tpu.vector_store %arg12[%c0_111, %c0_112], %220 {strides = array<i32>} : memref<8x32xf32, #tpu.memory_space<vmem>>, vector<8x32xf32>,
    %225 = arith.index_cast %c6_i32 : i32 to index
    %c0_113 = arith.constant 0 : index
    %c0_114 = arith.constant 0 : index
    %226 = vector.load %arg16[%225, %c0_113, %c0_114] : memref<8x8x32xf32, #tpu.memory_space<vmem>>, vector<1x8x32xf32>
    %227 = vector.shape_cast %226 : vector<1x8x32xf32> to vector<8x32xf32>
    %228 = vector.shape_cast %222 : vector<8x32xf32> to vector<1x8x32xf32>
    tpu.vector_store %arg16[%225, %c0_113, %c0_114], %228 {strides = array<i32>} : memref<8x8x32xf32, #tpu.memory_space<vmem>>, vector<1x8x32xf32>,
    %c7_i32 = arith.constant 7 : i32
    %229 = arith.index_cast %c7_i32 : i32 to index
    %c0_115 = arith.constant 0 : index
    %c0_116 = arith.constant 0 : index
    %230 = vector.load %arg15[%229, %c0_115, %c0_116] : memref<8x8x128xf32, #tpu.memory_space<vmem>>, vector<1x8x128xf32>
    %231 = vector.shape_cast %230 : vector<1x8x128xf32> to vector<8x128xf32>
    %c0_117 = arith.constant 0 : index
    %c0_118 = arith.constant 0 : index
    %232 = vector.load %arg11[%c0_117, %c0_118] : memref<8x32xf32, #tpu.memory_space<vmem>>, vector<8x32xf32>
    %233 = arith.truncf %232 : vector<8x32xf32> to vector<8x32xbf16>
    %cst_119 = arith.constant dense<0.000000e+00> : vector<8x128xf32>
    %234 = tpu.matmul %233, %3, %cst_119 {dimension_numbers = #tpu.dot_dimension_numbers<[1], [0], [0], [1], [0, 0, 1, 1], [], []>} : vector<8x32xbf16>, vector<32x128xbf16>, vector<8x128xf32> -> vector<8x128xf32>
    %235 = arith.addf %231, %234 : vector<8x128xf32>
    %c0_120 = arith.constant 0 : index
    %c0_121 = arith.constant 0 : index
    %236 = vector.load %arg12[%c0_120, %c0_121] : memref<8x32xf32, #tpu.memory_space<vmem>>, vector<8x32xf32>
    %237 = vector.extract_strided_slice %235 {offsets = [0, 0], sizes = [8, 96], strides = [1, 1]} : vector<8x128xf32> to vector<8x96xf32>
    %238 = arith.negf %237 : vector<8x96xf32>
    %239 = math.exp %238 : vector<8x96xf32>
    %cst_122 = arith.constant 1.000000e+00 : f32
    %240 = vector.broadcast %cst_122 : f32 to vector<8x96xf32>
    %241 = arith.addf %240, %239 : vector<8x96xf32>
    %242 = arith.divf %240, %241 : vector<8x96xf32>
    %243 = vector.extract_strided_slice %235 {offsets = [0, 96], sizes = [8, 32], strides = [1, 1]} : vector<8x128xf32> to vector<8x32xf32>
    %244 = math.tanh %243 : vector<8x32xf32>
    %245 = vector.extract_strided_slice %242 {offsets = [0, 0], sizes = [8, 32], strides = [1, 1]} : vector<8x96xf32> to vector<8x32xf32>
    %246 = vector.extract_strided_slice %242 {offsets = [0, 32], sizes = [8, 32], strides = [1, 1]} : vector<8x96xf32> to vector<8x32xf32>
    %247 = vector.extract_strided_slice %242 {offsets = [0, 64], sizes = [8, 32], strides = [1, 1]} : vector<8x96xf32> to vector<8x32xf32>
    %248 = arith.mulf %246, %236 : vector<8x32xf32>
    %249 = arith.mulf %245, %244 : vector<8x32xf32>
    %250 = arith.addf %248, %249 : vector<8x32xf32>
    %251 = math.tanh %250 : vector<8x32xf32>
    %252 = arith.mulf %247, %251 : vector<8x32xf32>
    %c0_123 = arith.constant 0 : index
    %c0_124 = arith.constant 0 : index
    %253 = vector.load %arg11[%c0_123, %c0_124] : memref<8x32xf32, #tpu.memory_space<vmem>>, vector<8x32xf32>
    tpu.vector_store %arg11[%c0_123, %c0_124], %252 {strides = array<i32>} : memref<8x32xf32, #tpu.memory_space<vmem>>, vector<8x32xf32>,
    %c0_125 = arith.constant 0 : index
    %c0_126 = arith.constant 0 : index
    %254 = vector.load %arg12[%c0_125, %c0_126] : memref<8x32xf32, #tpu.memory_space<vmem>>, vector<8x32xf32>
    tpu.vector_store %arg12[%c0_125, %c0_126], %250 {strides = array<i32>} : memref<8x32xf32, #tpu.memory_space<vmem>>, vector<8x32xf32>,
    %255 = arith.index_cast %c7_i32 : i32 to index
    %c0_127 = arith.constant 0 : index
    %c0_128 = arith.constant 0 : index
    %256 = vector.load %arg16[%255, %c0_127, %c0_128] : memref<8x8x32xf32, #tpu.memory_space<vmem>>, vector<1x8x32xf32>
    %257 = vector.shape_cast %256 : vector<1x8x32xf32> to vector<8x32xf32>
    %258 = vector.shape_cast %252 : vector<8x32xf32> to vector<1x8x32xf32>
    tpu.vector_store %arg16[%255, %c0_127, %c0_128], %258 {strides = array<i32>} : memref<8x8x32xf32, #tpu.memory_space<vmem>>, vector<1x8x32xf32>,
    %c8_i32 = arith.constant 8 : i32
    %c0_129 = arith.constant 0 : index
    %c0_130 = arith.constant 0 : index
    %c0_131 = arith.constant 0 : index
    %259 = vector.load %arg16[%c0_129, %c0_130, %c0_131] : memref<8x8x32xf32, #tpu.memory_space<vmem>>, vector<8x8x32xf32>
    %260 = vector.shape_cast %259 : vector<8x8x32xf32> to vector<64x32xf32>
    %261 = arith.truncf %260 : vector<64x32xf32> to vector<64x32xbf16>
    %c0_132 = arith.constant 0 : index
    %c0_133 = arith.constant 0 : index
    %262 = vector.load %arg5[%c0_132, %c0_133] : memref<32x128xbf16, #tpu.memory_space<vmem>>, vector<32x128xbf16>
    %cst_134 = arith.constant dense<0.000000e+00> : vector<64x128xf32>
    %263 = tpu.matmul %261, %262, %cst_134 {dimension_numbers = #tpu.dot_dimension_numbers<[1], [0], [0], [1], [0, 0, 1, 1], [], []>} : vector<64x32xbf16>, vector<32x128xbf16>, vector<64x128xf32> -> vector<64x128xf32>
    %264 = arith.addf %263, %10 : vector<64x128xf32>
    %265 = vector.shape_cast %264 : vector<64x128xf32> to vector<8x8x128xf32>
    %c0_135 = arith.constant 0 : index
    %c0_136 = arith.constant 0 : index
    %c0_137 = arith.constant 0 : index
    %266 = vector.load %arg15[%c0_135, %c0_136, %c0_137] : memref<8x8x128xf32, #tpu.memory_space<vmem>>, vector<8x8x128xf32>
    tpu.vector_store %arg15[%c0_135, %c0_136, %c0_137], %265 {strides = array<i32>} : memref<8x8x128xf32, #tpu.memory_space<vmem>>, vector<8x8x128xf32>,
    %c0_i32_138 = arith.constant 0 : i32
    %267 = arith.index_cast %c0_i32_138 : i32 to index
    %c0_139 = arith.constant 0 : index
    %c0_140 = arith.constant 0 : index
    %268 = vector.load %arg15[%267, %c0_139, %c0_140] : memref<8x8x128xf32, #tpu.memory_space<vmem>>, vector<1x8x128xf32>
    %269 = vector.shape_cast %268 : vector<1x8x128xf32> to vector<8x128xf32>
    %c0_141 = arith.constant 0 : index
    %c0_142 = arith.constant 0 : index
    %270 = vector.load %arg13[%c0_141, %c0_142] : memref<8x32xf32, #tpu.memory_space<vmem>>, vector<8x32xf32>
    %271 = arith.truncf %270 : vector<8x32xf32> to vector<8x32xbf16>
    %cst_143 = arith.constant dense<0.000000e+00> : vector<8x128xf32>
    %272 = tpu.matmul %271, %4, %cst_143 {dimension_numbers = #tpu.dot_dimension_numbers<[1], [0], [0], [1], [0, 0, 1, 1], [], []>} : vector<8x32xbf16>, vector<32x128xbf16>, vector<8x128xf32> -> vector<8x128xf32>
    %273 = arith.addf %269, %272 : vector<8x128xf32>
    %c0_144 = arith.constant 0 : index
    %c0_145 = arith.constant 0 : index
    %274 = vector.load %arg14[%c0_144, %c0_145] : memref<8x32xf32, #tpu.memory_space<vmem>>, vector<8x32xf32>
    %275 = vector.extract_strided_slice %273 {offsets = [0, 0], sizes = [8, 96], strides = [1, 1]} : vector<8x128xf32> to vector<8x96xf32>
    %276 = arith.negf %275 : vector<8x96xf32>
    %277 = math.exp %276 : vector<8x96xf32>
    %cst_146 = arith.constant 1.000000e+00 : f32
    %278 = vector.broadcast %cst_146 : f32 to vector<8x96xf32>
    %279 = arith.addf %278, %277 : vector<8x96xf32>
    %280 = arith.divf %278, %279 : vector<8x96xf32>
    %281 = vector.extract_strided_slice %273 {offsets = [0, 96], sizes = [8, 32], strides = [1, 1]} : vector<8x128xf32> to vector<8x32xf32>
    %282 = math.tanh %281 : vector<8x32xf32>
    %283 = vector.extract_strided_slice %280 {offsets = [0, 0], sizes = [8, 32], strides = [1, 1]} : vector<8x96xf32> to vector<8x32xf32>
    %284 = vector.extract_strided_slice %280 {offsets = [0, 32], sizes = [8, 32], strides = [1, 1]} : vector<8x96xf32> to vector<8x32xf32>
    %285 = vector.extract_strided_slice %280 {offsets = [0, 64], sizes = [8, 32], strides = [1, 1]} : vector<8x96xf32> to vector<8x32xf32>
    %286 = arith.mulf %284, %274 : vector<8x32xf32>
    %287 = arith.mulf %283, %282 : vector<8x32xf32>
    %288 = arith.addf %286, %287 : vector<8x32xf32>
    %289 = math.tanh %288 : vector<8x32xf32>
    %290 = arith.mulf %285, %289 : vector<8x32xf32>
    %c0_147 = arith.constant 0 : index
    %c0_148 = arith.constant 0 : index
    %291 = vector.load %arg13[%c0_147, %c0_148] : memref<8x32xf32, #tpu.memory_space<vmem>>, vector<8x32xf32>
    tpu.vector_store %arg13[%c0_147, %c0_148], %290 {strides = array<i32>} : memref<8x32xf32, #tpu.memory_space<vmem>>, vector<8x32xf32>,
    %c0_149 = arith.constant 0 : index
    %c0_150 = arith.constant 0 : index
    %292 = vector.load %arg14[%c0_149, %c0_150] : memref<8x32xf32, #tpu.memory_space<vmem>>, vector<8x32xf32>
    tpu.vector_store %arg14[%c0_149, %c0_150], %288 {strides = array<i32>} : memref<8x32xf32, #tpu.memory_space<vmem>>, vector<8x32xf32>,
    %293 = arith.index_cast %c0_i32_138 : i32 to index
    %c0_151 = arith.constant 0 : index
    %c0_152 = arith.constant 0 : index
    %294 = vector.load %arg16[%293, %c0_151, %c0_152] : memref<8x8x32xf32, #tpu.memory_space<vmem>>, vector<1x8x32xf32>
    %295 = vector.shape_cast %294 : vector<1x8x32xf32> to vector<8x32xf32>
    %296 = vector.shape_cast %290 : vector<8x32xf32> to vector<1x8x32xf32>
    tpu.vector_store %arg16[%293, %c0_151, %c0_152], %296 {strides = array<i32>} : memref<8x8x32xf32, #tpu.memory_space<vmem>>, vector<1x8x32xf32>,
    %c1_i32_153 = arith.constant 1 : i32
    %297 = arith.index_cast %c1_i32_153 : i32 to index
    %c0_154 = arith.constant 0 : index
    %c0_155 = arith.constant 0 : index
    %298 = vector.load %arg15[%297, %c0_154, %c0_155] : memref<8x8x128xf32, #tpu.memory_space<vmem>>, vector<1x8x128xf32>
    %299 = vector.shape_cast %298 : vector<1x8x128xf32> to vector<8x128xf32>
    %c0_156 = arith.constant 0 : index
    %c0_157 = arith.constant 0 : index
    %300 = vector.load %arg13[%c0_156, %c0_157] : memref<8x32xf32, #tpu.memory_space<vmem>>, vector<8x32xf32>
    %301 = arith.truncf %300 : vector<8x32xf32> to vector<8x32xbf16>
    %cst_158 = arith.constant dense<0.000000e+00> : vector<8x128xf32>
    %302 = tpu.matmul %301, %4, %cst_158 {dimension_numbers = #tpu.dot_dimension_numbers<[1], [0], [0], [1], [0, 0, 1, 1], [], []>} : vector<8x32xbf16>, vector<32x128xbf16>, vector<8x128xf32> -> vector<8x128xf32>
    %303 = arith.addf %299, %302 : vector<8x128xf32>
    %c0_159 = arith.constant 0 : index
    %c0_160 = arith.constant 0 : index
    %304 = vector.load %arg14[%c0_159, %c0_160] : memref<8x32xf32, #tpu.memory_space<vmem>>, vector<8x32xf32>
    %305 = vector.extract_strided_slice %303 {offsets = [0, 0], sizes = [8, 96], strides = [1, 1]} : vector<8x128xf32> to vector<8x96xf32>
    %306 = arith.negf %305 : vector<8x96xf32>
    %307 = math.exp %306 : vector<8x96xf32>
    %cst_161 = arith.constant 1.000000e+00 : f32
    %308 = vector.broadcast %cst_161 : f32 to vector<8x96xf32>
    %309 = arith.addf %308, %307 : vector<8x96xf32>
    %310 = arith.divf %308, %309 : vector<8x96xf32>
    %311 = vector.extract_strided_slice %303 {offsets = [0, 96], sizes = [8, 32], strides = [1, 1]} : vector<8x128xf32> to vector<8x32xf32>
    %312 = math.tanh %311 : vector<8x32xf32>
    %313 = vector.extract_strided_slice %310 {offsets = [0, 0], sizes = [8, 32], strides = [1, 1]} : vector<8x96xf32> to vector<8x32xf32>
    %314 = vector.extract_strided_slice %310 {offsets = [0, 32], sizes = [8, 32], strides = [1, 1]} : vector<8x96xf32> to vector<8x32xf32>
    %315 = vector.extract_strided_slice %310 {offsets = [0, 64], sizes = [8, 32], strides = [1, 1]} : vector<8x96xf32> to vector<8x32xf32>
    %316 = arith.mulf %314, %304 : vector<8x32xf32>
    %317 = arith.mulf %313, %312 : vector<8x32xf32>
    %318 = arith.addf %316, %317 : vector<8x32xf32>
    %319 = math.tanh %318 : vector<8x32xf32>
    %320 = arith.mulf %315, %319 : vector<8x32xf32>
    %c0_162 = arith.constant 0 : index
    %c0_163 = arith.constant 0 : index
    %321 = vector.load %arg13[%c0_162, %c0_163] : memref<8x32xf32, #tpu.memory_space<vmem>>, vector<8x32xf32>
    tpu.vector_store %arg13[%c0_162, %c0_163], %320 {strides = array<i32>} : memref<8x32xf32, #tpu.memory_space<vmem>>, vector<8x32xf32>,
    %c0_164 = arith.constant 0 : index
    %c0_165 = arith.constant 0 : index
    %322 = vector.load %arg14[%c0_164, %c0_165] : memref<8x32xf32, #tpu.memory_space<vmem>>, vector<8x32xf32>
    tpu.vector_store %arg14[%c0_164, %c0_165], %318 {strides = array<i32>} : memref<8x32xf32, #tpu.memory_space<vmem>>, vector<8x32xf32>,
    %323 = arith.index_cast %c1_i32_153 : i32 to index
    %c0_166 = arith.constant 0 : index
    %c0_167 = arith.constant 0 : index
    %324 = vector.load %arg16[%323, %c0_166, %c0_167] : memref<8x8x32xf32, #tpu.memory_space<vmem>>, vector<1x8x32xf32>
    %325 = vector.shape_cast %324 : vector<1x8x32xf32> to vector<8x32xf32>
    %326 = vector.shape_cast %320 : vector<8x32xf32> to vector<1x8x32xf32>
    tpu.vector_store %arg16[%323, %c0_166, %c0_167], %326 {strides = array<i32>} : memref<8x8x32xf32, #tpu.memory_space<vmem>>, vector<1x8x32xf32>,
    %c2_i32_168 = arith.constant 2 : i32
    %327 = arith.index_cast %c2_i32_168 : i32 to index
    %c0_169 = arith.constant 0 : index
    %c0_170 = arith.constant 0 : index
    %328 = vector.load %arg15[%327, %c0_169, %c0_170] : memref<8x8x128xf32, #tpu.memory_space<vmem>>, vector<1x8x128xf32>
    %329 = vector.shape_cast %328 : vector<1x8x128xf32> to vector<8x128xf32>
    %c0_171 = arith.constant 0 : index
    %c0_172 = arith.constant 0 : index
    %330 = vector.load %arg13[%c0_171, %c0_172] : memref<8x32xf32, #tpu.memory_space<vmem>>, vector<8x32xf32>
    %331 = arith.truncf %330 : vector<8x32xf32> to vector<8x32xbf16>
    %cst_173 = arith.constant dense<0.000000e+00> : vector<8x128xf32>
    %332 = tpu.matmul %331, %4, %cst_173 {dimension_numbers = #tpu.dot_dimension_numbers<[1], [0], [0], [1], [0, 0, 1, 1], [], []>} : vector<8x32xbf16>, vector<32x128xbf16>, vector<8x128xf32> -> vector<8x128xf32>
    %333 = arith.addf %329, %332 : vector<8x128xf32>
    %c0_174 = arith.constant 0 : index
    %c0_175 = arith.constant 0 : index
    %334 = vector.load %arg14[%c0_174, %c0_175] : memref<8x32xf32, #tpu.memory_space<vmem>>, vector<8x32xf32>
    %335 = vector.extract_strided_slice %333 {offsets = [0, 0], sizes = [8, 96], strides = [1, 1]} : vector<8x128xf32> to vector<8x96xf32>
    %336 = arith.negf %335 : vector<8x96xf32>
    %337 = math.exp %336 : vector<8x96xf32>
    %cst_176 = arith.constant 1.000000e+00 : f32
    %338 = vector.broadcast %cst_176 : f32 to vector<8x96xf32>
    %339 = arith.addf %338, %337 : vector<8x96xf32>
    %340 = arith.divf %338, %339 : vector<8x96xf32>
    %341 = vector.extract_strided_slice %333 {offsets = [0, 96], sizes = [8, 32], strides = [1, 1]} : vector<8x128xf32> to vector<8x32xf32>
    %342 = math.tanh %341 : vector<8x32xf32>
    %343 = vector.extract_strided_slice %340 {offsets = [0, 0], sizes = [8, 32], strides = [1, 1]} : vector<8x96xf32> to vector<8x32xf32>
    %344 = vector.extract_strided_slice %340 {offsets = [0, 32], sizes = [8, 32], strides = [1, 1]} : vector<8x96xf32> to vector<8x32xf32>
    %345 = vector.extract_strided_slice %340 {offsets = [0, 64], sizes = [8, 32], strides = [1, 1]} : vector<8x96xf32> to vector<8x32xf32>
    %346 = arith.mulf %344, %334 : vector<8x32xf32>
    %347 = arith.mulf %343, %342 : vector<8x32xf32>
    %348 = arith.addf %346, %347 : vector<8x32xf32>
    %349 = math.tanh %348 : vector<8x32xf32>
    %350 = arith.mulf %345, %349 : vector<8x32xf32>
    %c0_177 = arith.constant 0 : index
    %c0_178 = arith.constant 0 : index
    %351 = vector.load %arg13[%c0_177, %c0_178] : memref<8x32xf32, #tpu.memory_space<vmem>>, vector<8x32xf32>
    tpu.vector_store %arg13[%c0_177, %c0_178], %350 {strides = array<i32>} : memref<8x32xf32, #tpu.memory_space<vmem>>, vector<8x32xf32>,
    %c0_179 = arith.constant 0 : index
    %c0_180 = arith.constant 0 : index
    %352 = vector.load %arg14[%c0_179, %c0_180] : memref<8x32xf32, #tpu.memory_space<vmem>>, vector<8x32xf32>
    tpu.vector_store %arg14[%c0_179, %c0_180], %348 {strides = array<i32>} : memref<8x32xf32, #tpu.memory_space<vmem>>, vector<8x32xf32>,
    %353 = arith.index_cast %c2_i32_168 : i32 to index
    %c0_181 = arith.constant 0 : index
    %c0_182 = arith.constant 0 : index
    %354 = vector.load %arg16[%353, %c0_181, %c0_182] : memref<8x8x32xf32, #tpu.memory_space<vmem>>, vector<1x8x32xf32>
    %355 = vector.shape_cast %354 : vector<1x8x32xf32> to vector<8x32xf32>
    %356 = vector.shape_cast %350 : vector<8x32xf32> to vector<1x8x32xf32>
    tpu.vector_store %arg16[%353, %c0_181, %c0_182], %356 {strides = array<i32>} : memref<8x8x32xf32, #tpu.memory_space<vmem>>, vector<1x8x32xf32>,
    %c3_i32_183 = arith.constant 3 : i32
    %357 = arith.index_cast %c3_i32_183 : i32 to index
    %c0_184 = arith.constant 0 : index
    %c0_185 = arith.constant 0 : index
    %358 = vector.load %arg15[%357, %c0_184, %c0_185] : memref<8x8x128xf32, #tpu.memory_space<vmem>>, vector<1x8x128xf32>
    %359 = vector.shape_cast %358 : vector<1x8x128xf32> to vector<8x128xf32>
    %c0_186 = arith.constant 0 : index
    %c0_187 = arith.constant 0 : index
    %360 = vector.load %arg13[%c0_186, %c0_187] : memref<8x32xf32, #tpu.memory_space<vmem>>, vector<8x32xf32>
    %361 = arith.truncf %360 : vector<8x32xf32> to vector<8x32xbf16>
    %cst_188 = arith.constant dense<0.000000e+00> : vector<8x128xf32>
    %362 = tpu.matmul %361, %4, %cst_188 {dimension_numbers = #tpu.dot_dimension_numbers<[1], [0], [0], [1], [0, 0, 1, 1], [], []>} : vector<8x32xbf16>, vector<32x128xbf16>, vector<8x128xf32> -> vector<8x128xf32>
    %363 = arith.addf %359, %362 : vector<8x128xf32>
    %c0_189 = arith.constant 0 : index
    %c0_190 = arith.constant 0 : index
    %364 = vector.load %arg14[%c0_189, %c0_190] : memref<8x32xf32, #tpu.memory_space<vmem>>, vector<8x32xf32>
    %365 = vector.extract_strided_slice %363 {offsets = [0, 0], sizes = [8, 96], strides = [1, 1]} : vector<8x128xf32> to vector<8x96xf32>
    %366 = arith.negf %365 : vector<8x96xf32>
    %367 = math.exp %366 : vector<8x96xf32>
    %cst_191 = arith.constant 1.000000e+00 : f32
    %368 = vector.broadcast %cst_191 : f32 to vector<8x96xf32>
    %369 = arith.addf %368, %367 : vector<8x96xf32>
    %370 = arith.divf %368, %369 : vector<8x96xf32>
    %371 = vector.extract_strided_slice %363 {offsets = [0, 96], sizes = [8, 32], strides = [1, 1]} : vector<8x128xf32> to vector<8x32xf32>
    %372 = math.tanh %371 : vector<8x32xf32>
    %373 = vector.extract_strided_slice %370 {offsets = [0, 0], sizes = [8, 32], strides = [1, 1]} : vector<8x96xf32> to vector<8x32xf32>
    %374 = vector.extract_strided_slice %370 {offsets = [0, 32], sizes = [8, 32], strides = [1, 1]} : vector<8x96xf32> to vector<8x32xf32>
    %375 = vector.extract_strided_slice %370 {offsets = [0, 64], sizes = [8, 32], strides = [1, 1]} : vector<8x96xf32> to vector<8x32xf32>
    %376 = arith.mulf %374, %364 : vector<8x32xf32>
    %377 = arith.mulf %373, %372 : vector<8x32xf32>
    %378 = arith.addf %376, %377 : vector<8x32xf32>
    %379 = math.tanh %378 : vector<8x32xf32>
    %380 = arith.mulf %375, %379 : vector<8x32xf32>
    %c0_192 = arith.constant 0 : index
    %c0_193 = arith.constant 0 : index
    %381 = vector.load %arg13[%c0_192, %c0_193] : memref<8x32xf32, #tpu.memory_space<vmem>>, vector<8x32xf32>
    tpu.vector_store %arg13[%c0_192, %c0_193], %380 {strides = array<i32>} : memref<8x32xf32, #tpu.memory_space<vmem>>, vector<8x32xf32>,
    %c0_194 = arith.constant 0 : index
    %c0_195 = arith.constant 0 : index
    %382 = vector.load %arg14[%c0_194, %c0_195] : memref<8x32xf32, #tpu.memory_space<vmem>>, vector<8x32xf32>
    tpu.vector_store %arg14[%c0_194, %c0_195], %378 {strides = array<i32>} : memref<8x32xf32, #tpu.memory_space<vmem>>, vector<8x32xf32>,
    %383 = arith.index_cast %c3_i32_183 : i32 to index
    %c0_196 = arith.constant 0 : index
    %c0_197 = arith.constant 0 : index
    %384 = vector.load %arg16[%383, %c0_196, %c0_197] : memref<8x8x32xf32, #tpu.memory_space<vmem>>, vector<1x8x32xf32>
    %385 = vector.shape_cast %384 : vector<1x8x32xf32> to vector<8x32xf32>
    %386 = vector.shape_cast %380 : vector<8x32xf32> to vector<1x8x32xf32>
    tpu.vector_store %arg16[%383, %c0_196, %c0_197], %386 {strides = array<i32>} : memref<8x8x32xf32, #tpu.memory_space<vmem>>, vector<1x8x32xf32>,
    %c4_i32_198 = arith.constant 4 : i32
    %387 = arith.index_cast %c4_i32_198 : i32 to index
    %c0_199 = arith.constant 0 : index
    %c0_200 = arith.constant 0 : index
    %388 = vector.load %arg15[%387, %c0_199, %c0_200] : memref<8x8x128xf32, #tpu.memory_space<vmem>>, vector<1x8x128xf32>
    %389 = vector.shape_cast %388 : vector<1x8x128xf32> to vector<8x128xf32>
    %c0_201 = arith.constant 0 : index
    %c0_202 = arith.constant 0 : index
    %390 = vector.load %arg13[%c0_201, %c0_202] : memref<8x32xf32, #tpu.memory_space<vmem>>, vector<8x32xf32>
    %391 = arith.truncf %390 : vector<8x32xf32> to vector<8x32xbf16>
    %cst_203 = arith.constant dense<0.000000e+00> : vector<8x128xf32>
    %392 = tpu.matmul %391, %4, %cst_203 {dimension_numbers = #tpu.dot_dimension_numbers<[1], [0], [0], [1], [0, 0, 1, 1], [], []>} : vector<8x32xbf16>, vector<32x128xbf16>, vector<8x128xf32> -> vector<8x128xf32>
    %393 = arith.addf %389, %392 : vector<8x128xf32>
    %c0_204 = arith.constant 0 : index
    %c0_205 = arith.constant 0 : index
    %394 = vector.load %arg14[%c0_204, %c0_205] : memref<8x32xf32, #tpu.memory_space<vmem>>, vector<8x32xf32>
    %395 = vector.extract_strided_slice %393 {offsets = [0, 0], sizes = [8, 96], strides = [1, 1]} : vector<8x128xf32> to vector<8x96xf32>
    %396 = arith.negf %395 : vector<8x96xf32>
    %397 = math.exp %396 : vector<8x96xf32>
    %cst_206 = arith.constant 1.000000e+00 : f32
    %398 = vector.broadcast %cst_206 : f32 to vector<8x96xf32>
    %399 = arith.addf %398, %397 : vector<8x96xf32>
    %400 = arith.divf %398, %399 : vector<8x96xf32>
    %401 = vector.extract_strided_slice %393 {offsets = [0, 96], sizes = [8, 32], strides = [1, 1]} : vector<8x128xf32> to vector<8x32xf32>
    %402 = math.tanh %401 : vector<8x32xf32>
    %403 = vector.extract_strided_slice %400 {offsets = [0, 0], sizes = [8, 32], strides = [1, 1]} : vector<8x96xf32> to vector<8x32xf32>
    %404 = vector.extract_strided_slice %400 {offsets = [0, 32], sizes = [8, 32], strides = [1, 1]} : vector<8x96xf32> to vector<8x32xf32>
    %405 = vector.extract_strided_slice %400 {offsets = [0, 64], sizes = [8, 32], strides = [1, 1]} : vector<8x96xf32> to vector<8x32xf32>
    %406 = arith.mulf %404, %394 : vector<8x32xf32>
    %407 = arith.mulf %403, %402 : vector<8x32xf32>
    %408 = arith.addf %406, %407 : vector<8x32xf32>
    %409 = math.tanh %408 : vector<8x32xf32>
    %410 = arith.mulf %405, %409 : vector<8x32xf32>
    %c0_207 = arith.constant 0 : index
    %c0_208 = arith.constant 0 : index
    %411 = vector.load %arg13[%c0_207, %c0_208] : memref<8x32xf32, #tpu.memory_space<vmem>>, vector<8x32xf32>
    tpu.vector_store %arg13[%c0_207, %c0_208], %410 {strides = array<i32>} : memref<8x32xf32, #tpu.memory_space<vmem>>, vector<8x32xf32>,
    %c0_209 = arith.constant 0 : index
    %c0_210 = arith.constant 0 : index
    %412 = vector.load %arg14[%c0_209, %c0_210] : memref<8x32xf32, #tpu.memory_space<vmem>>, vector<8x32xf32>
    tpu.vector_store %arg14[%c0_209, %c0_210], %408 {strides = array<i32>} : memref<8x32xf32, #tpu.memory_space<vmem>>, vector<8x32xf32>,
    %413 = arith.index_cast %c4_i32_198 : i32 to index
    %c0_211 = arith.constant 0 : index
    %c0_212 = arith.constant 0 : index
    %414 = vector.load %arg16[%413, %c0_211, %c0_212] : memref<8x8x32xf32, #tpu.memory_space<vmem>>, vector<1x8x32xf32>
    %415 = vector.shape_cast %414 : vector<1x8x32xf32> to vector<8x32xf32>
    %416 = vector.shape_cast %410 : vector<8x32xf32> to vector<1x8x32xf32>
    tpu.vector_store %arg16[%413, %c0_211, %c0_212], %416 {strides = array<i32>} : memref<8x8x32xf32, #tpu.memory_space<vmem>>, vector<1x8x32xf32>,
    %c5_i32_213 = arith.constant 5 : i32
    %417 = arith.index_cast %c5_i32_213 : i32 to index
    %c0_214 = arith.constant 0 : index
    %c0_215 = arith.constant 0 : index
    %418 = vector.load %arg15[%417, %c0_214, %c0_215] : memref<8x8x128xf32, #tpu.memory_space<vmem>>, vector<1x8x128xf32>
    %419 = vector.shape_cast %418 : vector<1x8x128xf32> to vector<8x128xf32>
    %c0_216 = arith.constant 0 : index
    %c0_217 = arith.constant 0 : index
    %420 = vector.load %arg13[%c0_216, %c0_217] : memref<8x32xf32, #tpu.memory_space<vmem>>, vector<8x32xf32>
    %421 = arith.truncf %420 : vector<8x32xf32> to vector<8x32xbf16>
    %cst_218 = arith.constant dense<0.000000e+00> : vector<8x128xf32>
    %422 = tpu.matmul %421, %4, %cst_218 {dimension_numbers = #tpu.dot_dimension_numbers<[1], [0], [0], [1], [0, 0, 1, 1], [], []>} : vector<8x32xbf16>, vector<32x128xbf16>, vector<8x128xf32> -> vector<8x128xf32>
    %423 = arith.addf %419, %422 : vector<8x128xf32>
    %c0_219 = arith.constant 0 : index
    %c0_220 = arith.constant 0 : index
    %424 = vector.load %arg14[%c0_219, %c0_220] : memref<8x32xf32, #tpu.memory_space<vmem>>, vector<8x32xf32>
    %425 = vector.extract_strided_slice %423 {offsets = [0, 0], sizes = [8, 96], strides = [1, 1]} : vector<8x128xf32> to vector<8x96xf32>
    %426 = arith.negf %425 : vector<8x96xf32>
    %427 = math.exp %426 : vector<8x96xf32>
    %cst_221 = arith.constant 1.000000e+00 : f32
    %428 = vector.broadcast %cst_221 : f32 to vector<8x96xf32>
    %429 = arith.addf %428, %427 : vector<8x96xf32>
    %430 = arith.divf %428, %429 : vector<8x96xf32>
    %431 = vector.extract_strided_slice %423 {offsets = [0, 96], sizes = [8, 32], strides = [1, 1]} : vector<8x128xf32> to vector<8x32xf32>
    %432 = math.tanh %431 : vector<8x32xf32>
    %433 = vector.extract_strided_slice %430 {offsets = [0, 0], sizes = [8, 32], strides = [1, 1]} : vector<8x96xf32> to vector<8x32xf32>
    %434 = vector.extract_strided_slice %430 {offsets = [0, 32], sizes = [8, 32], strides = [1, 1]} : vector<8x96xf32> to vector<8x32xf32>
    %435 = vector.extract_strided_slice %430 {offsets = [0, 64], sizes = [8, 32], strides = [1, 1]} : vector<8x96xf32> to vector<8x32xf32>
    %436 = arith.mulf %434, %424 : vector<8x32xf32>
    %437 = arith.mulf %433, %432 : vector<8x32xf32>
    %438 = arith.addf %436, %437 : vector<8x32xf32>
    %439 = math.tanh %438 : vector<8x32xf32>
    %440 = arith.mulf %435, %439 : vector<8x32xf32>
    %c0_222 = arith.constant 0 : index
    %c0_223 = arith.constant 0 : index
    %441 = vector.load %arg13[%c0_222, %c0_223] : memref<8x32xf32, #tpu.memory_space<vmem>>, vector<8x32xf32>
    tpu.vector_store %arg13[%c0_222, %c0_223], %440 {strides = array<i32>} : memref<8x32xf32, #tpu.memory_space<vmem>>, vector<8x32xf32>,
    %c0_224 = arith.constant 0 : index
    %c0_225 = arith.constant 0 : index
    %442 = vector.load %arg14[%c0_224, %c0_225] : memref<8x32xf32, #tpu.memory_space<vmem>>, vector<8x32xf32>
    tpu.vector_store %arg14[%c0_224, %c0_225], %438 {strides = array<i32>} : memref<8x32xf32, #tpu.memory_space<vmem>>, vector<8x32xf32>,
    %443 = arith.index_cast %c5_i32_213 : i32 to index
    %c0_226 = arith.constant 0 : index
    %c0_227 = arith.constant 0 : index
    %444 = vector.load %arg16[%443, %c0_226, %c0_227] : memref<8x8x32xf32, #tpu.memory_space<vmem>>, vector<1x8x32xf32>
    %445 = vector.shape_cast %444 : vector<1x8x32xf32> to vector<8x32xf32>
    %446 = vector.shape_cast %440 : vector<8x32xf32> to vector<1x8x32xf32>
    tpu.vector_store %arg16[%443, %c0_226, %c0_227], %446 {strides = array<i32>} : memref<8x8x32xf32, #tpu.memory_space<vmem>>, vector<1x8x32xf32>,
    %c6_i32_228 = arith.constant 6 : i32
    %447 = arith.index_cast %c6_i32_228 : i32 to index
    %c0_229 = arith.constant 0 : index
    %c0_230 = arith.constant 0 : index
    %448 = vector.load %arg15[%447, %c0_229, %c0_230] : memref<8x8x128xf32, #tpu.memory_space<vmem>>, vector<1x8x128xf32>
    %449 = vector.shape_cast %448 : vector<1x8x128xf32> to vector<8x128xf32>
    %c0_231 = arith.constant 0 : index
    %c0_232 = arith.constant 0 : index
    %450 = vector.load %arg13[%c0_231, %c0_232] : memref<8x32xf32, #tpu.memory_space<vmem>>, vector<8x32xf32>
    %451 = arith.truncf %450 : vector<8x32xf32> to vector<8x32xbf16>
    %cst_233 = arith.constant dense<0.000000e+00> : vector<8x128xf32>
    %452 = tpu.matmul %451, %4, %cst_233 {dimension_numbers = #tpu.dot_dimension_numbers<[1], [0], [0], [1], [0, 0, 1, 1], [], []>} : vector<8x32xbf16>, vector<32x128xbf16>, vector<8x128xf32> -> vector<8x128xf32>
    %453 = arith.addf %449, %452 : vector<8x128xf32>
    %c0_234 = arith.constant 0 : index
    %c0_235 = arith.constant 0 : index
    %454 = vector.load %arg14[%c0_234, %c0_235] : memref<8x32xf32, #tpu.memory_space<vmem>>, vector<8x32xf32>
    %455 = vector.extract_strided_slice %453 {offsets = [0, 0], sizes = [8, 96], strides = [1, 1]} : vector<8x128xf32> to vector<8x96xf32>
    %456 = arith.negf %455 : vector<8x96xf32>
    %457 = math.exp %456 : vector<8x96xf32>
    %cst_236 = arith.constant 1.000000e+00 : f32
    %458 = vector.broadcast %cst_236 : f32 to vector<8x96xf32>
    %459 = arith.addf %458, %457 : vector<8x96xf32>
    %460 = arith.divf %458, %459 : vector<8x96xf32>
    %461 = vector.extract_strided_slice %453 {offsets = [0, 96], sizes = [8, 32], strides = [1, 1]} : vector<8x128xf32> to vector<8x32xf32>
    %462 = math.tanh %461 : vector<8x32xf32>
    %463 = vector.extract_strided_slice %460 {offsets = [0, 0], sizes = [8, 32], strides = [1, 1]} : vector<8x96xf32> to vector<8x32xf32>
    %464 = vector.extract_strided_slice %460 {offsets = [0, 32], sizes = [8, 32], strides = [1, 1]} : vector<8x96xf32> to vector<8x32xf32>
    %465 = vector.extract_strided_slice %460 {offsets = [0, 64], sizes = [8, 32], strides = [1, 1]} : vector<8x96xf32> to vector<8x32xf32>
    %466 = arith.mulf %464, %454 : vector<8x32xf32>
    %467 = arith.mulf %463, %462 : vector<8x32xf32>
    %468 = arith.addf %466, %467 : vector<8x32xf32>
    %469 = math.tanh %468 : vector<8x32xf32>
    %470 = arith.mulf %465, %469 : vector<8x32xf32>
    %c0_237 = arith.constant 0 : index
    %c0_238 = arith.constant 0 : index
    %471 = vector.load %arg13[%c0_237, %c0_238] : memref<8x32xf32, #tpu.memory_space<vmem>>, vector<8x32xf32>
    tpu.vector_store %arg13[%c0_237, %c0_238], %470 {strides = array<i32>} : memref<8x32xf32, #tpu.memory_space<vmem>>, vector<8x32xf32>,
    %c0_239 = arith.constant 0 : index
    %c0_240 = arith.constant 0 : index
    %472 = vector.load %arg14[%c0_239, %c0_240] : memref<8x32xf32, #tpu.memory_space<vmem>>, vector<8x32xf32>
    tpu.vector_store %arg14[%c0_239, %c0_240], %468 {strides = array<i32>} : memref<8x32xf32, #tpu.memory_space<vmem>>, vector<8x32xf32>,
    %473 = arith.index_cast %c6_i32_228 : i32 to index
    %c0_241 = arith.constant 0 : index
    %c0_242 = arith.constant 0 : index
    %474 = vector.load %arg16[%473, %c0_241, %c0_242] : memref<8x8x32xf32, #tpu.memory_space<vmem>>, vector<1x8x32xf32>
    %475 = vector.shape_cast %474 : vector<1x8x32xf32> to vector<8x32xf32>
    %476 = vector.shape_cast %470 : vector<8x32xf32> to vector<1x8x32xf32>
    tpu.vector_store %arg16[%473, %c0_241, %c0_242], %476 {strides = array<i32>} : memref<8x8x32xf32, #tpu.memory_space<vmem>>, vector<1x8x32xf32>,
    %c7_i32_243 = arith.constant 7 : i32
    %477 = arith.index_cast %c7_i32_243 : i32 to index
    %c0_244 = arith.constant 0 : index
    %c0_245 = arith.constant 0 : index
    %478 = vector.load %arg15[%477, %c0_244, %c0_245] : memref<8x8x128xf32, #tpu.memory_space<vmem>>, vector<1x8x128xf32>
    %479 = vector.shape_cast %478 : vector<1x8x128xf32> to vector<8x128xf32>
    %c0_246 = arith.constant 0 : index
    %c0_247 = arith.constant 0 : index
    %480 = vector.load %arg13[%c0_246, %c0_247] : memref<8x32xf32, #tpu.memory_space<vmem>>, vector<8x32xf32>
    %481 = arith.truncf %480 : vector<8x32xf32> to vector<8x32xbf16>
    %cst_248 = arith.constant dense<0.000000e+00> : vector<8x128xf32>
    %482 = tpu.matmul %481, %4, %cst_248 {dimension_numbers = #tpu.dot_dimension_numbers<[1], [0], [0], [1], [0, 0, 1, 1], [], []>} : vector<8x32xbf16>, vector<32x128xbf16>, vector<8x128xf32> -> vector<8x128xf32>
    %483 = arith.addf %479, %482 : vector<8x128xf32>
    %c0_249 = arith.constant 0 : index
    %c0_250 = arith.constant 0 : index
    %484 = vector.load %arg14[%c0_249, %c0_250] : memref<8x32xf32, #tpu.memory_space<vmem>>, vector<8x32xf32>
    %485 = vector.extract_strided_slice %483 {offsets = [0, 0], sizes = [8, 96], strides = [1, 1]} : vector<8x128xf32> to vector<8x96xf32>
    %486 = arith.negf %485 : vector<8x96xf32>
    %487 = math.exp %486 : vector<8x96xf32>
    %cst_251 = arith.constant 1.000000e+00 : f32
    %488 = vector.broadcast %cst_251 : f32 to vector<8x96xf32>
    %489 = arith.addf %488, %487 : vector<8x96xf32>
    %490 = arith.divf %488, %489 : vector<8x96xf32>
    %491 = vector.extract_strided_slice %483 {offsets = [0, 96], sizes = [8, 32], strides = [1, 1]} : vector<8x128xf32> to vector<8x32xf32>
    %492 = math.tanh %491 : vector<8x32xf32>
    %493 = vector.extract_strided_slice %490 {offsets = [0, 0], sizes = [8, 32], strides = [1, 1]} : vector<8x96xf32> to vector<8x32xf32>
    %494 = vector.extract_strided_slice %490 {offsets = [0, 32], sizes = [8, 32], strides = [1, 1]} : vector<8x96xf32> to vector<8x32xf32>
    %495 = vector.extract_strided_slice %490 {offsets = [0, 64], sizes = [8, 32], strides = [1, 1]} : vector<8x96xf32> to vector<8x32xf32>
    %496 = arith.mulf %494, %484 : vector<8x32xf32>
    %497 = arith.mulf %493, %492 : vector<8x32xf32>
    %498 = arith.addf %496, %497 : vector<8x32xf32>
    %499 = math.tanh %498 : vector<8x32xf32>
    %500 = arith.mulf %495, %499 : vector<8x32xf32>
    %c0_252 = arith.constant 0 : index
    %c0_253 = arith.constant 0 : index
    %501 = vector.load %arg13[%c0_252, %c0_253] : memref<8x32xf32, #tpu.memory_space<vmem>>, vector<8x32xf32>
    tpu.vector_store %arg13[%c0_252, %c0_253], %500 {strides = array<i32>} : memref<8x32xf32, #tpu.memory_space<vmem>>, vector<8x32xf32>,
    %c0_254 = arith.constant 0 : index
    %c0_255 = arith.constant 0 : index
    %502 = vector.load %arg14[%c0_254, %c0_255] : memref<8x32xf32, #tpu.memory_space<vmem>>, vector<8x32xf32>
    tpu.vector_store %arg14[%c0_254, %c0_255], %498 {strides = array<i32>} : memref<8x32xf32, #tpu.memory_space<vmem>>, vector<8x32xf32>,
    %503 = arith.index_cast %c7_i32_243 : i32 to index
    %c0_256 = arith.constant 0 : index
    %c0_257 = arith.constant 0 : index
    %504 = vector.load %arg16[%503, %c0_256, %c0_257] : memref<8x8x32xf32, #tpu.memory_space<vmem>>, vector<1x8x32xf32>
    %505 = vector.shape_cast %504 : vector<1x8x32xf32> to vector<8x32xf32>
    %506 = vector.shape_cast %500 : vector<8x32xf32> to vector<1x8x32xf32>
    tpu.vector_store %arg16[%503, %c0_256, %c0_257], %506 {strides = array<i32>} : memref<8x8x32xf32, #tpu.memory_space<vmem>>, vector<1x8x32xf32>,
    %c8_i32_258 = arith.constant 8 : i32
    %c0_259 = arith.constant 0 : index
    %c0_260 = arith.constant 0 : index
    %c0_261 = arith.constant 0 : index
    %507 = vector.load %arg16[%c0_259, %c0_260, %c0_261] : memref<8x8x32xf32, #tpu.memory_space<vmem>>, vector<8x8x32xf32>
    %cst_262 = arith.constant dense<0.000000e+00> : vector<8x8xf32>
    %508 = vector.multi_reduction <add>, %507, %cst_262 [2] : vector<8x8x32xf32> to vector<8x8xf32>
    %509 = vector.shape_cast %508 : vector<8x8xf32> to vector<8x8x1xf32>
    %cst_263 = arith.constant 3.200000e+01 : f32
    %510 = vector.broadcast %cst_263 : f32 to vector<8x8x1xf32>
    %511 = arith.divf %509, %510 : vector<8x8x1xf32>
    %512 = vector.broadcast %511 : vector<8x8x1xf32> to vector<8x8x32xf32>
    %513 = arith.subf %507, %512 : vector<8x8x32xf32>
    %514 = arith.mulf %513, %513 : vector<8x8x32xf32>
    %cst_264 = arith.constant dense<0.000000e+00> : vector<8x8xf32>
    %515 = vector.multi_reduction <add>, %514, %cst_264 [2] : vector<8x8x32xf32> to vector<8x8xf32>
    %516 = vector.shape_cast %515 : vector<8x8xf32> to vector<8x8x1xf32>
    %cst_265 = arith.constant 3.200000e+01 : f32
    %517 = vector.broadcast %cst_265 : f32 to vector<8x8x1xf32>
    %518 = arith.divf %516, %517 : vector<8x8x1xf32>
    %c0_266 = arith.constant 0 : index
    %c0_267 = arith.constant 0 : index
    %519 = vector.load %arg8[%c0_266, %c0_267] : memref<1x32xf32, #tpu.memory_space<vmem>>, vector<1x32xf32>
    %520 = vector.shape_cast %519 : vector<1x32xf32> to vector<1x1x32xf32>
    %c0_268 = arith.constant 0 : index
    %c0_269 = arith.constant 0 : index
    %521 = vector.load %arg9[%c0_268, %c0_269] : memref<1x32xf32, #tpu.memory_space<vmem>>, vector<1x32xf32>
    %522 = vector.shape_cast %521 : vector<1x32xf32> to vector<1x1x32xf32>
    %523 = vector.broadcast %511 : vector<8x8x1xf32> to vector<8x8x32xf32>
    %524 = arith.subf %507, %523 : vector<8x8x32xf32>
    %cst_270 = arith.constant 9.99999974E-6 : f32
    %525 = vector.broadcast %cst_270 : f32 to vector<8x8x1xf32>
    %526 = arith.addf %518, %525 : vector<8x8x1xf32>
    %527 = math.rsqrt %526 : vector<8x8x1xf32>
    %528 = vector.broadcast %527 : vector<8x8x1xf32> to vector<8x8x32xf32>
    %529 = arith.mulf %524, %528 : vector<8x8x32xf32>
    %530 = vector.broadcast %520 : vector<1x1x32xf32> to vector<8x8x32xf32>
    %531 = arith.mulf %529, %530 : vector<8x8x32xf32>
    %532 = vector.broadcast %522 : vector<1x1x32xf32> to vector<8x8x32xf32>
    %533 = arith.addf %531, %532 : vector<8x8x32xf32>
    %534 = arith.negf %533 : vector<8x8x32xf32>
    %535 = math.exp %534 : vector<8x8x32xf32>
    %cst_271 = arith.constant 1.000000e+00 : f32
    %536 = vector.broadcast %cst_271 : f32 to vector<8x8x32xf32>
    %537 = arith.addf %536, %535 : vector<8x8x32xf32>
    %538 = arith.divf %536, %537 : vector<8x8x32xf32>
    %539 = arith.mulf %533, %538 : vector<8x8x32xf32>
    %c0_272 = arith.constant 0 : index
    %c0_273 = arith.constant 0 : index
    %c0_274 = arith.constant 0 : index
    %540 = vector.load %arg10[%c0_272, %c0_273, %c0_274] : memref<8x8x32xf32, #tpu.memory_space<vmem>>, vector<8x8x32xf32>
    tpu.vector_store %arg10[%c0_272, %c0_273, %c0_274], %539 {strides = array<i32>} : memref<8x8x32xf32, #tpu.memory_space<vmem>>, vector<8x8x32xf32>,
    return
  }
  func.func @transform_0(%arg0: i32) -> (i32, i32, i32) {
    %c0_i32 = arith.constant 0 : i32
    %c0_i32_0 = arith.constant 0 : i32
    %c0_i32_1 = arith.constant 0 : i32
    return %arg0, %c0_i32, %c0_i32_0 : i32, i32, i32
  }
  func.func @transform_1(%arg0: i32) -> (i32, i32) {
    %c0_i32 = arith.constant 0 : i32
    %c0_i32_0 = arith.constant 0 : i32
    %c0_i32_1 = arith.constant 0 : i32
    return %c0_i32, %c0_i32_0 : i32, i32
  }
  func.func @transform_2(%arg0: i32) -> (i32, i32) {
    %c0_i32 = arith.constant 0 : i32
    %c0_i32_0 = arith.constant 0 : i32
    %c0_i32_1 = arith.constant 0 : i32
    return %c0_i32, %c0_i32_0 : i32, i32
  }
  func.func @transform_3(%arg0: i32) -> (i32, i32) {
    %c0_i32 = arith.constant 0 : i32
    %c0_i32_0 = arith.constant 0 : i32
    %c0_i32_1 = arith.constant 0 : i32
    return %c0_i32, %c0_i32_0 : i32, i32
  }
  func.func @transform_4(%arg0: i32) -> (i32, i32) {
    %c0_i32 = arith.constant 0 : i32
    %c0_i32_0 = arith.constant 0 : i32
    %c0_i32_1 = arith.constant 0 : i32
    return %c0_i32, %c0_i32_0 : i32, i32
  }
  func.func @transform_5(%arg0: i32) -> (i32, i32) {
    %c0_i32 = arith.constant 0 : i32
    %c0_i32_0 = arith.constant 0 : i32
    %c0_i32_1 = arith.constant 0 : i32
    return %c0_i32, %c0_i32_0 : i32, i32
  }
  func.func @transform_6(%arg0: i32) -> (i32, i32) {
    %c0_i32 = arith.constant 0 : i32
    %c0_i32_0 = arith.constant 0 : i32
    %c0_i32_1 = arith.constant 0 : i32
    return %c0_i32, %c0_i32_0 : i32, i32
  }
  func.func @transform_7(%arg0: i32) -> (i32, i32) {
    %c0_i32 = arith.constant 0 : i32
    %c0_i32_0 = arith.constant 0 : i32
    %c0_i32_1 = arith.constant 0 : i32
    return %c0_i32, %c0_i32_0 : i32, i32
  }
  func.func @transform_8(%arg0: i32) -> (i32, i32) {
    %c0_i32 = arith.constant 0 : i32
    %c0_i32_0 = arith.constant 0 : i32
    %c0_i32_1 = arith.constant 0 : i32
    return %c0_i32, %c0_i32_0 : i32, i32
  }
  func.func @transform_9(%arg0: i32) -> (i32, i32, i32) {
    %c0_i32 = arith.constant 0 : i32
    %c0_i32_0 = arith.constant 0 : i32
    %c0_i32_1 = arith.constant 0 : i32
    return %arg0, %c0_i32, %c0_i32_0 : i32, i32, i32
  }
}

</mosaic_0001>

<bundles_post_ra>
// kernel: tpu_custom_call.1
= control target key start
LH: loop header
LB: loop body
LE: loop exit
PB: predicated region body
PF: predicated region fallthrough
CT: control target
= control target key end

     0   :  { %vm91_vm0 = vcmask 1041408   ;;  %v2417_v4 = vmov 0.0   ;;  %vm78_vm1 = vcmask 31744   ;;  %vm38_vm2 = vcmask 261120   ;;  %s2973_s0 = inlined_call_operand.vmem [shape: f32[8,8,4], index: 0, kind: input, shape index: {}]   ;;  %s2974_s1 = inlined_call_operand.vmem [shape: bf16[4,128], index: 1, kind: input, shape index: {}]   ;;  %s2975_s2 = inlined_call_operand.vmem [shape: bf16[32,128], index: 2, kind: input, shape index: {}]   ;;  %s2976_s3 = inlined_call_operand.vmem [shape: f32[1,128], index: 3, kind: input, shape index: {}]   ;;  %s2977_s4 = inlined_call_operand.vmem [shape: bf16[32,128], index: 4, kind: input, shape index: {}]   ;;  %s2978_s5 = inlined_call_operand.vmem [shape: bf16[32,128], index: 5, kind: input, shape index: {}]   ;;  %s2979_s6 = inlined_call_operand.vmem [shape: f32[1,128], index: 6, kind: input, shape index: {}]   ;;  %s2980_s7 = inlined_call_operand.vmem [shape: f32[1,32], index: 7, kind: input, shape index: {}]   ;;  %s2981_s8 = inlined_call_operand.vmem [shape: f32[1,32], index: 8, kind: input, shape index: {}]   ;;  %s2982_s9 = inlined_call_operand.hbm [shape: f32[8,8,32], index: 9, kind: output, shape index: {}]  }
   0x1   :  { %v77_v0 = vld [vmem:[%s2974_s1] sm:$0x3]  ;;  %v66_v2 = vld [vmem:[%s2973_s0 + $0x8] sm:$0xff]  ;;  %2062 = vmatprep.subr.bf16.mxu1 %v2417_v4  ;;  %v67_v7 = vld [vmem:[%s2973_s0 + $0x10] sm:$0xff]  ;;  %vm2418_vm3 = vmmov 0   ;;  %39 = vst.msk [vmem:[#allocation2] sm:$0xff] %vm38_vm2, %v2417_v4 }
   0x2   :  { %v65_v1 = vld [vmem:[%s2973_s0] sm:$0xff]  ;;  %2202 = vmatprep.subr.msk.bf16.mxu0 %vm91_vm0, %v77_v0  ;;  %v93_v3 = vsel %vm91_vm0, %v77_v0, 0  ;;  %v68_v8 = vld [vmem:[%s2973_s0 + $0x18] sm:$0xff]  ;;  %v2500_v10 = vld [vmem:[%s2975_s2 + $0x8] sm:$0xff]   ;;  %2066 = vmatprep.mubr.msk.bf16.mxu1 %vm2418_vm3, %v2417_v4  ;;  %40 = vst.msk [vmem:[#allocation3] sm:$0xff] %vm38_vm2, %v2417_v4 }
   0x3   :  { %v73_v5 = vpack.c.bf16 %v66_v2, %v65_v1  ;;  %2053 = vmatpush3.bf16.msra.mxu0 %v93_v3  ;;  %v2488_v6 = vld [vmem:[%s2975_s2] sm:$0xff]   ;;  %v74_v9 = vpack.c.bf16 %v68_v8, %v67_v7  ;;  %41 = vst.msk [vmem:[#allocation4] sm:$0xff] %vm38_vm2, %v2417_v4  ;;  %42 = vst.msk [vmem:[#allocation5] sm:$0xff] %vm38_vm2, %v2417_v4 }
   0x4   :  { %2063 = vmatpush3.bf16.msra.mxu1 %v2488_v6  ;;  %2078 = vmatprep.subr.bf16.mxu0 %v2417_v4 }
   0x5   :  { %2054 = vmatprep.mubr.msk.bf16.mxu0 %vm78_vm1, %v73_v5  ;;  %2064 = vmatprep.subr.bf16.mxu1 %v2417_v4 }
   0x6   :  { %2055 = vmatmul.mubr.msk.bf16.vlgmr.msra.gmra.mrb[0].mxu0 %vm78_vm1, %v74_v9 }
   0x7   :  { %2079 = vmatpush3.bf16.msra.mxu0 %v2488_v6 }
   0x8   :  { %14 = vsyncpa [#allocation9], 0  ;;  %2080 = vmatprep.subr.bf16.mxu0 %v2417_v4  ;;  %2065 = vmatpush3.bf16.msra.mxu1 %v2500_v10  ;;  %v169_v11 = vld [vmem:[#allocation2] sm:$0xff]  ;;  %s2419_s23 = smov 32   ;;  %s2421_s24 = smov 64   ;;  %v70_v63 = vld [vmem:[%s2973_s0 + $0x28] sm:$0xff] }
   0x9   :  { %2070 = vmatprep.subr.bf16.mxu1 %v2417_v4  ;;  %v170_v12 = vpack.c.bf16 %v169_v11, %v169_v11  ;;  %v2534_v15 = vld [vmem:[%s2976_s3] ss:$0 sm:$0xff]  ;;  %v228_v25 = vld [vmem:[#allocation3] sm:$0xff]  ;;  %s2420_s3 = smov 96   ;;  %v71_v0 = vld [vmem:[%s2973_s0 + $0x30] sm:$0xff] }
   0xa   :  { %v69_v62 = vld [vmem:[%s2973_s0 + $0x20] sm:$0xff]  ;;  %v72_v2 = vld [vmem:[%s2973_s0 + $0x38] sm:$0xff] }
   0xb   :  { %2081 = vmatpush3.bf16.msra.mxu0 %v2500_v10  ;;  %2067 = vmatmul.mubr.msk.bf16.vlgmr.msra.gmra.mrb[0].mxu1 %vm38_vm2, %v170_v12  ;;  %v75_v1 = vpack.c.bf16 %v70_v63, %v69_v62  ;;  %v76_v3 = vpack.c.bf16 %v72_v2, %v71_v0 }
   0xc   :  { %2094 = vmatprep.subr.bf16.mxu0 %v2417_v4  ;;  %2071 = vmatpush3.bf16.msra.mxu1 %v2488_v6 }
   0xd   :  { %2074 = vmatprep.mubr.msk.bf16.mxu1 %vm2418_vm3, %v2417_v4  ;;  %2072 = vmatprep.subr.bf16.mxu1 %v2417_v4 }
   0xe   :  { %2058 = vmatprep.mubr.msk.bf16.mxu0 %vm78_vm1, %v75_v1 }
   0xf   :  { %2059 = vmatmul.mubr.msk.bf16.gmra.mrb[4].mxu0 %vm78_vm1, %v76_v3 }
  0x10   :  { %2073 = vmatpush3.bf16.msra.mxu1 %v2500_v10  ;;  %2082 = vmatprep.mubr.msk.bf16.mxu0 %vm2418_vm3, %v2417_v4 }
  0x11   :  { %2086 = vmatprep.subr.bf16.mxu1 %v2417_v4 }
  0xd9   :  { %v2529_v13 = vpop.f32.mrb[0].mxu0 }
  0xda   :  { %v129_v14 = vpop.f32.mrb[1].mxu0 }
  0xdb   :  { %v2536_v16 = vpop.f32.mrb[2].mxu0  ;;  %v130_v18 = vadd.f32 %v2534_v15, %v129_v14 }
  0xdc   :  { %v132_v17 = vpop.f32.mrb[3].mxu0 }
  0xdd   :  { %v133_v44 = vadd.f32 %v2534_v15, %v132_v17 }
  0xde   :  { %v221_v19 = vpop.f32.mrb[0].mxu1 }
  0xdf   :  { %v227_v20 = vadd.f32 %v221_v19, %v130_v18  ;;  %v2068_v21 = vpop.f32.mrb[1].mxu1 }
  0xe0   :  { %v224_v22 = vpop.f32.mrb[2].mxu1  ;;  %v138_v21 = vadd.f32 %v2529_v13, %v2534_v15 }
  0xe1   :  { %2217 = vtanh.f32 %v227_v20  ;;  %v2069_v23 = vpop.f32.mrb[3].mxu1  ;;  %v1944_v26 = vmul.f32 -1.442695, %v227_v20 }
  0xe2   :  { %v2580_v11 = vpop.f32.mrb[4].mxu0 }
  0xe3   :  { %2219 = vpow2.f32 %v1944_v26  ;;  %v2582_v12 = vpop.f32.mrb[5].mxu0 }
  0xe4   :  { %v2584_v14 = vpop.f32.mrb[6].mxu0 }
  0xe5   :  { %v2586_v17 = vpop.f32.mrb[7].mxu0 }
  0xeb   :  { %v2218_v24 = vpop.eup %2217 }
  0xec   :  { %242 = vrot.lane.b32.xlu0 %v2218_v24, %s2419_s23 }
  0xed   :  { %v2220_v27 = vpop.eup %2219 }
  0xee   :  { %v232_v28 = vadd.f32 1.0, %v2220_v27 }
  0xf0   :  { %237 = vrot.lane.b32.xlu0 %v228_v25, %s2419_s23  ;;  %2221 = vrcp.f32 %v232_v28 }
  0xfa   :  { %v2222_v29 = vpop.eup %2221 }
 0x15e   :  { %v243_v30 = vpop.permute.xlu0 %242 }
 0x15f   :  { %v245_v31 = vmul.f32 %v2222_v29, %v243_v30 }
 0x161   :  { %247 = vrot.lane.b32.xlu1 %v245_v31, %s2419_s23 }
 0x162   :  { %v238_v32 = vpop.permute.xlu0 %237 }
 0x163   :  { %v240_v33 = vmul.f32 %v2222_v29, %v238_v32 }
 0x1d3   :  { %v248_v34 = vpop.permute.xlu1 %247 }
 0x1d4   :  { %v250_v35 = vadd.f32 %v248_v34, %v240_v33 }
 0x1d6   :  { %2223 = vtanh.f32 %v250_v35 }
 0x1e0   :  { %v2224_v36 = vpop.eup %2223 }
 0x1e1   :  { %253 = vrot.lane.b32.xlu1 %v2224_v36, %s2419_s23 }
 0x1e5   :  { %263 = vrot.lane.b32.xlu1 %v250_v35, %s2420_s3 }
 0x253   :  { %v254_v37 = vpop.permute.xlu1 %253 }
 0x254   :  { %v256_v38 = vmul.f32 %v2222_v29, %v254_v37 }
 0x256   :  { %258 = vrot.lane.b32.xlu0 %v256_v38, %s2421_s24 }
 0x257   :  { %v264_v39 = vpop.permute.xlu1 %263 }
 0x258   :  { %266 = vst.msk [vmem:[#allocation3] sm:$0xff] %vm38_vm2, %v264_v39 }
 0x25f   :  { %v316_v40 = vld [vmem:[#allocation3] sm:$0xff] }
 0x260   :  { %325 = vrot.lane.b32.xlu1 %v316_v40, %s2419_s23 }
 0x2c8   :  { %v259_v41 = vpop.permute.xlu0 %258 }
 0x2c9   :  { %261 = vst.msk [vmem:[#allocation2] sm:$0xff] %vm38_vm2, %v259_v41  ;;  %267 = vst.msk [vmem:[#allocation7] sm:$0xff] %vm38_vm2, %v259_v41 }
 0x2d0   :  { %v270_v42 = vld [vmem:[#allocation2] sm:$0xff] }
 0x2d1   :  { %v271_v43 = vpack.c.bf16 %v270_v42, %v270_v42 }
 0x2d2   :  { %v326_v57 = vpop.permute.xlu1 %325 }
 0x2d3   :  { %2075 = vmatmul.mubr.msk.bf16.vlgmr.msra.gmra.mrb[4].mxu1 %vm38_vm2, %v271_v43 }
 0x2d4   :  { %2087 = vmatpush3.bf16.msra.mxu1 %v2488_v6  ;;  %2090 = vmatprep.mubr.msk.bf16.mxu1 %vm2418_vm3, %v2417_v4 }
 0x2d5   :  { %2088 = vmatprep.subr.bf16.mxu1 %v2417_v4 }
 0x2d8   :  { %2089 = vmatpush3.bf16.msra.mxu1 %v2500_v10 }
 0x2d9   :  { %2102 = vmatprep.subr.bf16.mxu1 %v2417_v4 }
 0x3a6   :  { %v309_v45 = vpop.f32.mrb[4].mxu1 }
 0x3a7   :  { %v315_v46 = vadd.f32 %v309_v45, %v133_v44  ;;  %v2076_v47 = vpop.f32.mrb[5].mxu1  ;;  %v141_v45 = vadd.f32 %v2536_v16, %v2534_v15 }
 0x3a8   :  { %v312_v48 = vpop.f32.mrb[6].mxu1 }
 0x3a9   :  { %2225 = vtanh.f32 %v315_v46  ;;  %v2077_v49 = vpop.f32.mrb[7].mxu1  ;;  %v1946_v51 = vmul.f32 -1.442695, %v315_v46 }
 0x3ab   :  { %2227 = vpow2.f32 %v1946_v51 }
 0x3b3   :  { %v2226_v50 = vpop.eup %2225 }
 0x3b4   :  { %330 = vrot.lane.b32.xlu0 %v2226_v50, %s2419_s23 }
 0x3b5   :  { %v2228_v52 = vpop.eup %2227 }
 0x3b6   :  { %v320_v53 = vadd.f32 1.0, %v2228_v52 }
 0x3b8   :  { %2229 = vrcp.f32 %v320_v53 }
 0x3c2   :  { %v2230_v54 = vpop.eup %2229 }
 0x3c3   :  { %v328_v58 = vmul.f32 %v2230_v54, %v326_v57 }
 0x426   :  { %v331_v55 = vpop.permute.xlu0 %330 }
 0x427   :  { %v333_v56 = vmul.f32 %v2230_v54, %v331_v55 }
 0x429   :  { %335 = vrot.lane.b32.xlu0 %v333_v56, %s2419_s23 }
 0x49b   :  { %v336_v59 = vpop.permute.xlu0 %335 }
 0x49c   :  { %v338_v60 = vadd.f32 %v336_v59, %v328_v58 }
 0x49e   :  { %2231 = vtanh.f32 %v338_v60 }
 0x4a8   :  { %v2232_v61 = vpop.eup %2231 }
 0x4a9   :  { %341 = vrot.lane.b32.xlu1 %v2232_v61, %s2419_s23 }
 0x4ad   :  { %351 = vrot.lane.b32.xlu1 %v338_v60, %s2420_s3 }
 0x51b   :  { %v342_v5 = vpop.permute.xlu1 %341 }
 0x51c   :  { %v344_v7 = vmul.f32 %v2230_v54, %v342_v5 }
 0x51e   :  { %346 = vrot.lane.b32.xlu0 %v344_v7, %s2421_s24  ;;  %v146_v7 = vadd.f32 %v2534_v15, %v2582_v12 }
 0x51f   :  { %v352_v8 = vpop.permute.xlu1 %351 }
 0x520   :  { %354 = vst.msk [vmem:[#allocation3] sm:$0xff] %vm38_vm2, %v352_v8 }
 0x527   :  { %v405_v9 = vld [vmem:[#allocation3] sm:$0xff] }
 0x528   :  { %414 = vrot.lane.b32.xlu1 %v405_v9, %s2419_s23 }
 0x590   :  { %v347_v18 = vpop.permute.xlu0 %346 }
 0x591   :  { %349 = vst.msk [vmem:[#allocation2] sm:$0xff] %vm38_vm2, %v347_v18  ;;  %356 = vst.msk [vmem:[#allocation7 + $0x8] sm:$0xff] %vm38_vm2, %v347_v18 }
 0x598   :  { %v359_v19 = vld [vmem:[#allocation2] sm:$0xff] }
 0x599   :  { %v360_v20 = vpack.c.bf16 %v359_v19, %v359_v19 }
 0x59a   :  { %v415_v13 = vpop.permute.xlu1 %414 }
 0x59b   :  { %2083 = vmatmul.mubr.msk.bf16.vlgmr.msra.gmra.mrb[8].mxu0 %vm38_vm2, %v360_v20 }
 0x59c   :  { %2095 = vmatpush3.bf16.msra.mxu0 %v2488_v6  ;;  %2098 = vmatprep.mubr.msk.bf16.mxu0 %vm2418_vm3, %v2417_v4 }
 0x59d   :  { %2096 = vmatprep.subr.bf16.mxu0 %v2417_v4 }
 0x5a0   :  { %2097 = vmatpush3.bf16.msra.mxu0 %v2500_v10 }
 0x5a1   :  { %2110 = vmatprep.subr.bf16.mxu0 %v2417_v4 }
 0x66e   :  { %v398_v22 = vpop.f32.mrb[8].mxu0 }
 0x66f   :  { %v404_v23 = vadd.f32 %v398_v22, %v138_v21  ;;  %v2084_v24 = vpop.f32.mrb[9].mxu0 }
 0x670   :  { %v401_v25 = vpop.f32.mrb[10].mxu0 }
 0x671   :  { %2233 = vtanh.f32 %v404_v23  ;;  %v2085_v26 = vpop.f32.mrb[11].mxu0  ;;  %v1948_v28 = vmul.f32 -1.442695, %v404_v23 }
 0x673   :  { %2235 = vpow2.f32 %v1948_v28 }
 0x67b   :  { %v2234_v27 = vpop.eup %2233 }
 0x67c   :  { %419 = vrot.lane.b32.xlu0 %v2234_v27, %s2419_s23 }
 0x67d   :  { %v2236_v29 = vpop.eup %2235 }
 0x67e   :  { %v409_v30 = vadd.f32 1.0, %v2236_v29 }
 0x680   :  { %2237 = vrcp.f32 %v409_v30 }
 0x68a   :  { %v2238_v31 = vpop.eup %2237 }
 0x68b   :  { %v417_v34 = vmul.f32 %v2238_v31, %v415_v13 }
 0x6ee   :  { %v420_v32 = vpop.permute.xlu0 %419 }
 0x6ef   :  { %v422_v33 = vmul.f32 %v2238_v31, %v420_v32 }
 0x6f1   :  { %424 = vrot.lane.b32.xlu0 %v422_v33, %s2419_s23 }
 0x763   :  { %v425_v35 = vpop.permute.xlu0 %424 }
 0x764   :  { %v427_v36 = vadd.f32 %v425_v35, %v417_v34 }
 0x766   :  { %2239 = vtanh.f32 %v427_v36 }
 0x770   :  { %v2240_v37 = vpop.eup %2239 }
 0x771   :  { %430 = vrot.lane.b32.xlu1 %v2240_v37, %s2419_s23 }
 0x775   :  { %440 = vrot.lane.b32.xlu1 %v427_v36, %s2420_s3 }
 0x7e3   :  { %v431_v38 = vpop.permute.xlu1 %430 }
 0x7e4   :  { %v433_v39 = vmul.f32 %v2238_v31, %v431_v38  ;;  %v149_v38 = vadd.f32 %v2534_v15, %v2586_v17 }
 0x7e6   :  { %435 = vrot.lane.b32.xlu0 %v433_v39, %s2421_s24 }
 0x7e7   :  { %v441_v40 = vpop.permute.xlu1 %440 }
 0x7e8   :  { %443 = vst.msk [vmem:[#allocation3] sm:$0xff] %vm38_vm2, %v441_v40 }
 0x7ef   :  { %v494_v41 = vld [vmem:[#allocation3] sm:$0xff] }
 0x7f0   :  { %503 = vrot.lane.b32.xlu1 %v494_v41, %s2419_s23 }
 0x858   :  { %v436_v42 = vpop.permute.xlu0 %435 }
 0x859   :  { %438 = vst.msk [vmem:[#allocation2] sm:$0xff] %vm38_vm2, %v436_v42  ;;  %445 = vst.msk [vmem:[#allocation7 + $0x10] sm:$0xff] %vm38_vm2, %v436_v42 }
 0x860   :  { %v448_v43 = vld [vmem:[#allocation2] sm:$0xff] }
 0x861   :  { %v449_v44 = vpack.c.bf16 %v448_v43, %v448_v43 }
 0x862   :  { %v504_v16 = vpop.permute.xlu1 %503 }
 0x863   :  { %2091 = vmatmul.mubr.msk.bf16.vlgmr.msra.gmra.mrb[8].mxu1 %vm38_vm2, %v449_v44 }
 0x864   :  { %2103 = vmatpush3.bf16.msra.mxu1 %v2488_v6  ;;  %2106 = vmatprep.mubr.msk.bf16.mxu1 %vm2418_vm3, %v2417_v4 }
 0x865   :  { %2104 = vmatprep.subr.bf16.mxu1 %v2417_v4 }
 0x868   :  { %2105 = vmatpush3.bf16.msra.mxu1 %v2500_v10 }
 0x869   :  { %2118 = vmatprep.subr.bf16.mxu1 %v2417_v4 }
 0x936   :  { %v487_v46 = vpop.f32.mrb[8].mxu1 }
 0x937   :  { %v493_v47 = vadd.f32 %v487_v46, %v141_v45  ;;  %v2092_v48 = vpop.f32.mrb[9].mxu1 }
 0x938   :  { %v490_v49 = vpop.f32.mrb[10].mxu1 }
 0x939   :  { %2241 = vtanh.f32 %v493_v47  ;;  %v2093_v50 = vpop.f32.mrb[11].mxu1  ;;  %v1950_v52 = vmul.f32 -1.442695, %v493_v47 }
 0x93b   :  { %2243 = vpow2.f32 %v1950_v52 }
 0x943   :  { %v2242_v51 = vpop.eup %2241 }
 0x944   :  { %508 = vrot.lane.b32.xlu0 %v2242_v51, %s2419_s23 }
 0x945   :  { %v2244_v53 = vpop.eup %2243 }
 0x946   :  { %v498_v54 = vadd.f32 1.0, %v2244_v53  ;;  %v2213_v53 = vld [vmem:[%s2977_s4] sm:$0xff]  }
 0x948   :  { %2245 = vrcp.f32 %v498_v54 }
 0x952   :  { %v2246_v55 = vpop.eup %2245 }
 0x953   :  { %v506_v58 = vmul.f32 %v2246_v55, %v504_v16 }
 0x9b6   :  { %v509_v56 = vpop.permute.xlu0 %508 }
 0x9b7   :  { %v511_v57 = vmul.f32 %v2246_v55, %v509_v56 }
 0x9b9   :  { %513 = vrot.lane.b32.xlu0 %v511_v57, %s2419_s23 }
 0xa2b   :  { %v514_v59 = vpop.permute.xlu0 %513 }
 0xa2c   :  { %v516_v60 = vadd.f32 %v514_v59, %v506_v58  ;;  %v892_v58 = vld [vmem:[#allocation7 + $0x8] sm:$0xff] }
 0xa2e   :  { %2247 = vtanh.f32 %v516_v60 }
 0xa38   :  { %v2248_v61 = vpop.eup %2247 }
 0xa39   :  { %519 = vrot.lane.b32.xlu1 %v2248_v61, %s2419_s23  ;;  %v891_v61 = vld [vmem:[#allocation7] sm:$0xff] }
 0xa3d   :  { %529 = vrot.lane.b32.xlu1 %v516_v60, %s2420_s3 }
 0xaab   :  { %v520_v62 = vpop.permute.xlu1 %519 }
 0xaac   :  { %v522_v63 = vmul.f32 %v2246_v55, %v520_v62  ;;  %v2214_v62 = vld [vmem:[%s2977_s4 + $0x8] sm:$0xff]  }
 0xaae   :  { %524 = vrot.lane.b32.xlu0 %v522_v63, %s2421_s24  ;;  %v899_v63 = vpack.c.bf16 %v892_v58, %v891_v61 }
 0xaaf   :  { %v530_v0 = vpop.permute.xlu1 %529 }
 0xab0   :  { %532 = vst.msk [vmem:[#allocation3] sm:$0xff] %vm38_vm2, %v530_v0 }
 0xab7   :  { %v583_v1 = vld [vmem:[#allocation3] sm:$0xff] }
 0xab8   :  { %592 = vrot.lane.b32.xlu1 %v583_v1, %s2419_s23 }
 0xb20   :  { %v525_v2 = vpop.permute.xlu0 %524 }
 0xb21   :  { %527 = vst.msk [vmem:[#allocation2] sm:$0xff] %vm38_vm2, %v525_v2  ;;  %534 = vst.msk [vmem:[#allocation7 + $0x18] sm:$0xff] %vm38_vm2, %v525_v2  ;;  %v893_v2 = vld [vmem:[#allocation7 + $0x10] sm:$0xff] }
 0xb28   :  { %v537_v3 = vld [vmem:[#allocation2] sm:$0xff]  ;;  %v894_v0 = vld [vmem:[#allocation7 + $0x18] sm:$0xff] }
 0xb29   :  { %v538_v5 = vpack.c.bf16 %v537_v3, %v537_v3  ;;  %v900_v3 = vpack.c.bf16 %v894_v0, %v893_v2 }
 0xb2a   :  { %v593_v12 = vpop.permute.xlu1 %592 }
 0xb2b   :  { %2099 = vmatmul.mubr.msk.bf16.vlgmr.msra.gmra.mrb[12].mxu0 %vm38_vm2, %v538_v5 }
 0xb2c   :  { %2111 = vmatpush3.bf16.msra.mxu0 %v2488_v6  ;;  %2114 = vmatprep.mubr.msk.bf16.mxu0 %vm2418_vm3, %v2417_v4 }
 0xb2d   :  { %2112 = vmatprep.subr.bf16.mxu0 %v2417_v4 }
 0xb30   :  { %2113 = vmatpush3.bf16.msra.mxu0 %v2500_v10 }
 0xb31   :  { %2126 = vmatprep.subr.bf16.mxu0 %v2213_v53 }
 0xbfe   :  { %v576_v8 = vpop.f32.mrb[12].mxu0 }
 0xbff   :  { %v582_v9 = vadd.f32 %v576_v8, %v146_v7  ;;  %v2100_v18 = vpop.f32.mrb[13].mxu0  ;;  %v154_v8 = vadd.f32 %v2580_v11, %v2534_v15 }
 0xc00   :  { %v579_v19 = vpop.f32.mrb[14].mxu0 }
 0xc01   :  { %2249 = vtanh.f32 %v582_v9  ;;  %v2101_v20 = vpop.f32.mrb[15].mxu0  ;;  %v1952_v22 = vmul.f32 -1.442695, %v582_v9 }
 0xc03   :  { %2251 = vpow2.f32 %v1952_v22 }
 0xc0b   :  { %v2250_v21 = vpop.eup %2249 }
 0xc0c   :  { %597 = vrot.lane.b32.xlu0 %v2250_v21, %s2419_s23 }
 0xc0d   :  { %v2252_v23 = vpop.eup %2251 }
 0xc0e   :  { %v587_v24 = vadd.f32 1.0, %v2252_v23 }
 0xc10   :  { %2253 = vrcp.f32 %v587_v24 }
 0xc1a   :  { %v2254_v25 = vpop.eup %2253 }
 0xc1b   :  { %v595_v28 = vmul.f32 %v2254_v25, %v593_v12 }
 0xc7e   :  { %v598_v26 = vpop.permute.xlu0 %597 }
 0xc7f   :  { %v600_v27 = vmul.f32 %v2254_v25, %v598_v26 }
 0xc81   :  { %602 = vrot.lane.b32.xlu0 %v600_v27, %s2419_s23 }
 0xcf3   :  { %v603_v29 = vpop.permute.xlu0 %602 }
 0xcf4   :  { %v605_v30 = vadd.f32 %v603_v29, %v595_v28 }
 0xcf6   :  { %2255 = vtanh.f32 %v605_v30 }
 0xd00   :  { %v2256_v31 = vpop.eup %2255 }
 0xd01   :  { %608 = vrot.lane.b32.xlu1 %v2256_v31, %s2419_s23 }
 0xd05   :  { %618 = vrot.lane.b32.xlu1 %v605_v30, %s2420_s3 }
 0xd73   :  { %v609_v32 = vpop.permute.xlu1 %608 }
 0xd74   :  { %v611_v33 = vmul.f32 %v2254_v25, %v609_v32 }
 0xd76   :  { %613 = vrot.lane.b32.xlu0 %v611_v33, %s2421_s24 }
 0xd77   :  { %v619_v13 = vpop.permute.xlu1 %618 }
 0xd78   :  { %621 = vst.msk [vmem:[#allocation3] sm:$0xff] %vm38_vm2, %v619_v13 }
 0xd7f   :  { %v672_v34 = vld [vmem:[#allocation3] sm:$0xff] }
 0xd80   :  { %681 = vrot.lane.b32.xlu1 %v672_v34, %s2419_s23 }
 0xde8   :  { %v614_v35 = vpop.permute.xlu0 %613 }
 0xde9   :  { %616 = vst.msk [vmem:[#allocation2] sm:$0xff] %vm38_vm2, %v614_v35  ;;  %623 = vst.msk [vmem:[#allocation7 + $0x20] sm:$0xff] %vm38_vm2, %v614_v35  ;;  %v2689_v35 = vld [vmem:[%s2978_s5] sm:$0xff]  }
 0xdf0   :  { %v626_v36 = vld [vmem:[#allocation2] sm:$0xff] }
 0xdf1   :  { %v627_v37 = vpack.c.bf16 %v626_v36, %v626_v36  ;;  %v895_v5 = vld [vmem:[#allocation7 + $0x20] sm:$0xff] }
 0xdf2   :  { %v682_v17 = vpop.permute.xlu1 %681 }
 0xdf3   :  { %2107 = vmatmul.mubr.msk.bf16.vlgmr.msra.gmra.mrb[12].mxu1 %vm38_vm2, %v627_v37 }
 0xdf4   :  { %2119 = vmatpush3.bf16.msra.mxu1 %v2488_v6  ;;  %2122 = vmatprep.mubr.msk.bf16.mxu1 %vm2418_vm3, %v2417_v4 }
 0xdf5   :  { %2120 = vmatprep.subr.bf16.mxu1 %v2417_v4 }
 0xdf8   :  { %2121 = vmatpush3.bf16.msra.mxu1 %v2500_v10 }
 0xdf9   :  { %2138 = vmatprep.subr.bf16.mxu1 %v2417_v4 }
 0xec6   :  { %v665_v39 = vpop.f32.mrb[12].mxu1 }
 0xec7   :  { %v671_v40 = vadd.f32 %v665_v39, %v149_v38  ;;  %v2108_v41 = vpop.f32.mrb[13].mxu1  ;;  %v2697_v38 = vld [vmem:[%s2978_s5 + $0x8] sm:$0xff]   ;;  %v1063_v39 = vld [vmem:[#allocation5] sm:$0xff] }
 0xec8   :  { %v668_v42 = vpop.f32.mrb[14].mxu1 }
 0xec9   :  { %2257 = vtanh.f32 %v671_v40  ;;  %v2109_v43 = vpop.f32.mrb[15].mxu1  ;;  %v1954_v6 = vmul.f32 -1.442695, %v671_v40 }
 0xeca   :  { %v1005_v43 = vld [vmem:[#allocation4] sm:$0xff] }
 0xecb   :  { %2259 = vpow2.f32 %v1954_v6  ;;  %v157_v6 = vadd.f32 %v2584_v14, %v2534_v15 }
 0xed3   :  { %v2258_v44 = vpop.eup %2257 }
 0xed4   :  { %686 = vrot.lane.b32.xlu0 %v2258_v44, %s2419_s23  ;;  %v1006_v44 = vpack.c.bf16 %v1005_v43, %v1005_v43 }
 0xed5   :  { %v2260_v45 = vpop.eup %2259 }
 0xed6   :  { %v676_v46 = vadd.f32 1.0, %v2260_v45 }
 0xed8   :  { %2261 = vrcp.f32 %v676_v46 }
 0xee2   :  { %v2262_v10 = vpop.eup %2261 }
 0xee3   :  { %v684_v49 = vmul.f32 %v2262_v10, %v682_v17  ;;  %v2723_v17 = vld [vmem:[%s2979_s6] ss:$0 sm:$0xff] }
 0xf46   :  { %v687_v47 = vpop.permute.xlu0 %686 }
 0xf47   :  { %v689_v48 = vmul.f32 %v2262_v10, %v687_v47 }
 0xf49   :  { %691 = vrot.lane.b32.xlu0 %v689_v48, %s2419_s23 }
 0xfbb   :  { %v692_v50 = vpop.permute.xlu0 %691 }
 0xfbc   :  { %v694_v51 = vadd.f32 %v692_v50, %v684_v49 }
 0xfbe   :  { %2263 = vtanh.f32 %v694_v51 }
 0xfc8   :  { %v2264_v52 = vpop.eup %2263 }
 0xfc9   :  { %697 = vrot.lane.b32.xlu1 %v2264_v52, %s2419_s23 }
 0xfcd   :  { %707 = vrot.lane.b32.xlu1 %v694_v51, %s2420_s3 }
0x103b   :  { %v698_v54 = vpop.permute.xlu1 %697 }
0x103c   :  { %v700_v55 = vmul.f32 %v2262_v10, %v698_v54 }
0x103e   :  { %702 = vrot.lane.b32.xlu0 %v700_v55, %s2421_s24 }
0x103f   :  { %v708_v56 = vpop.permute.xlu1 %707 }
0x1040   :  { %710 = vst.msk [vmem:[#allocation3] sm:$0xff] %vm38_vm2, %v708_v56 }
0x1047   :  { %v761_v57 = vld [vmem:[#allocation3] sm:$0xff] }
0x1048   :  { %770 = vrot.lane.b32.xlu1 %v761_v57, %s2419_s23 }
0x10b0   :  { %v703_v16 = vpop.permute.xlu0 %702 }
0x10b1   :  { %705 = vst.msk [vmem:[#allocation2] sm:$0xff] %vm38_vm2, %v703_v16  ;;  %712 = vst.msk [vmem:[#allocation7 + $0x28] sm:$0xff] %vm38_vm2, %v703_v16 }
0x10b8   :  { %v715_v59 = vld [vmem:[#allocation2] sm:$0xff]  ;;  %v896_v1 = vld [vmem:[#allocation7 + $0x28] sm:$0xff] }
0x10b9   :  { %v716_v60 = vpack.c.bf16 %v715_v59, %v715_v59  ;;  %v901_v7 = vpack.c.bf16 %v896_v1, %v895_v5 }
0x10ba   :  { %v771_v31 = vpop.permute.xlu1 %770 }
0x10bb   :  { %2115 = vmatmul.mubr.msk.bf16.vlgmr.msra.gmra.mrb[16].mxu0 %vm38_vm2, %v716_v60 }
0x10bc   :  { %2127 = vmatpush3.bf16.msra.mxu0 %v2213_v53  ;;  %2130 = vmatprep.mubr.msk.bf16.mxu0 %vm38_vm2, %v899_v63 }
0x10bd   :  { %2128 = vmatprep.subr.bf16.mxu0 %v2214_v62 }
0x10c0   :  { %2129 = vmatpush3.bf16.msra.mxu0 %v2214_v62 }
0x10c1   :  { %2154 = vmatprep.subr.bf16.mxu0 %v2417_v4 }
0x10c3   :  { %2131 = vmatmul.mubr.msk.bf16.vlgmr.msra.gmra.mrb[20].mxu0 %vm38_vm2, %v900_v3 }
0x10c4   :  { %2134 = vmatprep.mubr.msk.bf16.mxu0 %vm38_vm2, %v901_v7  ;;  %2155 = vmatpush3.bf16.msra.mxu0 %v2689_v35 }
0x10c5   :  { %2156 = vmatprep.subr.bf16.mxu0 %v2417_v4 }
0x10c8   :  { %2157 = vmatpush3.bf16.msra.mxu0 %v2697_v38 }
0x10c9   :  { %2170 = vmatprep.subr.bf16.mxu0 %v2417_v4 }
0x118e   :  { %v754_v9 = vpop.f32.mrb[16].mxu0 }
0x118f   :  { %v760_v18 = vadd.f32 %v754_v9, %v154_v8  ;;  %v2116_v19 = vpop.f32.mrb[17].mxu0 }
0x1190   :  { %v757_v20 = vpop.f32.mrb[18].mxu0 }
0x1191   :  { %2265 = vtanh.f32 %v760_v18  ;;  %v2117_v21 = vpop.f32.mrb[19].mxu0  ;;  %v1956_v27 = vmul.f32 -1.442695, %v760_v18 }
0x1193   :  { %2267 = vpow2.f32 %v1956_v27 }
0x1196   :  { %v2674_v22 = vpop.f32.mrb[20].mxu0 }
0x1197   :  { %v965_v23 = vpop.f32.mrb[21].mxu0 }
0x1198   :  { %v2676_v24 = vpop.f32.mrb[22].mxu0  ;;  %v966_v49 = vadd.f32 %v2723_v17, %v965_v23 }
0x1199   :  { %v2678_v25 = vpop.f32.mrb[23].mxu0 }
0x119a   :  { %v969_v23 = vadd.f32 %v2723_v17, %v2678_v25 }
0x119b   :  { %v2266_v26 = vpop.eup %2265 }
0x119c   :  { %775 = vrot.lane.b32.xlu0 %v2266_v26, %s2419_s23 }
0x119d   :  { %v2268_v12 = vpop.eup %2267 }
0x119e   :  { %v765_v11 = vadd.f32 1.0, %v2268_v12 }
0x11a0   :  { %2269 = vrcp.f32 %v765_v11 }
0x11aa   :  { %v2270_v28 = vpop.eup %2269 }
0x11ab   :  { %v773_v32 = vmul.f32 %v2270_v28, %v771_v31 }
0x120e   :  { %v776_v29 = vpop.permute.xlu0 %775 }
0x120f   :  { %v778_v30 = vmul.f32 %v2270_v28, %v776_v29 }
0x1211   :  { %780 = vrot.lane.b32.xlu0 %v778_v30, %s2419_s23 }
0x1283   :  { %v781_v33 = vpop.permute.xlu0 %780 }
0x1284   :  { %v2682_v13 = vadd.f32 %v781_v33, %v773_v32 }
0x1286   :  { %2271 = vtanh.f32 %v2682_v13 }
0x1290   :  { %v2272_v34 = vpop.eup %2271 }
0x1291   :  { %786 = vrot.lane.b32.xlu1 %v2272_v34, %s2419_s23 }
0x1303   :  { %v787_v36 = vpop.permute.xlu1 %786 }
0x1304   :  { %v789_v37 = vmul.f32 %v2270_v28, %v787_v36 }
0x1306   :  { %791 = vrot.lane.b32.xlu0 %v789_v37, %s2421_s24 }
0x130a   :  { %1072 = vrot.lane.b32.xlu0 %v1063_v39, %s2419_s23 }
0x1378   :  { %v792_v40 = vpop.permute.xlu0 %791 }
0x1379   :  { %794 = vst.msk [vmem:[#allocation2] sm:$0xff] %vm38_vm2, %v792_v40  ;;  %801 = vst.msk [vmem:[#allocation7 + $0x30] sm:$0xff] %vm38_vm2, %v792_v40 }
0x137c   :  { %v1073_v59 = vpop.permute.xlu0 %1072 }
0x1380   :  { %v804_v41 = vld [vmem:[#allocation2] sm:$0xff] }
0x1381   :  { %v805_v42 = vpack.c.bf16 %v804_v41, %v804_v41 }
0x1383   :  { %2123 = vmatmul.mubr.msk.bf16.vlgmr.msra.gmra.mrb[16].mxu1 %vm38_vm2, %v805_v42 }
0x1384   :  { %2139 = vmatpush3.bf16.msra.mxu1 %v2689_v35  ;;  %2142 = vmatprep.mubr.msk.bf16.mxu1 %vm2418_vm3, %v2417_v4 }
0x1385   :  { %2140 = vmatprep.subr.bf16.mxu1 %v2417_v4 }
0x1388   :  { %2141 = vmatpush3.bf16.msra.mxu1 %v2697_v38 }
0x1389   :  { %2146 = vmatprep.subr.bf16.mxu1 %v2417_v4 }
0x138b   :  { %2143 = vmatmul.mubr.msk.bf16.vlgmr.msra.gmra.mrb[20].mxu1 %vm38_vm2, %v1006_v44 }
0x138c   :  { %2147 = vmatpush3.bf16.msra.mxu1 %v2689_v35  ;;  %2150 = vmatprep.mubr.msk.bf16.mxu1 %vm2418_vm3, %v2417_v4 }
0x138d   :  { %2148 = vmatprep.subr.bf16.mxu1 %v2417_v4 }
0x1390   :  { %2149 = vmatpush3.bf16.msra.mxu1 %v2697_v38 }
0x1391   :  { %2162 = vmatprep.subr.bf16.mxu1 %v2417_v4 }
0x1456   :  { %v843_v45 = vpop.f32.mrb[16].mxu1 }
0x1457   :  { %v849_v46 = vadd.f32 %v843_v45, %v157_v6  ;;  %v2124_v10 = vpop.f32.mrb[17].mxu1 }
0x1458   :  { %v846_v47 = vpop.f32.mrb[18].mxu1 }
0x1459   :  { %v2125_v48 = vpop.f32.mrb[19].mxu1  ;;  %v1958_v20 = vmul.f32 -1.442695, %v849_v46 }
0x145e   :  { %v1056_v50 = vpop.f32.mrb[20].mxu1 }
0x145f   :  { %v1062_v51 = vadd.f32 %v1056_v50, %v966_v49  ;;  %v2144_v52 = vpop.f32.mrb[21].mxu1 }
0x1460   :  { %v1059_v53 = vpop.f32.mrb[22].mxu1 }
0x1461   :  { %2273 = vtanh.f32 %v1062_v51  ;;  %v2145_v54 = vpop.f32.mrb[23].mxu1  ;;  %v1968_v15 = vmul.f32 -1.442695, %v1062_v51 }
0x1462   :  { %v897_v54 = vld [vmem:[#allocation7 + $0x30] sm:$0xff] }
0x1463   :  { %2275 = vpow2.f32 %v1968_v15 }
0x146b   :  { %v2274_v55 = vpop.eup %2273 }
0x146c   :  { %1077 = vrot.lane.b32.xlu1 %v2274_v55, %s2419_s23 }
0x146d   :  { %v2276_v14 = vpop.eup %2275 }
0x146e   :  { %v1067_v56 = vadd.f32 1.0, %v2276_v14 }
0x1470   :  { %2277 = vrcp.f32 %v1067_v56 }
0x147a   :  { %v2278_v57 = vpop.eup %2277 }
0x147b   :  { %v1075_v60 = vmul.f32 %v2278_v57, %v1073_v59 }
0x14de   :  { %v1078_v16 = vpop.permute.xlu1 %1077 }
0x14df   :  { %v1080_v58 = vmul.f32 %v2278_v57, %v1078_v16 }
0x14e1   :  { %1082 = vrot.lane.b32.xlu1 %v1080_v58, %s2419_s23 }
0x1553   :  { %v1083_v61 = vpop.permute.xlu1 %1082 }
0x1554   :  { %v1085_v62 = vadd.f32 %v1083_v61, %v1075_v60 }
0x1556   :  { %2279 = vtanh.f32 %v1085_v62 }
0x1557   :  { %2281 = vtanh.f32 %v849_v46 }
0x1558   :  { %2283 = vpow2.f32 %v1958_v20 }
0x1560   :  { %v2280_v63 = vpop.eup %2279 }
0x1561   :  { %1088 = vrot.lane.b32.xlu0 %v2280_v63, %s2419_s23  ;;  %v2282_v3 = vpop.eup %2281 }
0x1562   :  { %v2284_v21 = vpop.eup %2283 }
0x1563   :  { %v854_v27 = vadd.f32 1.0, %v2284_v21 }
0x1565   :  { %796 = vrot.lane.b32.xlu0 %v2682_v13, %s2420_s3 }
0x1569   :  { %1098 = vrot.lane.b32.xlu0 %v1085_v62, %s2420_s3  ;;  %v974_v62 = vadd.f32 %v2674_v22, %v2723_v17 }
0x15d3   :  { %v1089_v0 = vpop.permute.xlu0 %1088 }
0x15d4   :  { %v1091_v1 = vmul.f32 %v2278_v57, %v1089_v0 }
0x15d6   :  { %1093 = vrot.lane.b32.xlu1 %v1091_v1, %s2421_s24 }
0x15d7   :  { %v797_v2 = vpop.permute.xlu0 %796 }
0x15d8   :  { %799 = vst.msk [vmem:[#allocation3] sm:$0xff] %vm38_vm2, %v797_v2 }
0x15da   :  { %864 = vrot.lane.b32.xlu1 %v2282_v3, %s2419_s23 }
0x15db   :  { %v1099_v5 = vpop.permute.xlu0 %1098 }
0x15dc   :  { %1101 = vst.msk [vmem:[#allocation5] sm:$0xff] %vm38_vm2, %v1099_v5 }
0x15df   :  { %v850_v7 = vld [vmem:[#allocation3] sm:$0xff] }
0x15e0   :  { %859 = vrot.lane.b32.xlu0 %v850_v7, %s2419_s23 }
0x15e3   :  { %v1150_v8 = vld [vmem:[#allocation5] sm:$0xff] }
0x15e4   :  { %1159 = vrot.lane.b32.xlu0 %v1150_v8, %s2419_s23 }
0x1648   :  { %v1094_v9 = vpop.permute.xlu1 %1093 }
0x1649   :  { %1096 = vst.msk [vmem:[#allocation4] sm:$0xff] %vm38_vm2, %v1094_v9  ;;  %1102 = vst.msk [vmem:[#allocation7] sm:$0xff] %vm38_vm2, %v1094_v9 }
0x164c   :  { %v865_v31 = vpop.permute.xlu1 %864 }
0x1650   :  { %v1104_v18 = vld [vmem:[#allocation4] sm:$0xff] }
0x1651   :  { %v1105_v19 = vpack.c.bf16 %v1104_v18, %v1104_v18 }
0x1652   :  { %v860_v37 = vpop.permute.xlu0 %859 }
0x1653   :  { %2151 = vmatmul.mubr.msk.bf16.vlgmr.msra.gmra.mrb[24].mxu1 %vm38_vm2, %v1105_v19 }
0x1654   :  { %2163 = vmatpush3.bf16.msra.mxu1 %v2689_v35  ;;  %2166 = vmatprep.mubr.msk.bf16.mxu1 %vm2418_vm3, %v2417_v4 }
0x1655   :  { %2164 = vmatprep.subr.bf16.mxu1 %v2417_v4 }
0x1656   :  { %v1160_v6 = vpop.permute.xlu0 %1159 }
0x1658   :  { %2165 = vmatpush3.bf16.msra.mxu1 %v2697_v38 }
0x1659   :  { %2178 = vmatprep.subr.bf16.mxu1 %v2417_v4 }
0x1726   :  { %v1143_v26 = vpop.f32.mrb[24].mxu1 }
0x1727   :  { %v1149_v12 = vadd.f32 %v1143_v26, %v969_v23  ;;  %v2152_v11 = vpop.f32.mrb[25].mxu1 }
0x1728   :  { %v1146_v28 = vpop.f32.mrb[26].mxu1 }
0x1729   :  { %2285 = vtanh.f32 %v1149_v12  ;;  %v2153_v29 = vpop.f32.mrb[27].mxu1  ;;  %v1970_v13 = vmul.f32 -1.442695, %v1149_v12 }
0x172a   :  { %2287 = vrcp.f32 %v854_v27 }
0x172b   :  { %2289 = vpow2.f32 %v1970_v13 }
0x1733   :  { %v2286_v30 = vpop.eup %2285 }
0x1734   :  { %1164 = vrot.lane.b32.xlu1 %v2286_v30, %s2419_s23  ;;  %v2288_v32 = vpop.eup %2287 }
0x1735   :  { %v867_v33 = vmul.f32 %v2288_v32, %v865_v31  ;;  %v2290_v34 = vpop.eup %2289  ;;  %v862_v41 = vmul.f32 %v2288_v32, %v860_v37 }
0x1736   :  { %v1154_v25 = vadd.f32 1.0, %v2290_v34 }
0x1738   :  { %869 = vrot.lane.b32.xlu1 %v867_v33, %s2419_s23  ;;  %2291 = vrcp.f32 %v1154_v25  ;;  %v977_v33 = vadd.f32 %v2676_v24, %v2723_v17 }
0x1742   :  { %v2292_v36 = vpop.eup %2291 }
0x1743   :  { %v1162_v45 = vmul.f32 %v2292_v36, %v1160_v6 }
0x17a6   :  { %v1165_v39 = vpop.permute.xlu1 %1164 }
0x17a7   :  { %v1167_v40 = vmul.f32 %v2292_v36, %v1165_v39 }
0x17a9   :  { %1169 = vrot.lane.b32.xlu1 %v1167_v40, %s2419_s23 }
0x17aa   :  { %v870_v42 = vpop.permute.xlu1 %869 }
0x17ab   :  { %v2752_v43 = vadd.f32 %v870_v42, %v862_v41 }
0x17ad   :  { %2293 = vtanh.f32 %v2752_v43 }
0x17b7   :  { %v2294_v44 = vpop.eup %2293 }
0x17b8   :  { %875 = vrot.lane.b32.xlu0 %v2294_v44, %s2419_s23 }
0x181b   :  { %v1170_v46 = vpop.permute.xlu1 %1169 }
0x181c   :  { %v1172_v10 = vadd.f32 %v1170_v46, %v1162_v45 }
0x181e   :  { %2295 = vtanh.f32 %v1172_v10 }
0x1828   :  { %v2296_v47 = vpop.eup %2295 }
0x1829   :  { %1175 = vrot.lane.b32.xlu1 %v2296_v47, %s2419_s23 }
0x182a   :  { %v876_v48 = vpop.permute.xlu0 %875 }
0x182b   :  { %v878_v49 = vmul.f32 %v2288_v32, %v876_v48 }
0x182d   :  { %880 = vrot.lane.b32.xlu0 %v878_v49, %s2421_s24 }
0x1831   :  { %1185 = vrot.lane.b32.xlu0 %v1172_v10, %s2420_s3 }
0x189b   :  { %v1176_v50 = vpop.permute.xlu1 %1175 }
0x189c   :  { %v1178_v51 = vmul.f32 %v2292_v36, %v1176_v50 }
0x189e   :  { %1180 = vrot.lane.b32.xlu1 %v1178_v51, %s2421_s24 }
0x189f   :  { %v881_v52 = vpop.permute.xlu0 %880 }
0x18a0   :  { %883 = vst.msk [vmem:[#allocation2] sm:$0xff] %vm38_vm2, %v881_v52  ;;  %890 = vst.msk [vmem:[#allocation7 + $0x38] sm:$0xff] %vm38_vm2, %v881_v52 }
0x18a3   :  { %v1186_v53 = vpop.permute.xlu0 %1185 }
0x18a4   :  { %1188 = vst.msk [vmem:[#allocation5] sm:$0xff] %vm38_vm2, %v1186_v53 }
0x18a7   :  { %v898_v55 = vld [vmem:[#allocation7 + $0x38] sm:$0xff] }
0x18a8   :  { %v902_v15 = vpack.c.bf16 %v898_v55, %v897_v54 }
0x18aa   :  { %2135 = vmatmul.mubr.msk.bf16.gmra.mrb[24].mxu0 %vm38_vm2, %v902_v15 }
0x18ab   :  { %v1237_v14 = vld [vmem:[#allocation5] sm:$0xff]  ;;  %2158 = vmatprep.mubr.msk.bf16.mxu0 %vm2418_vm3, %v2417_v4 }
0x18ac   :  { %1246 = vrot.lane.b32.xlu0 %v1237_v14, %s2419_s23 }
0x1910   :  { %v1181_v56 = vpop.permute.xlu1 %1180 }
0x1911   :  { %1183 = vst.msk [vmem:[#allocation4] sm:$0xff] %vm38_vm2, %v1181_v56  ;;  %1189 = vst.msk [vmem:[#allocation7 + $0x8] sm:$0xff] %vm38_vm2, %v1181_v56 }
0x1918   :  { %v1191_v57 = vld [vmem:[#allocation4] sm:$0xff] }
0x1919   :  { %v1192_v16 = vpack.c.bf16 %v1191_v57, %v1191_v57 }
0x191b   :  { %2159 = vmatmul.mubr.msk.bf16.vlgmr.msra.gmra.mrb[28].mxu0 %vm38_vm2, %v1192_v16 }
0x191c   :  { %2171 = vmatpush3.bf16.msra.mxu0 %v2689_v35  ;;  %2174 = vmatprep.mubr.msk.bf16.mxu0 %vm2418_vm3, %v2417_v4 }
0x191d   :  { %2172 = vmatprep.subr.bf16.mxu0 %v2417_v4 }
0x191e   :  { %v1247_v22 = vpop.permute.xlu0 %1246 }
0x1920   :  { %2173 = vmatpush3.bf16.msra.mxu0 %v2697_v38 }
0x1921   :  { %2186 = vmatprep.subr.bf16.mxu0 %v2417_v4 }
0x197d   :  { %v2776_v58 = vpop.f32.mrb[24].mxu0 }
0x197e   :  { %v2778_v59 = vpop.f32.mrb[25].mxu0 }
0x197f   :  { %v2780_v60 = vpop.f32.mrb[26].mxu0  ;;  %v982_v15 = vadd.f32 %v2723_v17, %v2778_v59 }
0x1980   :  { %v2782_v61 = vpop.f32.mrb[27].mxu0 }
0x19ee   :  { %v1230_v63 = vpop.f32.mrb[28].mxu0 }
0x19ef   :  { %v1236_v0 = vadd.f32 %v1230_v63, %v974_v62  ;;  %v2160_v1 = vpop.f32.mrb[29].mxu0 }
0x19f0   :  { %v1233_v2 = vpop.f32.mrb[30].mxu0 }
0x19f1   :  { %2297 = vtanh.f32 %v1236_v0  ;;  %v2161_v3 = vpop.f32.mrb[31].mxu0  ;;  %v1972_v7 = vmul.f32 -1.442695, %v1236_v0 }
0x19f3   :  { %2299 = vpow2.f32 %v1972_v7 }
0x19fb   :  { %v2298_v5 = vpop.eup %2297 }
0x19fc   :  { %1251 = vrot.lane.b32.xlu1 %v2298_v5, %s2419_s23 }
0x19fd   :  { %v2300_v8 = vpop.eup %2299 }
0x19fe   :  { %v1241_v9 = vadd.f32 1.0, %v2300_v8 }
0x1a00   :  { %2301 = vrcp.f32 %v1241_v9 }
0x1a0a   :  { %v2302_v18 = vpop.eup %2301 }
0x1a0b   :  { %v1249_v21 = vmul.f32 %v2302_v18, %v1247_v22 }
0x1a6e   :  { %v1252_v19 = vpop.permute.xlu1 %1251 }
0x1a6f   :  { %v1254_v20 = vmul.f32 %v2302_v18, %v1252_v19 }
0x1a71   :  { %1256 = vrot.lane.b32.xlu1 %v1254_v20, %s2419_s23 }
0x1ae3   :  { %v1257_v23 = vpop.permute.xlu1 %1256 }
0x1ae4   :  { %v1259_v26 = vadd.f32 %v1257_v23, %v1249_v21 }
0x1ae6   :  { %2303 = vtanh.f32 %v1259_v26 }
0x1af0   :  { %v2304_v27 = vpop.eup %2303 }
0x1af1   :  { %1262 = vrot.lane.b32.xlu0 %v2304_v27, %s2419_s23 }
0x1af5   :  { %1272 = vrot.lane.b32.xlu0 %v1259_v26, %s2420_s3 }
0x1b63   :  { %v1263_v12 = vpop.permute.xlu0 %1262 }
0x1b64   :  { %v1265_v11 = vmul.f32 %v2302_v18, %v1263_v12 }
0x1b66   :  { %1267 = vrot.lane.b32.xlu1 %v1265_v11, %s2421_s24  ;;  %v985_v11 = vadd.f32 %v2723_v17, %v2782_v61 }
0x1b67   :  { %v1273_v28 = vpop.permute.xlu0 %1272 }
0x1b68   :  { %1275 = vst.msk [vmem:[#allocation5] sm:$0xff] %vm38_vm2, %v1273_v28 }
0x1b6f   :  { %v1324_v29 = vld [vmem:[#allocation5] sm:$0xff] }
0x1b70   :  { %1333 = vrot.lane.b32.xlu0 %v1324_v29, %s2419_s23 }
0x1bd8   :  { %v1268_v30 = vpop.permute.xlu1 %1267 }
0x1bd9   :  { %1270 = vst.msk [vmem:[#allocation4] sm:$0xff] %vm38_vm2, %v1268_v30  ;;  %1276 = vst.msk [vmem:[#allocation7 + $0x10] sm:$0xff] %vm38_vm2, %v1268_v30 }
0x1be0   :  { %v1278_v31 = vld [vmem:[#allocation4] sm:$0xff] }
0x1be1   :  { %v1279_v32 = vpack.c.bf16 %v1278_v31, %v1278_v31 }
0x1be2   :  { %v1334_v24 = vpop.permute.xlu0 %1333 }
0x1be3   :  { %2167 = vmatmul.mubr.msk.bf16.vlgmr.msra.gmra.mrb[28].mxu1 %vm38_vm2, %v1279_v32 }
0x1be4   :  { %2179 = vmatpush3.bf16.msra.mxu1 %v2689_v35  ;;  %2182 = vmatprep.mubr.msk.bf16.mxu1 %vm2418_vm3, %v2417_v4 }
0x1be5   :  { %2180 = vmatprep.subr.bf16.mxu1 %v2417_v4 }
0x1be8   :  { %2181 = vmatpush3.bf16.msra.mxu1 %v2697_v38 }
0x1be9   :  { %2194 = vmatprep.subr.bf16.mxu1 %v2417_v4 }
0x1cb6   :  { %v1317_v13 = vpop.f32.mrb[28].mxu1 }
0x1cb7   :  { %v1323_v34 = vadd.f32 %v1317_v13, %v977_v33  ;;  %v2168_v25 = vpop.f32.mrb[29].mxu1 }
0x1cb8   :  { %v1320_v36 = vpop.f32.mrb[30].mxu1 }
0x1cb9   :  { %2305 = vtanh.f32 %v1323_v34  ;;  %v2169_v37 = vpop.f32.mrb[31].mxu1  ;;  %v1974_v40 = vmul.f32 -1.442695, %v1323_v34 }
0x1cbb   :  { %2307 = vpow2.f32 %v1974_v40 }
0x1cc3   :  { %v2306_v39 = vpop.eup %2305 }
0x1cc4   :  { %1338 = vrot.lane.b32.xlu1 %v2306_v39, %s2419_s23 }
0x1cc5   :  { %v2308_v41 = vpop.eup %2307 }
0x1cc6   :  { %v1328_v42 = vadd.f32 1.0, %v2308_v41 }
0x1cc8   :  { %2309 = vrcp.f32 %v1328_v42 }
0x1cd2   :  { %v2310_v44 = vpop.eup %2309 }
0x1cd3   :  { %v1336_v46 = vmul.f32 %v2310_v44, %v1334_v24 }
0x1d36   :  { %v1339_v6 = vpop.permute.xlu1 %1338 }
0x1d37   :  { %v1341_v45 = vmul.f32 %v2310_v44, %v1339_v6 }
0x1d39   :  { %1343 = vrot.lane.b32.xlu1 %v1341_v45, %s2419_s23 }
0x1dab   :  { %v1344_v10 = vpop.permute.xlu1 %1343 }
0x1dac   :  { %v1346_v47 = vadd.f32 %v1344_v10, %v1336_v46  ;;  %v990_v10 = vadd.f32 %v2776_v58, %v2723_v17 }
0x1dae   :  { %2311 = vtanh.f32 %v1346_v47 }
0x1db8   :  { %v2312_v48 = vpop.eup %2311 }
0x1db9   :  { %1349 = vrot.lane.b32.xlu0 %v2312_v48, %s2419_s23 }
0x1dbd   :  { %1359 = vrot.lane.b32.xlu0 %v1346_v47, %s2420_s3 }
0x1e2b   :  { %v1350_v49 = vpop.permute.xlu0 %1349 }
0x1e2c   :  { %v1352_v50 = vmul.f32 %v2310_v44, %v1350_v49 }
0x1e2e   :  { %1354 = vrot.lane.b32.xlu1 %v1352_v50, %s2421_s24 }
0x1e2f   :  { %v1360_v51 = vpop.permute.xlu0 %1359 }
0x1e30   :  { %1362 = vst.msk [vmem:[#allocation5] sm:$0xff] %vm38_vm2, %v1360_v51 }
0x1e37   :  { %v1411_v52 = vld [vmem:[#allocation5] sm:$0xff] }
0x1e38   :  { %1420 = vrot.lane.b32.xlu0 %v1411_v52, %s2419_s23 }
0x1ea0   :  { %v1355_v53 = vpop.permute.xlu1 %1354 }
0x1ea1   :  { %1357 = vst.msk [vmem:[#allocation4] sm:$0xff] %vm38_vm2, %v1355_v53  ;;  %1363 = vst.msk [vmem:[#allocation7 + $0x18] sm:$0xff] %vm38_vm2, %v1355_v53 }
0x1ea8   :  { %v1365_v54 = vld [vmem:[#allocation4] sm:$0xff] }
0x1ea9   :  { %v1366_v55 = vpack.c.bf16 %v1365_v54, %v1365_v54 }
0x1eaa   :  { %v1421_v59 = vpop.permute.xlu0 %1420 }
0x1eab   :  { %2175 = vmatmul.mubr.msk.bf16.vlgmr.msra.gmra.mrb[32].mxu0 %vm38_vm2, %v1366_v55 }
0x1eac   :  { %2187 = vmatpush3.bf16.msra.mxu0 %v2689_v35  ;;  %2190 = vmatprep.mubr.msk.bf16.mxu0 %vm2418_vm3, %v2417_v4 }
0x1ead   :  { %2188 = vmatprep.subr.bf16.mxu0 %v2417_v4 }
0x1eb0   :  { %2189 = vmatpush3.bf16.msra.mxu0 %v2697_v38 }
0x1f7e   :  { %v1404_v14 = vpop.f32.mrb[32].mxu0 }
0x1f7f   :  { %v1410_v56 = vadd.f32 %v1404_v14, %v982_v15  ;;  %v2176_v57 = vpop.f32.mrb[33].mxu0 }
0x1f80   :  { %v1407_v16 = vpop.f32.mrb[34].mxu0 }
0x1f81   :  { %2313 = vtanh.f32 %v1410_v56  ;;  %v2177_v62 = vpop.f32.mrb[35].mxu0  ;;  %v1976_v0 = vmul.f32 -1.442695, %v1410_v56 }
0x1f83   :  { %2315 = vpow2.f32 %v1976_v0 }
0x1f8b   :  { %v2314_v63 = vpop.eup %2313 }
0x1f8c   :  { %1425 = vrot.lane.b32.xlu1 %v2314_v63, %s2419_s23 }
0x1f8d   :  { %v2316_v1 = vpop.eup %2315 }
0x1f8e   :  { %v1415_v2 = vadd.f32 1.0, %v2316_v1 }
0x1f90   :  { %2317 = vrcp.f32 %v1415_v2 }
0x1f9a   :  { %v2318_v3 = vpop.eup %2317 }
0x1f9b   :  { %v1423_v8 = vmul.f32 %v2318_v3, %v1421_v59 }
0x1ffe   :  { %v1426_v5 = vpop.permute.xlu1 %1425 }
0x1fff   :  { %v1428_v7 = vmul.f32 %v2318_v3, %v1426_v5 }
0x2001   :  { %1430 = vrot.lane.b32.xlu1 %v1428_v7, %s2419_s23 }
0x2073   :  { %v1431_v9 = vpop.permute.xlu1 %1430 }
0x2074   :  { %v1433_v18 = vadd.f32 %v1431_v9, %v1423_v8  ;;  %v993_v8 = vadd.f32 %v2780_v60, %v2723_v17 }
0x2076   :  { %2319 = vtanh.f32 %v1433_v18 }
0x2080   :  { %v2320_v19 = vpop.eup %2319 }
0x2081   :  { %1436 = vrot.lane.b32.xlu0 %v2320_v19, %s2419_s23 }
0x2085   :  { %1446 = vrot.lane.b32.xlu0 %v1433_v18, %s2420_s3 }
0x20f3   :  { %v1437_v20 = vpop.permute.xlu0 %1436 }
0x20f4   :  { %v1439_v22 = vmul.f32 %v2318_v3, %v1437_v20 }
0x20f6   :  { %1441 = vrot.lane.b32.xlu1 %v1439_v22, %s2421_s24 }
0x20f7   :  { %v1447_v21 = vpop.permute.xlu0 %1446 }
0x20f8   :  { %1449 = vst.msk [vmem:[#allocation5] sm:$0xff] %vm38_vm2, %v1447_v21 }
0x20ff   :  { %v1498_v23 = vld [vmem:[#allocation5] sm:$0xff] }
0x2100   :  { %1507 = vrot.lane.b32.xlu0 %v1498_v23, %s2419_s23 }
0x2168   :  { %v1442_v26 = vpop.permute.xlu1 %1441 }
0x2169   :  { %1444 = vst.msk [vmem:[#allocation4] sm:$0xff] %vm38_vm2, %v1442_v26  ;;  %1450 = vst.msk [vmem:[#allocation7 + $0x20] sm:$0xff] %vm38_vm2, %v1442_v26 }
0x2170   :  { %v1452_v27 = vld [vmem:[#allocation4] sm:$0xff] }
0x2171   :  { %v1453_v12 = vpack.c.bf16 %v1452_v27, %v1452_v27 }
0x2172   :  { %v1508_v61 = vpop.permute.xlu0 %1507 }
0x2173   :  { %2183 = vmatmul.mubr.msk.bf16.vlgmr.msra.gmra.mrb[32].mxu1 %vm38_vm2, %v1453_v12 }
0x2174   :  { %2195 = vmatpush3.bf16.msra.mxu1 %v2689_v35  ;;  %2198 = vmatprep.mubr.msk.bf16.mxu1 %vm2418_vm3, %v2417_v4 }
0x2175   :  { %2196 = vmatprep.subr.bf16.mxu1 %v2417_v4 }
0x2178   :  { %2197 = vmatpush3.bf16.msra.mxu1 %v2697_v38 }
0x2246   :  { %v1491_v28 = vpop.f32.mrb[32].mxu1 }
0x2247   :  { %v1497_v29 = vadd.f32 %v1491_v28, %v985_v11  ;;  %v2184_v30 = vpop.f32.mrb[33].mxu1 }
0x2248   :  { %v1494_v31 = vpop.f32.mrb[34].mxu1 }
0x2249   :  { %2321 = vtanh.f32 %v1497_v29  ;;  %v2185_v32 = vpop.f32.mrb[35].mxu1  ;;  %v1978_v35 = vmul.f32 -1.442695, %v1497_v29 }
0x224a   :  { %v1712_v32 = vld [vmem:[#allocation7] sm:$0xff] }
0x224b   :  { %2323 = vpow2.f32 %v1978_v35  ;;  %v1714_v35 = vld [vmem:[#allocation7 + $0x10] sm:$0xff] }
0x2253   :  { %v2322_v33 = vpop.eup %2321 }
0x2254   :  { %1512 = vrot.lane.b32.xlu1 %v2322_v33, %s2419_s23  ;;  %v1720_v33 = vsel %vm38_vm2, %v1712_v32, 0.0 }
0x2255   :  { %v2324_v13 = vpop.eup %2323 }
0x2256   :  { %v1502_v34 = vadd.f32 1.0, %v2324_v13  ;;  %v1726_v13 = vsel %vm38_vm2, %v1714_v35, 0.0 }
0x2258   :  { %2325 = vrcp.f32 %v1502_v34  ;;  %v1715_v34 = vld [vmem:[#allocation7 + $0x18] sm:$0xff] }
0x2262   :  { %v2326_v4 = vpop.eup %2325 }
0x2263   :  { %v1510_v36 = vmul.f32 %v2326_v4, %v1508_v61 }
0x22c6   :  { %v1513_v25 = vpop.permute.xlu1 %1512 }
0x22c7   :  { %v1515_v38 = vmul.f32 %v2326_v4, %v1513_v25 }
0x22c9   :  { %1517 = vrot.lane.b32.xlu1 %v1515_v38, %s2419_s23 }
0x233b   :  { %v1518_v37 = vpop.permute.xlu1 %1517 }
0x233c   :  { %v1520_v39 = vadd.f32 %v1518_v37, %v1510_v36  ;;  %v1713_v37 = vld [vmem:[#allocation7 + $0x8] sm:$0xff] }
0x233e   :  { %2327 = vtanh.f32 %v1520_v39 }
0x2348   :  { %v2328_v40 = vpop.eup %2327 }
0x2349   :  { %1523 = vrot.lane.b32.xlu0 %v2328_v40, %s2419_s23  ;;  %v1716_v40 = vld [vmem:[#allocation7 + $0x20] sm:$0xff] }
0x234d   :  { %1533 = vrot.lane.b32.xlu0 %v1520_v39, %s2420_s3  ;;  %v1723_v39 = vsel %vm38_vm2, %v1713_v37, 0.0 }
0x23bb   :  { %v1524_v41 = vpop.permute.xlu0 %1523 }
0x23bc   :  { %v1526_v42 = vmul.f32 %v2326_v4, %v1524_v41  ;;  %v1729_v4 = vsel %vm38_vm2, %v1715_v34, 0.0  ;;  %v1732_v41 = vsel %vm38_vm2, %v1716_v40, 0.0 }
0x23be   :  { %1528 = vrot.lane.b32.xlu1 %v1526_v42, %s2421_s24 }
0x23bf   :  { %v1534_v44 = vpop.permute.xlu0 %1533 }
0x23c0   :  { %1536 = vst.msk [vmem:[#allocation5] sm:$0xff] %vm38_vm2, %v1534_v44 }
0x23c7   :  { %v1585_v6 = vld [vmem:[#allocation5] sm:$0xff] }
0x23c8   :  { %1594 = vrot.lane.b32.xlu0 %v1585_v6, %s2419_s23 }
0x2430   :  { %v1529_v45 = vpop.permute.xlu1 %1528 }
0x2431   :  { %1531 = vst.msk [vmem:[#allocation4] sm:$0xff] %vm38_vm2, %v1529_v45  ;;  %1537 = vst.msk [vmem:[#allocation7 + $0x28] sm:$0xff] %vm38_vm2, %v1529_v45 }
0x2438   :  { %v1539_v24 = vld [vmem:[#allocation4] sm:$0xff]  ;;  %v1717_v25 = vld [vmem:[#allocation7 + $0x28] sm:$0xff] }
0x2439   :  { %v1540_v46 = vpack.c.bf16 %v1539_v24, %v1539_v24  ;;  %v1735_v38 = vsel %vm38_vm2, %v1717_v25, 0.0 }
0x243a   :  { %v1595_v58 = vpop.permute.xlu0 %1594 }
0x243b   :  { %2191 = vmatmul.mubr.msk.bf16.vlgmr.msra.gmra.mrb[36].mxu0 %vm38_vm2, %v1540_v46 }
0x250e   :  { %v1578_v47 = vpop.f32.mrb[36].mxu0 }
0x250f   :  { %v1584_v48 = vadd.f32 %v1578_v47, %v990_v10  ;;  %v2192_v49 = vpop.f32.mrb[37].mxu0 }
0x2510   :  { %v1581_v50 = vpop.f32.mrb[38].mxu0 }
0x2511   :  { %2329 = vtanh.f32 %v1584_v48  ;;  %v2193_v51 = vpop.f32.mrb[39].mxu0  ;;  %v1980_v53 = vmul.f32 -1.442695, %v1584_v48 }
0x2513   :  { %2331 = vpow2.f32 %v1980_v53 }
0x251b   :  { %v2330_v52 = vpop.eup %2329 }
0x251c   :  { %1599 = vrot.lane.b32.xlu1 %v2330_v52, %s2419_s23 }
0x251d   :  { %v2332_v54 = vpop.eup %2331 }
0x251e   :  { %v1589_v55 = vadd.f32 1.0, %v2332_v54 }
0x2520   :  { %2333 = vrcp.f32 %v1589_v55 }
0x252a   :  { %v2334_v15 = vpop.eup %2333 }
0x252b   :  { %v1597_v57 = vmul.f32 %v2334_v15, %v1595_v58 }
0x258e   :  { %v1600_v14 = vpop.permute.xlu1 %1599 }
0x258f   :  { %v1602_v56 = vmul.f32 %v2334_v15, %v1600_v14 }
0x2591   :  { %1604 = vrot.lane.b32.xlu1 %v1602_v56, %s2419_s23 }
0x2603   :  { %v1605_v16 = vpop.permute.xlu1 %1604 }
0x2604   :  { %v1607_v62 = vadd.f32 %v1605_v16, %v1597_v57 }
0x2606   :  { %2335 = vtanh.f32 %v1607_v62 }
0x2610   :  { %v2336_v63 = vpop.eup %2335 }
0x2611   :  { %1610 = vrot.lane.b32.xlu0 %v2336_v63, %s2419_s23 }
0x2615   :  { %1620 = vrot.lane.b32.xlu0 %v1607_v62, %s2420_s3 }
0x2683   :  { %v1611_v0 = vpop.permute.xlu0 %1610 }
0x2684   :  { %v1613_v1 = vmul.f32 %v2334_v15, %v1611_v0 }
0x2686   :  { %1615 = vrot.lane.b32.xlu1 %v1613_v1, %s2421_s24 }
0x2687   :  { %v1621_v2 = vpop.permute.xlu0 %1620 }
0x2688   :  { %1623 = vst.msk [vmem:[#allocation5] sm:$0xff] %vm38_vm2, %v1621_v2 }
0x268f   :  { %v1672_v3 = vld [vmem:[#allocation5] sm:$0xff] }
0x2690   :  { %1681 = vrot.lane.b32.xlu0 %v1672_v3, %s2419_s23 }
0x26f8   :  { %v1616_v5 = vpop.permute.xlu1 %1615 }
0x26f9   :  { %1618 = vst.msk [vmem:[#allocation4] sm:$0xff] %vm38_vm2, %v1616_v5  ;;  %1624 = vst.msk [vmem:[#allocation7 + $0x30] sm:$0xff] %vm38_vm2, %v1616_v5 }
0x2700   :  { %v1626_v7 = vld [vmem:[#allocation4] sm:$0xff] }
0x2701   :  { %v1627_v59 = vpack.c.bf16 %v1626_v7, %v1626_v7  ;;  %v1718_v42 = vld [vmem:[#allocation7 + $0x30] sm:$0xff] }
0x2702   :  { %v1682_v17 = vpop.permute.xlu0 %1681  ;;  %v1738_v44 = vsel %vm38_vm2, %v1718_v42, 0.0 }
0x2703   :  { %2199 = vmatmul.mubr.msk.bf16.vlgmr.msra.gmra.mrb[36].mxu1 %vm38_vm2, %v1627_v59 }
0x27d6   :  { %v1665_v9 = vpop.f32.mrb[36].mxu1 }
0x27d7   :  { %v1671_v18 = vadd.f32 %v1665_v9, %v993_v8  ;;  %v2200_v19 = vpop.f32.mrb[37].mxu1 }
0x27d8   :  { %v1668_v20 = vpop.f32.mrb[38].mxu1 }
0x27d9   :  { %2337 = vtanh.f32 %v1671_v18  ;;  %v2201_v22 = vpop.f32.mrb[39].mxu1  ;;  %v1982_v23 = vmul.f32 -1.442695, %v1671_v18 }
0x27db   :  { %2339 = vpow2.f32 %v1982_v23 }
0x27e3   :  { %v2338_v21 = vpop.eup %2337 }
0x27e4   :  { %1686 = vrot.lane.b32.xlu1 %v2338_v21, %s2419_s23 }
0x27e5   :  { %v2340_v26 = vpop.eup %2339 }
0x27e6   :  { %v1676_v27 = vadd.f32 1.0, %v2340_v26 }
0x27e8   :  { %2341 = vrcp.f32 %v1676_v27 }
0x27f2   :  { %v2342_v12 = vpop.eup %2341 }
0x27f3   :  { %v1684_v60 = vmul.f32 %v2342_v12, %v1682_v17 }
0x2856   :  { %v1687_v11 = vpop.permute.xlu1 %1686 }
0x2857   :  { %v1689_v28 = vmul.f32 %v2342_v12, %v1687_v11 }
0x2859   :  { %1691 = vrot.lane.b32.xlu1 %v1689_v28, %s2419_s23 }
0x28cb   :  { %v1692_v29 = vpop.permute.xlu1 %1691 }
0x28cc   :  { %v2864_v30 = vadd.f32 %v1692_v29, %v1684_v60 }
0x28ce   :  { %2343 = vtanh.f32 %v2864_v30 }
0x28d8   :  { %v2344_v31 = vpop.eup %2343 }
0x28d9   :  { %1697 = vrot.lane.b32.xlu0 %v2344_v31, %s2419_s23  ;;  %v2914_v31 = vld [vmem:[%s2980_s7] ss:$0 sm:$0xff]  ;;  %s2422_s7 = smov [#allocation8]  }
0x28f8   :  { %1721 = vadd.xlane.f32.xlu0 %v1720_v33  ;;  %v2919_v33 = vld [vmem:[%s2981_s8] ss:$0 sm:$0xff]  ;;  %s1924_s8 = sshll.u32 %s2422_s7, 4  ;;  %s1925_s8 = int_to_ptr.vmem [resolvable:$true] %s1924_s8 }
0x28f9   :  { %s2393_s21 = scalar_lea.vmem %s1925_s8, 1024  ;;  %p2398_p1 = scmp.lt.s32.totalorder %s1925_s8, %s1925_s8 }
0x28fa   :  { %p2394_p0 = scmp.ne.s32.totalorder %s1925_s8, %s2393_s21  ;;  %p2399_p2 = scmp.lt.s32.totalorder %s2393_s21, %s2393_s21 }
0x28fc   :  { %1727 = vadd.xlane.f32.xlu0 %v1726_v13  ;;  %p2400_p3 = por %p2399_p2, %p2398_p1 }
0x28fe   :  { %p2401_p4 = pnand %p2400_p3, %p2394_p0 }
0x2900   :  { %1730 = vadd.xlane.f32.xlu0 %v1729_v4 }
0x2904   :  { %1736 = vadd.xlane.f32.xlu0 %v1735_v38 }
0x294b   :  { %v1698_v61 = vpop.permute.xlu0 %1697 }
0x294c   :  { %v1700_v36 = vmul.f32 %v2342_v12, %v1698_v61 }
0x294e   :  { %1702 = vrot.lane.b32.xlu1 %v1700_v36, %s2421_s24 }
0x2972   :  { %1724 = vadd.xlane.f32.xlu1 %v1723_v39 }
0x2976   :  { %1733 = vadd.xlane.f32.xlu1 %v1732_v41 }
0x297a   :  { %1739 = vadd.xlane.f32.xlu1 %v1738_v44 }
0x2985   :  { %v1722_v6 = vpop.xlane.xlu0 %1721 }
0x2986   :  { %v1745_v45 = vmul.f32 0.03125, %v1722_v6 }
0x2988   :  { %v1753_v24 = vsub.f32 %v1712_v32, %v1745_v45 }
0x2989   :  { %v1728_v46 = vpop.xlane.xlu0 %1727 }
0x298a   :  { %v1747_v10 = vmul.f32 0.03125, %v1728_v46  ;;  %v1761_v47 = vmul.f32 %v1753_v24, %v1753_v24 }
0x298c   :  { %v1755_v48 = vsub.f32 %v1714_v35, %v1747_v10  ;;  %v1769_v49 = vsel %vm38_vm2, %v1761_v47, 0.0 }
0x298d   :  { %1770 = vadd.xlane.f32.xlu1 %v1769_v49  ;;  %v1731_v55 = vpop.xlane.xlu0 %1730 }
0x298e   :  { %v1763_v50 = vmul.f32 %v1755_v48, %v1755_v48  ;;  %v1748_v15 = vmul.f32 0.03125, %v1731_v55 }
0x2990   :  { %v1775_v51 = vsel %vm38_vm2, %v1763_v50, 0.0  ;;  %v2884_v57 = vsub.f32 %v1715_v34, %v1748_v15 }
0x2991   :  { %1776 = vadd.xlane.f32.xlu1 %v1775_v51  ;;  %v1737_v14 = vpop.xlane.xlu0 %1736 }
0x2992   :  { %v1750_v16 = vmul.f32 0.03125, %v1737_v14  ;;  %v1764_v7 = vmul.f32 %v2884_v57, %v2884_v57 }
0x2994   :  { %v2890_v2 = vsub.f32 %v1717_v25, %v1750_v16  ;;  %v1778_v20 = vsel %vm38_vm2, %v1764_v7, 0.0 }
0x2996   :  { %v1766_v22 = vmul.f32 %v2890_v2, %v2890_v2 }
0x2998   :  { %v1784_v26 = vsel %vm38_vm2, %v1766_v22, 0.0 }
0x29c0   :  { %v1703_v52 = vpop.permute.xlu1 %1702 }
0x29c1   :  { %1705 = vst.msk [vmem:[#allocation4] sm:$0xff] %vm38_vm2, %v1703_v52  ;;  %1711 = vst.msk [vmem:[#allocation7 + $0x38] sm:$0xff] %vm38_vm2, %v1703_v52 }
0x29c8   :  { %v2880_v53 = vld [vmem:[#allocation7 + $0x38] sm:$0xff] }
0x29c9   :  { %v1741_v54 = vsel %vm38_vm2, %v2880_v53, 0.0 }
0x29ca   :  { %1742 = vadd.xlane.f32.xlu0 %v1741_v54 }
0x29ff   :  { %v1725_v56 = vpop.xlane.xlu1 %1724 }
0x2a00   :  { %v1746_v58 = vmul.f32 0.03125, %v1725_v56 }
0x2a02   :  { %v2886_v62 = vsub.f32 %v1713_v37, %v1746_v58 }
0x2a03   :  { %v1734_v63 = vpop.xlane.xlu1 %1733 }
0x2a04   :  { %v1749_v0 = vmul.f32 0.03125, %v1734_v63  ;;  %v1762_v1 = vmul.f32 %v2886_v62, %v2886_v62 }
0x2a06   :  { %v2892_v3 = vsub.f32 %v1716_v40, %v1749_v0  ;;  %v1772_v5 = vsel %vm38_vm2, %v1762_v1, 0.0 }
0x2a07   :  { %1773 = vadd.xlane.f32.xlu0 %v1772_v5  ;;  %v1740_v59 = vpop.xlane.xlu1 %1739 }
0x2a08   :  { %v1751_v8 = vmul.f32 0.03125, %v1740_v59  ;;  %v1765_v9 = vmul.f32 %v2892_v3, %v2892_v3 }
0x2a0a   :  { %v2899_v18 = vsub.f32 %v1718_v42, %v1751_v8  ;;  %v1781_v19 = vsel %vm38_vm2, %v1765_v9, 0.0 }
0x2a0b   :  { %1782 = vadd.xlane.f32.xlu1 %v1781_v19  ;;  %1779 = vadd.xlane.f32.xlu0 %v1778_v20 }
0x2a0c   :  { %v1767_v21 = vmul.f32 %v2899_v18, %v2899_v18 }
0x2a0e   :  { %v1787_v23 = vsel %vm38_vm2, %v1767_v21, 0.0 }
0x2a0f   :  { %1788 = vadd.xlane.f32.xlu1 %v1787_v23  ;;  %1785 = vadd.xlane.f32.xlu0 %v1784_v26 }
0x2a1a   :  { %v1771_v27 = vpop.xlane.xlu1 %1770 }
0x2a1b   :  { %v1793_v12 = vmul.f32 0.03125, %v1771_v27 }
0x2a1d   :  { %v1803_v11 = vadd.f32 1e-05, %v1793_v12 }
0x2a1e   :  { %v1777_v28 = vpop.xlane.xlu1 %1776 }
0x2a1f   :  { %2345 = vrsqrt.f32 %v1803_v11  ;;  %v1795_v17 = vmul.f32 0.03125, %v1777_v28 }
0x2a20   :  { %885 = vrot.lane.b32.xlu1 %v2752_v43, %s2420_s3 }
0x2a21   :  { %v1805_v60 = vadd.f32 1e-05, %v1795_v17 }
0x2a23   :  { %2347 = vrsqrt.f32 %v1805_v60 }
0x2a29   :  { %v2346_v29 = vpop.eup %2345 }
0x2a2a   :  { %v1819_v32 = vmul.f32 %v2346_v29, %v1753_v24 }
0x2a2c   :  { %v1833_v35 = vmul.f32 %v2914_v31, %v1819_v32 }
0x2a2d   :  { %v2348_v13 = vpop.eup %2347 }
0x2a2e   :  { %v1847_v34 = vadd.f32 %v2919_v33, %v1833_v35  ;;  %v1821_v43 = vmul.f32 %v2348_v13, %v1755_v48 }
0x2a30   :  { %v1985_v4 = vmul.f32 -1.442695, %v1847_v34  ;;  %v1835_v25 = vmul.f32 %v2914_v31, %v1821_v43 }
0x2a32   :  { %2349 = vpow2.f32 %v1985_v4  ;;  %v1849_v38 = vadd.f32 %v2919_v33, %v1835_v25 }
0x2a34   :  { %v1987_v61 = vmul.f32 -1.442695, %v1849_v38 }
0x2a36   :  { %2351 = vpow2.f32 %v1987_v61 }
0x2a3c   :  { %v2350_v36 = vpop.eup %2349 }
0x2a3d   :  { %v1879_v37 = vadd.f32 1.0, %v2350_v36 }
0x2a3f   :  { %2353 = vrcp.f32 %v1879_v37 }
0x2a40   :  { %v2352_v39 = vpop.eup %2351 }
0x2a41   :  { %v1881_v40 = vadd.f32 1.0, %v2352_v39 }
0x2a43   :  { %2355 = vrcp.f32 %v1881_v40 }
0x2a49   :  { %v2354_v41 = vpop.eup %2353 }
0x2a4a   :  { %v1903_v42 = vmul.f32 %v2354_v41, %v1847_v34 }
0x2a4c   :  { %1911 = vst.msk [vmem:[#allocation8] sm:$0xff] %vm38_vm2, %v1903_v42 }
0x2a4d   :  { %v2356_v44 = vpop.eup %2355 }
0x2a4e   :  { %v1905_v6 = vmul.f32 %v2356_v44, %v1849_v38 }
0x2a50   :  { %1913 = vst.msk [vmem:[#allocation8 + $0x10] sm:$0xff] %vm38_vm2, %v1905_v6 }
0x2a57   :  { %v1743_v45 = vpop.xlane.xlu0 %1742 }
0x2a58   :  { %v1752_v24 = vmul.f32 0.03125, %v1743_v45 }
0x2a5a   :  { %v2928_v46 = vsub.f32 %v2880_v53, %v1752_v24 }
0x2a5c   :  { %v1768_v10 = vmul.f32 %v2928_v46, %v2928_v46 }
0x2a5e   :  { %v1790_v47 = vsel %vm38_vm2, %v1768_v10, 0.0 }
0x2a5f   :  { %1791 = vadd.xlane.f32.xlu0 %v1790_v47 }
0x2a75   :  { %1707 = vrot.lane.b32.xlu0 %v2864_v30, %s2420_s3 }
0x2a94   :  { %v1774_v48 = vpop.xlane.xlu0 %1773 }
0x2a95   :  { %v1794_v49 = vmul.f32 0.03125, %v1774_v48 }
0x2a97   :  { %v1804_v50 = vadd.f32 1e-05, %v1794_v49 }
0x2a98   :  { %v1783_v51 = vpop.xlane.xlu1 %1782  ;;  %v1780_v52 = vpop.xlane.xlu0 %1779 }
0x2a99   :  { %2357 = vrsqrt.f32 %v1804_v50  ;;  %v1797_v54 = vmul.f32 0.03125, %v1783_v51  ;;  %v1796_v55 = vmul.f32 0.03125, %v1780_v52 }
0x2a9b   :  { %v1807_v15 = vadd.f32 1e-05, %v1797_v54  ;;  %v1806_v53 = vadd.f32 1e-05, %v1796_v55 }
0x2a9c   :  { %v1789_v14 = vpop.xlane.xlu1 %1788  ;;  %v1786_v56 = vpop.xlane.xlu0 %1785 }
0x2a9d   :  { %2359 = vrsqrt.f32 %v1807_v15  ;;  %v1799_v58 = vmul.f32 0.03125, %v1789_v14  ;;  %v1798_v16 = vmul.f32 0.03125, %v1786_v56 }
0x2a9e   :  { %2361 = vrsqrt.f32 %v1806_v53 }
0x2a9f   :  { %v1809_v63 = vadd.f32 1e-05, %v1799_v58  ;;  %v1808_v0 = vadd.f32 1e-05, %v1798_v16 }
0x2aa0   :  { %v886_v1 = vpop.permute.xlu1 %885 }
0x2aa1   :  { %2363 = vrsqrt.f32 %v1809_v63  ;;  %888 = vst.msk [vmem:[#allocation3] sm:$0xff] %vm38_vm2, %v886_v1 }
0x2aa2   :  { %2365 = vrsqrt.f32 %v1808_v0 }
0x2aa3   :  { %v2358_v30 = vpop.eup %2357 }
0x2aa4   :  { %v1820_v5 = vmul.f32 %v2358_v30, %v2886_v62 }
0x2aa6   :  { %v1834_v7 = vmul.f32 %v2914_v31, %v1820_v5 }
0x2aa7   :  { %v2360_v59 = vpop.eup %2359 }
0x2aa8   :  { %v2362_v8 = vpop.eup %2361  ;;  %v1848_v9 = vadd.f32 %v2919_v33, %v1834_v7  ;;  %v1823_v19 = vmul.f32 %v2360_v59, %v2892_v3 }
0x2aa9   :  { %v1822_v20 = vmul.f32 %v2362_v8, %v2884_v57 }
0x2aaa   :  { %v1986_v22 = vmul.f32 -1.442695, %v1848_v9  ;;  %v1837_v21 = vmul.f32 %v2914_v31, %v1823_v19 }
0x2aab   :  { %v2364_v23 = vpop.eup %2363  ;;  %v1836_v26 = vmul.f32 %v2914_v31, %v1822_v20 }
0x2aac   :  { %v2366_v27 = vpop.eup %2365  ;;  %2367 = vpow2.f32 %v1986_v22  ;;  %v1851_v62 = vadd.f32 %v2919_v33, %v1837_v21  ;;  %v1825_v12 = vmul.f32 %v2364_v23, %v2899_v18 }
0x2aad   :  { %v1850_v11 = vadd.f32 %v2919_v33, %v1836_v26  ;;  %v1824_v28 = vmul.f32 %v2366_v27, %v2890_v2 }
0x2aae   :  { %v1989_v17 = vmul.f32 -1.442695, %v1851_v62  ;;  %v1839_v3 = vmul.f32 %v2914_v31, %v1825_v12 }
0x2aaf   :  { %v1988_v57 = vmul.f32 -1.442695, %v1850_v11  ;;  %v1838_v60 = vmul.f32 %v2914_v31, %v1824_v28 }
0x2ab0   :  { %2369 = vpow2.f32 %v1989_v17  ;;  %v1853_v29 = vadd.f32 %v2919_v33, %v1839_v3 }
0x2ab1   :  { %2371 = vpow2.f32 %v1988_v57  ;;  %v1852_v32 = vadd.f32 %v2919_v33, %v1838_v60 }
0x2ab2   :  { %v1991_v35 = vmul.f32 -1.442695, %v1853_v29 }
0x2ab3   :  { %v1990_v13 = vmul.f32 -1.442695, %v1852_v32 }
0x2ab4   :  { %2373 = vpow2.f32 %v1991_v35 }
0x2ab5   :  { %2375 = vpow2.f32 %v1990_v13 }
0x2ab6   :  { %v2368_v18 = vpop.eup %2367 }
0x2ab7   :  { %v1880_v34 = vadd.f32 1.0, %v2368_v18 }
0x2ab9   :  { %2377 = vrcp.f32 %v1880_v34 }
0x2aba   :  { %v2370_v2 = vpop.eup %2369 }
0x2abb   :  { %v2372_v43 = vpop.eup %2371  ;;  %v1883_v4 = vadd.f32 1.0, %v2370_v2 }
0x2abc   :  { %v1882_v25 = vadd.f32 1.0, %v2372_v43 }
0x2abd   :  { %2379 = vrcp.f32 %v1883_v4 }
0x2abe   :  { %v2374_v38 = vpop.eup %2373  ;;  %2381 = vrcp.f32 %v1882_v25 }
0x2abf   :  { %v2376_v61 = vpop.eup %2375  ;;  %v1885_v36 = vadd.f32 1.0, %v2374_v38 }
0x2ac0   :  { %v1884_v37 = vadd.f32 1.0, %v2376_v61 }
0x2ac1   :  { %2383 = vrcp.f32 %v1885_v36 }
0x2ac2   :  { %2385 = vrcp.f32 %v1884_v37 }
0x2ac3   :  { %v2378_v39 = vpop.eup %2377 }
0x2ac4   :  { %v1904_v40 = vmul.f32 %v2378_v39, %v1848_v9 }
0x2ac6   :  { %1912 = vst.msk [vmem:[#allocation8 + $0x8] sm:$0xff] %vm38_vm2, %v1904_v40 }
0x2ac7   :  { %v2380_v41 = vpop.eup %2379 }
0x2ac8   :  { %v2382_v42 = vpop.eup %2381  ;;  %v1907_v44 = vmul.f32 %v2380_v41, %v1851_v62 }
0x2ac9   :  { %v1906_v6 = vmul.f32 %v2382_v42, %v1850_v11 }
0x2aca   :  { %1915 = vst.msk [vmem:[#allocation8 + $0x20] sm:$0xff] %vm38_vm2, %v1907_v44 }
0x2acb   :  { %v2384_v45 = vpop.eup %2383  ;;  %1914 = vst.msk [vmem:[#allocation8 + $0x18] sm:$0xff] %vm38_vm2, %v1906_v6 }
0x2acc   :  { %v2386_v24 = vpop.eup %2385  ;;  %v1909_v10 = vmul.f32 %v2384_v45, %v1853_v29 }
0x2acd   :  { %v1908_v47 = vmul.f32 %v2386_v24, %v1852_v32 }
0x2ace   :  { %1917 = vst.msk [vmem:[#allocation8 + $0x30] sm:$0xff] %vm38_vm2, %v1909_v10 }
0x2acf   :  { %1916 = vst.msk [vmem:[#allocation8 + $0x28] sm:$0xff] %vm38_vm2, %v1908_v47 }
0x2aec   :  { %v1792_v48 = vpop.xlane.xlu0 %1791 }
0x2aed   :  { %v1800_v49 = vmul.f32 0.03125, %v1792_v48 }
0x2aef   :  { %v1810_v50 = vadd.f32 1e-05, %v1800_v49 }
0x2af0   :  { %v1708_v51 = vpop.permute.xlu0 %1707 }
0x2af1   :  { %2387 = vrsqrt.f32 %v1810_v50  ;;  %1710 = vst.msk [vmem:[#allocation5] sm:$0xff] %vm38_vm2, %v1708_v51 }
0x2afb   :  { %v2388_v52 = vpop.eup %2387 }
0x2afc   :  { %v1826_v54 = vmul.f32 %v2388_v52, %v2928_v46 }
0x2afe   :  { %v1840_v55 = vmul.f32 %v2914_v31, %v1826_v54 }
0x2b00   :  { %v1854_v15 = vadd.f32 %v2919_v33, %v1840_v55 }
0x2b02   :  { %v1992_v53 = vmul.f32 -1.442695, %v1854_v15 }
0x2b04   :  { %2389 = vpow2.f32 %v1992_v53 }
0x2b0e   :  { %v2390_v14 = vpop.eup %2389 }
0x2b0f   :  { %v1886_v56 = vadd.f32 1.0, %v2390_v14 }
0x2b11   :  { %2391 = vrcp.f32 %v1886_v56 }
0x2b1b   :  { %v2392_v58 = vpop.eup %2391 }
0x2b1c   :  { %v1910_v16 = vmul.f32 %v2392_v58, %v1854_v15 }
0x2b1e   :  { %1918 = vst.msk [vmem:[#allocation8 + $0x38] sm:$0xff] %vm38_vm2, %v1910_v16 }
0x2b1f   :  { %2404 = shalt.err (!%p2401_p4)
}
0x2b20   :  { %s2405_s23 = scalar_lea.hbm %s2982_s9, 1024 }
0x2b21   :  { %p2406_p5 = scmp.ne.s32.totalorder %s2982_s9, %s2405_s23  ;;  %p2409_p6 = scmp.lt.u32.totalorder %s2405_s23, %s2982_s9 }
0x2b23   :  { %p2411_p7 = pnand %p2409_p6, %p2406_p5 }
0x2b25   :  { %2414 = shalt.err (!%p2411_p7)
}
0x2b26   :  { %s2423_s27 = smov 128   ;;  %s2424_s28 = smov 8  }
0x2b27   :  { %1930 = dma.vmem_to_hbm [thread:$0]  %s1925_s8, 1024, %s2982_s9, [#allocation9], %s2423_s27, %s2423_s27, %s2424_s28  }
0x2b28   :  { %2415 = dma.done.wait [#allocation9], 1024  }
0x2b29   :  { %2416 = vsyncadd [#allocation9], 4294966272 }
0x2b2a   :  { %1934 = vsyncpa [#allocation9], 1 }

</bundles_post_ra>
